<compile_context>
chip_gen: v7x
topology: tpu7x:2x2x1
jax: 0.10.0
libtpu: 0.0.40
codegen_flags: <defaults>
</compile_context>

<pallas_src>
import jax
import jax.numpy as jnp
from jax.experimental import pallas as pl
from jax.experimental.pallas import tpu as pltpu

# ----------------------------- configuration -----------------------------
B = 2             # batch per image stream
IMG = 32          # image spatial size
PATCH = 8         # patch size
NP = (IMG // PATCH) ** 2          # 16 patches
PATCH_DIM = 3 * PATCH * PATCH     # 192
PD_PAD = 256      # patch_dim padded to whole 128-lane vregs
D = 128           # embed dim (stands in for 768)
NHEAD = 4
HD = D // NHEAD   # 32
MLP = 256
T = NP + 1        # +CLS token = 17 valid tokens
T_PAD = 24        # padded to sublane multiple of 8
C = 256           # num_classes (stands in for 8142)

# Images per grid step.  IPG=2 -> 48-row matmuls and a 2-step "parallel" grid so
# v7x's two TensorCores both work; on v5e/v6e the 2 sequential steps cost ~0.7 us.
IPG = 2
M_ROWS = IPG * T_PAD              # 48 token rows per grid step

ALPHA = 1.0               # training-time attribute of the reference; unused in forward
INFERENCE_ALPHA = 0.5
LN_EPS = 1e-6

# Packed small-parameter table: one f32 (16, 512) array, rows indexed statically.
(R_LN1G, R_LN1B, R_QKVB, R_PJB, R_LN2G, R_LN2B,
 R_MB1, R_MB2, R_LNFG, R_LNFB, R_HB) = range(11)
VEC_ROWS = 16
VEC_W = 2 * C                      # 512 = widest packed row (head bias)


# ----------------------- exact-GELU capability probe -----------------------
def _erf_supported():
    try:
        def k(x_ref, o_ref):
            o_ref[...] = jax.lax.erf(x_ref[...])
        y = pl.pallas_call(
            k, out_shape=jax.ShapeDtypeStruct((8, 128), jnp.float32),
        )(jnp.zeros((8, 128), jnp.float32))
        jax.block_until_ready(y)
        return True
    except Exception:
        return False


_EXACT_GELU = _erf_supported()


def _gelu(x):
    if _EXACT_GELU:
        # Exact erf GELU, matching PyTorch nn.GELU used by timm ViT.
        return 0.5 * x * (1.0 + jax.lax.erf(x * 0.7071067811865476))
    # TODO(synk): exact-erf GELU not lowerable on this Mosaic build; tanh approximation differs slightly from nn.GELU.
    return jax.nn.gelu(x, approximate=True)


# ------------------------------ Pallas kernel ------------------------------
def vit_fused_kernel(x_ref, add_ref, vec_ref, pw_ref, qkvw_ref, pjw_ref,
                     w1_ref, w2_ref, hw_ref, o_ref):
    """One grid step = IPG images (M_ROWS token rows): patch-embed -> attn ->
    MLP -> final LN -> CLS pool -> both heads, all fused."""

    def ln(v, g, b):
        mu = jnp.mean(v, axis=-1, keepdims=True)
        d = v - mu
        var = jnp.mean(d * d, axis=-1, keepdims=True)
        return d * jax.lax.rsqrt(var + LN_EPS) * g + b

    # ---- patch embedding (bf16 operands, f32 MXU accumulation) ----
    x = jnp.dot(x_ref[...], pw_ref[...], preferred_element_type=jnp.float32)
    # CLS token, positional embedding and patch bias folded into one add table:
    # per image, row 0 = cls + pos[0]; rows >= 1 = pos[r] + patch_b.
    x = x + add_ref[...]                                     # (M_ROWS, D) f32

    # ---- pre-LN multi-head self-attention ----
    h = ln(x, vec_ref[R_LN1G:R_LN1G + 1, :D], vec_ref[R_LN1B:R_LN1B + 1, :D])
    qkv = (jnp.dot(h.astype(jnp.bfloat16), qkvw_ref[...],
                   preferred_element_type=jnp.float32)
           + vec_ref[R_QKVB:R_QKVB + 1, :3 * D])             # (M_ROWS, 3D) f32
    q = qkv[:, 0:D]
    k = qkv[:, D:2 * D]
    v = qkv[:, 2 * D:3 * D]

    kvalid = jax.lax.broadcasted_iota(jnp.int32, (IPG, T_PAD, T_PAD), 2) < T
    scale = 1.0 / (HD ** 0.5)

    # Per-head scores/AV batched over the IPG images of this step; the attention
    # output projection is accumulated per head (concat(heads) @ W ==
    # sum_h head_h @ W[h*HD:(h+1)*HD]), so no lane concatenate is needed.
    proj = jnp.zeros((M_ROWS, D), jnp.float32)
    for hh in range(NHEAD):                                   # static unroll
        sl = slice(hh * HD, (hh + 1) * HD)
        qh = q[:, sl].reshape(IPG, T_PAD, HD).astype(jnp.bfloat16)
        kh = k[:, sl].reshape(IPG, T_PAD, HD).astype(jnp.bfloat16)
        vh = v[:, sl].reshape(IPG, T_PAD, HD).astype(jnp.bfloat16)
        s = jnp.einsum('bqd,bkd->bqk', qh, kh,
                       preferred_element_type=jnp.float32) * scale
        s = jnp.where(kvalid, s, -1e30)                       # mask padded key rows
        s = s - jnp.max(s, axis=-1, keepdims=True)
        p = jnp.exp(s)
        p = p * pl.reciprocal(jnp.sum(p, axis=-1, keepdims=True), approx=True)
        oh = jnp.einsum('bqk,bkd->bqd', p.astype(jnp.bfloat16), vh,
                        preferred_element_type=jnp.float32)   # (IPG, T_PAD, HD)
        proj = proj + jnp.dot(oh.reshape(M_ROWS, HD).astype(jnp.bfloat16),
                              pjw_ref[hh * HD:(hh + 1) * HD, :],
                              preferred_element_type=jnp.float32)
    x = x + proj + vec_ref[R_PJB:R_PJB + 1, :D]

    # ---- pre-LN MLP ----
    h2 = ln(x, vec_ref[R_LN2G:R_LN2G + 1, :D], vec_ref[R_LN2B:R_LN2B + 1, :D])
    m = (jnp.dot(h2.astype(jnp.bfloat16), w1_ref[...],
                 preferred_element_type=jnp.float32)
         + vec_ref[R_MB1:R_MB1 + 1, :MLP])
    m = _gelu(m)
    x = x + (jnp.dot(m.astype(jnp.bfloat16), w2_ref[...],
                     preferred_element_type=jnp.float32)
             + vec_ref[R_MB2:R_MB2 + 1, :D])

    # ---- final LN, CLS pooling, fused classification heads ----
    xf = ln(x, vec_ref[R_LNFG:R_LNFG + 1, :D], vec_ref[R_LNFB:R_LNFB + 1, :D])
    cls_h = xf.reshape(IPG, T_PAD, D)[:, 0, :]                # (IPG, D) CLS rows
    # Heads computed in f32 (weights stored bf16 but upcast) to match the f32
    # reference heads; output is lane-dense (IPG, 2C=512).
    logits = (jnp.dot(cls_h, hw_ref[...].astype(jnp.float32),
                      preferred_element_type=jnp.float32)
              + vec_ref[R_HB:R_HB + 1, :2 * C])
    o_ref[0] = logits


# ------------------------------ kernel wrapper ------------------------------
def patchify_pad(img):
    """NCHW f32 -> (N, T_PAD, PD_PAD) bf16. Row 0 = CLS slot (zeros), rows 1..NP = patches."""
    n = img.shape[0]
    g = IMG // PATCH
    x = img.astype(jnp.bfloat16).reshape(n, 3, g, PATCH, g, PATCH)
    x = x.transpose(0, 2, 4, 1, 3, 5).reshape(n, NP, PATCH_DIM)
    out = jnp.zeros((n, T_PAD, PD_PAD), jnp.bfloat16)
    return out.at[:, 1:1 + NP, :PATCH_DIM].set(x)


def embed_and_heads(params, imgs):
    """Fused ViT embedder + both heads. imgs: (N, 3, IMG, IMG) -> (N, 2C) logits."""
    n = imgs.shape[0]
    ng = -(-n // IPG)
    n_pad = ng * IPG
    x_in = patchify_pad(imgs)                                  # (n, T_PAD, PD_PAD) bf16
    if n_pad != n:
        x_in = jnp.pad(x_in, ((0, n_pad - n), (0, 0), (0, 0)))
    x_flat = x_in.reshape(n_pad * T_PAD, PD_PAD)

    const = lambda shape: pl.BlockSpec(shape, lambda g: (0,) * len(shape))
    out = pl.pallas_call(
        vit_fused_kernel,
        out_shape=jax.ShapeDtypeStruct((ng, IPG, 2 * C), jnp.float32),
        grid=(ng,),
        in_specs=[
            pl.BlockSpec((M_ROWS, PD_PAD), lambda g: (g, 0)),  # this step's token rows
            const((M_ROWS, D)),          # tok_add (cls/pos/patch-bias table, tiled)
            const((VEC_ROWS, VEC_W)),    # packed biases + LN params + head bias
            const((PD_PAD, D)),          # patch_w
            const((D, 3 * D)),           # qkv_w
            const((D, D)),               # proj_w
            const((D, MLP)),             # mlp_w1
            const((MLP, D)),             # mlp_w2
            const((D, 2 * C)),           # head_w (cb || rb)
        ],
        out_specs=pl.BlockSpec((1, IPG, 2 * C), lambda g: (g, 0, 0)),
        compiler_params=pltpu.CompilerParams(
            dimension_semantics=("parallel",)),
    )(x_flat, params["tok_add"], params["vec"], params["patch_w"],
      params["qkv_w"], params["proj_w"], params["mlp_w1"], params["mlp_w2"],
      params["head_w"])
    return out.reshape(n_pad, 2 * C)[:n]


# ------------------------------ params / model ------------------------------
def init_params(key):
    ks = jax.random.split(key, 10)
    s = 0.02

    def nrm(k, shape):
        return jax.random.normal(k, shape, jnp.float32) * s

    patch_w = jnp.zeros((PD_PAD, D), jnp.float32).at[:PATCH_DIM].set(
        nrm(ks[0], (PATCH_DIM, D)))
    patch_b = jnp.zeros((D,), jnp.float32)
    cls = nrm(ks[1], (D,))
    pos = jnp.zeros((T_PAD, D), jnp.float32).at[:T].set(nrm(ks[2], (T, D)))

    # Fold CLS token + positional embedding + patch bias into one additive table.
    tok_add = pos + patch_b[None, :]
    tok_add = tok_add.at[0].set(cls + pos[0])
    tok_add = jnp.tile(tok_add, (IPG, 1))                      # (M_ROWS, D)

    # Packed small-parameter table (biases zero, LN gammas one, like fresh LN/Linear).
    vec = jnp.zeros((VEC_ROWS, VEC_W), jnp.float32)
    vec = vec.at[R_LN1G, :D].set(1.0)
    vec = vec.at[R_LN2G, :D].set(1.0)
    vec = vec.at[R_LNFG, :D].set(1.0)

    cb_w = nrm(ks[7], (D, C))
    rb_w = nrm(ks[8], (D, C))

    return {
        "tok_add": tok_add,
        "vec": vec,
        # matmul weights stored bf16 (MXU-native, halves VMEM/DMA bytes)
        "patch_w": patch_w.astype(jnp.bfloat16),
        "qkv_w": nrm(ks[3], (D, 3 * D)).astype(jnp.bfloat16),
        "proj_w": nrm(ks[4], (D, D)).astype(jnp.bfloat16),
        "mlp_w1": nrm(ks[5], (D, MLP)).astype(jnp.bfloat16),
        "mlp_w2": nrm(ks[6], (MLP, D)).astype(jnp.bfloat16),
        # cb head || rb head concatenated along classes -> one wide matmul
        "head_w": jnp.concatenate([cb_w, rb_w], axis=1).astype(jnp.bfloat16),
    }


def shared_embedder_forward(params, img1, img2=None, combine=True):
    """Mirrors SharedEmbedderModel.forward semantics (share_embedder=True)."""
    b = img1.shape[0]
    if img2 is not None:
        imgs = jnp.concatenate([img1, img2], axis=0)           # (2B, 3, H, W)
        logits = embed_and_heads(params, imgs)                 # (2B, 2C)
        logits1 = logits[:b, :C]                               # cb(embed(img1))
        logits2 = logits[b:, C:]                               # rb(embed(img2))
        return logits1, logits2
    else:
        # Shared embedder: one pass yields both heads' logits for img1.
        logits = embed_and_heads(params, img1)                 # (B, 2C)
        logits1 = logits[:, :C]
        logits2 = logits[:, C:]
        if combine:
            return (INFERENCE_ALPHA * logits1
                    + (1.0 - INFERENCE_ALPHA) * logits2)
        return logits1, logits2


# ---------------------------------- main ----------------------------------
if __name__ == "__main__":
    key = jax.random.PRNGKey(0)
    k1, k2, kp = jax.random.split(key, 3)
    img1 = jax.random.normal(k1, (B, 3, IMG, IMG), jnp.float32)
    img2 = jax.random.normal(k2, (B, 3, IMG, IMG), jnp.float32)
    params = init_params(kp)

    # Two-image path (returns a pair of logits).
    logits1, logits2 = shared_embedder_forward(params, img1, img2)
    jax.block_until_ready((logits1, logits2))
    assert logits1.shape == (B, C) and logits2.shape == (B, C)

    # Single-image inference path with combine=True.
    combined = shared_embedder_forward(params, img1, None, combine=True)
    jax.block_until_ready(combined)
    assert combined.shape == (B, C)

    assert bool(jnp.all(jnp.isfinite(logits1)))
    assert bool(jnp.all(jnp.isfinite(logits2)))
    assert bool(jnp.all(jnp.isfinite(combined)))
    print("KERNEL_OK")
</pallas_src>

<mosaic_0001>
module attributes {stable_mosaic.version = 11 : i64} {
  func.func @k(%arg0: memref<8x128xf32, #tpu.memory_space<vmem>>, %arg1: memref<8x128xf32, #tpu.memory_space<vmem>>) attributes {dimension_semantics = [], scalar_prefetch = 0 : i64, scratch_operands = 0 : i64, tpu.core_type = #tpu.core_type<tc>} {
    %c0 = arith.constant 0 : index
    %c0_0 = arith.constant 0 : index
    %0 = vector.load %arg0[%c0, %c0_0] : memref<8x128xf32, #tpu.memory_space<vmem>>, vector<8x128xf32>
    %1 = math.erf %0 : vector<8x128xf32>
    %c0_1 = arith.constant 0 : index
    %c0_2 = arith.constant 0 : index
    %2 = vector.load %arg1[%c0_1, %c0_2] : memref<8x128xf32, #tpu.memory_space<vmem>>, vector<8x128xf32>
    tpu.vector_store %arg1[%c0_1, %c0_2], %1 {strides = array<i32>} : memref<8x128xf32, #tpu.memory_space<vmem>>, vector<8x128xf32>,
    return
  }
}

module attributes {stable_mosaic.version = 11 : i64} {
  func.func @vit_fused_kernel(%arg0: i32, %arg1: memref<48x256xbf16, #tpu.memory_space<vmem>>, %arg2: memref<48x128xf32, #tpu.memory_space<vmem>>, %arg3: memref<16x512xf32, #tpu.memory_space<vmem>>, %arg4: memref<256x128xbf16, #tpu.memory_space<vmem>>, %arg5: memref<128x384xbf16, #tpu.memory_space<vmem>>, %arg6: memref<128x128xbf16, #tpu.memory_space<vmem>>, %arg7: memref<128x256xbf16, #tpu.memory_space<vmem>>, %arg8: memref<256x128xbf16, #tpu.memory_space<vmem>>, %arg9: memref<128x512xbf16, #tpu.memory_space<vmem>>, %arg10: memref<1x2x512xf32, #tpu.memory_space<vmem>>) attributes {dimension_semantics = [#tpu.dimension_semantics<parallel>], iteration_bounds = array<i64: 2>, scalar_prefetch = 0 : i64, scratch_operands = 0 : i64, tpu.core_type = #tpu.core_type<tc>, window_params = [{transform_indices = @transform_0, window_bounds = array<i64: 48, 256>}, {pipeline_mode = #tpu.pipeline_mode<synchronous>, transform_indices = @transform_1, window_bounds = array<i64: 48, 128>}, {pipeline_mode = #tpu.pipeline_mode<synchronous>, transform_indices = @transform_2, window_bounds = array<i64: 16, 512>}, {pipeline_mode = #tpu.pipeline_mode<synchronous>, transform_indices = @transform_3, window_bounds = array<i64: 256, 128>}, {pipeline_mode = #tpu.pipeline_mode<synchronous>, transform_indices = @transform_4, window_bounds = array<i64: 128, 384>}, {pipeline_mode = #tpu.pipeline_mode<synchronous>, transform_indices = @transform_5, window_bounds = array<i64: 128, 128>}, {pipeline_mode = #tpu.pipeline_mode<synchronous>, transform_indices = @transform_6, window_bounds = array<i64: 128, 256>}, {pipeline_mode = #tpu.pipeline_mode<synchronous>, transform_indices = @transform_7, window_bounds = array<i64: 256, 128>}, {pipeline_mode = #tpu.pipeline_mode<synchronous>, transform_indices = @transform_8, window_bounds = array<i64: 128, 512>}, {transform_indices = @transform_9, window_bounds = array<i64: 1, 2, 512>}]} {
    %c0 = arith.constant 0 : index
    %c0_0 = arith.constant 0 : index
    %0 = vector.load %arg1[%c0, %c0_0] : memref<48x256xbf16, #tpu.memory_space<vmem>>, vector<48x256xbf16>
    %c0_1 = arith.constant 0 : index
    %c0_2 = arith.constant 0 : index
    %1 = vector.load %arg4[%c0_1, %c0_2] : memref<256x128xbf16, #tpu.memory_space<vmem>>, vector<256x128xbf16>
    %cst = arith.constant dense<0.000000e+00> : vector<48x128xf32>
    %2 = tpu.matmul %0, %1, %cst {dimension_numbers = #tpu.dot_dimension_numbers<[1], [0], [0], [1], [0, 0, 1, 1], [], []>} : vector<48x256xbf16>, vector<256x128xbf16>, vector<48x128xf32> -> vector<48x128xf32>
    %c0_3 = arith.constant 0 : index
    %c0_4 = arith.constant 0 : index
    %3 = vector.load %arg2[%c0_3, %c0_4] : memref<48x128xf32, #tpu.memory_space<vmem>>, vector<48x128xf32>
    %4 = arith.addf %2, %3 : vector<48x128xf32>
    %c0_5 = arith.constant 0 : index
    %c0_6 = arith.constant 0 : index
    %5 = vector.load %arg3[%c0_5, %c0_6] : memref<16x512xf32, #tpu.memory_space<vmem>>, vector<1x128xf32>
    %c1 = arith.constant 1 : index
    %c0_7 = arith.constant 0 : index
    %6 = vector.load %arg3[%c1, %c0_7] : memref<16x512xf32, #tpu.memory_space<vmem>>, vector<1x128xf32>
    %cst_8 = arith.constant dense<0.000000e+00> : vector<48xf32>
    %7 = vector.multi_reduction <add>, %4, %cst_8 [1] : vector<48x128xf32> to vector<48xf32>
    %8 = vector.shape_cast %7 : vector<48xf32> to vector<48x1xf32>
    %cst_9 = arith.constant 1.280000e+02 : f32
    %9 = vector.broadcast %cst_9 : f32 to vector<48x1xf32>
    %10 = arith.divf %8, %9 : vector<48x1xf32>
    %11 = vector.broadcast %10 : vector<48x1xf32> to vector<48x128xf32>
    %12 = arith.subf %4, %11 : vector<48x128xf32>
    %13 = arith.mulf %12, %12 : vector<48x128xf32>
    %cst_10 = arith.constant dense<0.000000e+00> : vector<48xf32>
    %14 = vector.multi_reduction <add>, %13, %cst_10 [1] : vector<48x128xf32> to vector<48xf32>
    %15 = vector.shape_cast %14 : vector<48xf32> to vector<48x1xf32>
    %cst_11 = arith.constant 1.280000e+02 : f32
    %16 = vector.broadcast %cst_11 : f32 to vector<48x1xf32>
    %17 = arith.divf %15, %16 : vector<48x1xf32>
    %cst_12 = arith.constant 9.99999997E-7 : f32
    %18 = vector.broadcast %cst_12 : f32 to vector<48x1xf32>
    %19 = arith.addf %17, %18 : vector<48x1xf32>
    %20 = math.rsqrt %19 : vector<48x1xf32>
    %21 = vector.broadcast %20 : vector<48x1xf32> to vector<48x128xf32>
    %22 = arith.mulf %12, %21 : vector<48x128xf32>
    %23 = vector.broadcast %5 : vector<1x128xf32> to vector<48x128xf32>
    %24 = arith.mulf %22, %23 : vector<48x128xf32>
    %25 = vector.broadcast %6 : vector<1x128xf32> to vector<48x128xf32>
    %26 = arith.addf %24, %25 : vector<48x128xf32>
    %27 = arith.truncf %26 : vector<48x128xf32> to vector<48x128xbf16>
    %c0_13 = arith.constant 0 : index
    %c0_14 = arith.constant 0 : index
    %28 = vector.load %arg5[%c0_13, %c0_14] : memref<128x384xbf16, #tpu.memory_space<vmem>>, vector<128x384xbf16>
    %cst_15 = arith.constant dense<0.000000e+00> : vector<48x384xf32>
    %29 = tpu.matmul %27, %28, %cst_15 {dimension_numbers = #tpu.dot_dimension_numbers<[1], [0], [0], [1], [0, 0, 1, 1], [], []>} : vector<48x128xbf16>, vector<128x384xbf16>, vector<48x384xf32> -> vector<48x384xf32>
    %c2 = arith.constant 2 : index
    %c0_16 = arith.constant 0 : index
    %30 = vector.load %arg3[%c2, %c0_16] : memref<16x512xf32, #tpu.memory_space<vmem>>, vector<1x384xf32>
    %31 = vector.broadcast %30 : vector<1x384xf32> to vector<48x384xf32>
    %32 = arith.addf %29, %31 : vector<48x384xf32>
    %33 = vector.extract_strided_slice %32 {offsets = [0, 0], sizes = [48, 128], strides = [1, 1]} : vector<48x384xf32> to vector<48x128xf32>
    %34 = vector.extract_strided_slice %32 {offsets = [0, 128], sizes = [48, 128], strides = [1, 1]} : vector<48x384xf32> to vector<48x128xf32>
    %35 = vector.extract_strided_slice %32 {offsets = [0, 256], sizes = [48, 128], strides = [1, 1]} : vector<48x384xf32> to vector<48x128xf32>
    %36 = tpu.iota {dimensions = array<i32: 2>} : vector<2x24x24xi32>
    %c17_i32 = arith.constant 17 : i32
    %37 = vector.broadcast %c17_i32 : i32 to vector<2x24x24xi32>
    %38 = arith.cmpi slt, %36, %37 : vector<2x24x24xi32>
    %cst_17 = arith.constant 0.000000e+00 : f32
    %39 = vector.broadcast %cst_17 : f32 to vector<48x128xf32>
    %40 = vector.extract_strided_slice %33 {offsets = [0, 0], sizes = [48, 32], strides = [1, 1]} : vector<48x128xf32> to vector<48x32xf32>
    %41 = vector.shape_cast %40 : vector<48x32xf32> to vector<2x24x32xf32>
    %42 = arith.truncf %41 : vector<2x24x32xf32> to vector<2x24x32xbf16>
    %43 = vector.extract_strided_slice %34 {offsets = [0, 0], sizes = [48, 32], strides = [1, 1]} : vector<48x128xf32> to vector<48x32xf32>
    %44 = vector.shape_cast %43 : vector<48x32xf32> to vector<2x24x32xf32>
    %45 = arith.truncf %44 : vector<2x24x32xf32> to vector<2x24x32xbf16>
    %46 = vector.extract_strided_slice %35 {offsets = [0, 0], sizes = [48, 32], strides = [1, 1]} : vector<48x128xf32> to vector<48x32xf32>
    %47 = vector.shape_cast %46 : vector<48x32xf32> to vector<2x24x32xf32>
    %48 = arith.truncf %47 : vector<2x24x32xf32> to vector<2x24x32xbf16>
    "tpu.trace_start"() <{level = 10 : i32, message = "bqd,bkd->bqk"}> : () -> ()
    %cst_18 = arith.constant dense<0.000000e+00> : vector<2x24x24xf32>
    %49 = tpu.matmul %42, %45, %cst_18 {dimension_numbers = #tpu.dot_dimension_numbers<[2], [2], [1], [1], [0, 0, 0, 1, 1, 1], [0], [0]>} : vector<2x24x32xbf16>, vector<2x24x32xbf16>, vector<2x24x24xf32> -> vector<2x24x24xf32>
    "tpu.trace_stop"() : () -> ()
    %cst_19 = arith.constant 0.176776692 : f32
    %50 = vector.broadcast %cst_19 : f32 to vector<2x24x24xf32>
    %51 = arith.mulf %49, %50 : vector<2x24x24xf32>
    %cst_20 = arith.constant -1.000000e+30 : f32
    %52 = vector.broadcast %cst_20 : f32 to vector<2x24x24xf32>
    %53 = arith.select %38, %51, %52 : vector<2x24x24xi1>, vector<2x24x24xf32>
    %cst_21 = arith.constant dense<0xFF800000> : vector<2x24xf32>
    %54 = vector.multi_reduction <maximumf>, %53, %cst_21 [2] : vector<2x24x24xf32> to vector<2x24xf32>
    %55 = vector.shape_cast %54 : vector<2x24xf32> to vector<2x24x1xf32>
    %56 = vector.broadcast %55 : vector<2x24x1xf32> to vector<2x24x24xf32>
    %57 = arith.subf %53, %56 : vector<2x24x24xf32>
    %58 = math.exp %57 : vector<2x24x24xf32>
    %cst_22 = arith.constant dense<0.000000e+00> : vector<2x24xf32>
    %59 = vector.multi_reduction <add>, %58, %cst_22 [2] : vector<2x24x24xf32> to vector<2x24xf32>
    %60 = vector.shape_cast %59 : vector<2x24xf32> to vector<2x24x1xf32>
    %61 = tpu.reciprocal %60 {approx = true} : vector<2x24x1xf32> -> vector<2x24x1xf32>
    %62 = vector.broadcast %61 : vector<2x24x1xf32> to vector<2x24x24xf32>
    %63 = arith.mulf %58, %62 : vector<2x24x24xf32>
    %64 = arith.truncf %63 : vector<2x24x24xf32> to vector<2x24x24xbf16>
    "tpu.trace_start"() <{level = 10 : i32, message = "bqk,bkd->bqd"}> : () -> ()
    %cst_23 = arith.constant dense<0.000000e+00> : vector<2x24x32xf32>
    %65 = tpu.matmul %64, %48, %cst_23 {dimension_numbers = #tpu.dot_dimension_numbers<[2], [1], [1], [2], [0, 0, 0, 1, 1, 2], [0], [0]>} : vector<2x24x24xbf16>, vector<2x24x32xbf16>, vector<2x24x32xf32> -> vector<2x24x32xf32>
    "tpu.trace_stop"() : () -> ()
    %66 = vector.shape_cast %65 : vector<2x24x32xf32> to vector<48x32xf32>
    %67 = arith.truncf %66 : vector<48x32xf32> to vector<48x32xbf16>
    %c0_24 = arith.constant 0 : index
    %c0_25 = arith.constant 0 : index
    %68 = vector.load %arg6[%c0_24, %c0_25] : memref<128x128xbf16, #tpu.memory_space<vmem>>, vector<32x128xbf16>
    %cst_26 = arith.constant dense<0.000000e+00> : vector<48x128xf32>
    %69 = tpu.matmul %67, %68, %cst_26 {dimension_numbers = #tpu.dot_dimension_numbers<[1], [0], [0], [1], [0, 0, 1, 1], [], []>} : vector<48x32xbf16>, vector<32x128xbf16>, vector<48x128xf32> -> vector<48x128xf32>
    %70 = arith.addf %39, %69 : vector<48x128xf32>
    %71 = vector.extract_strided_slice %33 {offsets = [0, 32], sizes = [48, 32], strides = [1, 1]} : vector<48x128xf32> to vector<48x32xf32>
    %72 = vector.shape_cast %71 : vector<48x32xf32> to vector<2x24x32xf32>
    %73 = arith.truncf %72 : vector<2x24x32xf32> to vector<2x24x32xbf16>
    %74 = vector.extract_strided_slice %34 {offsets = [0, 32], sizes = [48, 32], strides = [1, 1]} : vector<48x128xf32> to vector<48x32xf32>
    %75 = vector.shape_cast %74 : vector<48x32xf32> to vector<2x24x32xf32>
    %76 = arith.truncf %75 : vector<2x24x32xf32> to vector<2x24x32xbf16>
    %77 = vector.extract_strided_slice %35 {offsets = [0, 32], sizes = [48, 32], strides = [1, 1]} : vector<48x128xf32> to vector<48x32xf32>
    %78 = vector.shape_cast %77 : vector<48x32xf32> to vector<2x24x32xf32>
    %79 = arith.truncf %78 : vector<2x24x32xf32> to vector<2x24x32xbf16>
    "tpu.trace_start"() <{level = 10 : i32, message = "bqd,bkd->bqk"}> : () -> ()
    %cst_27 = arith.constant dense<0.000000e+00> : vector<2x24x24xf32>
    %80 = tpu.matmul %73, %76, %cst_27 {dimension_numbers = #tpu.dot_dimension_numbers<[2], [2], [1], [1], [0, 0, 0, 1, 1, 1], [0], [0]>} : vector<2x24x32xbf16>, vector<2x24x32xbf16>, vector<2x24x24xf32> -> vector<2x24x24xf32>
    "tpu.trace_stop"() : () -> ()
    %cst_28 = arith.constant 0.176776692 : f32
    %81 = vector.broadcast %cst_28 : f32 to vector<2x24x24xf32>
    %82 = arith.mulf %80, %81 : vector<2x24x24xf32>
    %cst_29 = arith.constant -1.000000e+30 : f32
    %83 = vector.broadcast %cst_29 : f32 to vector<2x24x24xf32>
    %84 = arith.select %38, %82, %83 : vector<2x24x24xi1>, vector<2x24x24xf32>
    %cst_30 = arith.constant dense<0xFF800000> : vector<2x24xf32>
    %85 = vector.multi_reduction <maximumf>, %84, %cst_30 [2] : vector<2x24x24xf32> to vector<2x24xf32>
    %86 = vector.shape_cast %85 : vector<2x24xf32> to vector<2x24x1xf32>
    %87 = vector.broadcast %86 : vector<2x24x1xf32> to vector<2x24x24xf32>
    %88 = arith.subf %84, %87 : vector<2x24x24xf32>
    %89 = math.exp %88 : vector<2x24x24xf32>
    %cst_31 = arith.constant dense<0.000000e+00> : vector<2x24xf32>
    %90 = vector.multi_reduction <add>, %89, %cst_31 [2] : vector<2x24x24xf32> to vector<2x24xf32>
    %91 = vector.shape_cast %90 : vector<2x24xf32> to vector<2x24x1xf32>
    %92 = tpu.reciprocal %91 {approx = true} : vector<2x24x1xf32> -> vector<2x24x1xf32>
    %93 = vector.broadcast %92 : vector<2x24x1xf32> to vector<2x24x24xf32>
    %94 = arith.mulf %89, %93 : vector<2x24x24xf32>
    %95 = arith.truncf %94 : vector<2x24x24xf32> to vector<2x24x24xbf16>
    "tpu.trace_start"() <{level = 10 : i32, message = "bqk,bkd->bqd"}> : () -> ()
    %cst_32 = arith.constant dense<0.000000e+00> : vector<2x24x32xf32>
    %96 = tpu.matmul %95, %79, %cst_32 {dimension_numbers = #tpu.dot_dimension_numbers<[2], [1], [1], [2], [0, 0, 0, 1, 1, 2], [0], [0]>} : vector<2x24x24xbf16>, vector<2x24x32xbf16>, vector<2x24x32xf32> -> vector<2x24x32xf32>
    "tpu.trace_stop"() : () -> ()
    %97 = vector.shape_cast %96 : vector<2x24x32xf32> to vector<48x32xf32>
    %98 = arith.truncf %97 : vector<48x32xf32> to vector<48x32xbf16>
    %c32 = arith.constant 32 : index
    %c0_33 = arith.constant 0 : index
    %99 = vector.load %arg6[%c32, %c0_33] : memref<128x128xbf16, #tpu.memory_space<vmem>>, vector<32x128xbf16>
    %cst_34 = arith.constant dense<0.000000e+00> : vector<48x128xf32>
    %100 = tpu.matmul %98, %99, %cst_34 {dimension_numbers = #tpu.dot_dimension_numbers<[1], [0], [0], [1], [0, 0, 1, 1], [], []>} : vector<48x32xbf16>, vector<32x128xbf16>, vector<48x128xf32> -> vector<48x128xf32>
    %101 = arith.addf %70, %100 : vector<48x128xf32>
    %102 = vector.extract_strided_slice %33 {offsets = [0, 64], sizes = [48, 32], strides = [1, 1]} : vector<48x128xf32> to vector<48x32xf32>
    %103 = vector.shape_cast %102 : vector<48x32xf32> to vector<2x24x32xf32>
    %104 = arith.truncf %103 : vector<2x24x32xf32> to vector<2x24x32xbf16>
    %105 = vector.extract_strided_slice %34 {offsets = [0, 64], sizes = [48, 32], strides = [1, 1]} : vector<48x128xf32> to vector<48x32xf32>
    %106 = vector.shape_cast %105 : vector<48x32xf32> to vector<2x24x32xf32>
    %107 = arith.truncf %106 : vector<2x24x32xf32> to vector<2x24x32xbf16>
    %108 = vector.extract_strided_slice %35 {offsets = [0, 64], sizes = [48, 32], strides = [1, 1]} : vector<48x128xf32> to vector<48x32xf32>
    %109 = vector.shape_cast %108 : vector<48x32xf32> to vector<2x24x32xf32>
    %110 = arith.truncf %109 : vector<2x24x32xf32> to vector<2x24x32xbf16>
    "tpu.trace_start"() <{level = 10 : i32, message = "bqd,bkd->bqk"}> : () -> ()
    %cst_35 = arith.constant dense<0.000000e+00> : vector<2x24x24xf32>
    %111 = tpu.matmul %104, %107, %cst_35 {dimension_numbers = #tpu.dot_dimension_numbers<[2], [2], [1], [1], [0, 0, 0, 1, 1, 1], [0], [0]>} : vector<2x24x32xbf16>, vector<2x24x32xbf16>, vector<2x24x24xf32> -> vector<2x24x24xf32>
    "tpu.trace_stop"() : () -> ()
    %cst_36 = arith.constant 0.176776692 : f32
    %112 = vector.broadcast %cst_36 : f32 to vector<2x24x24xf32>
    %113 = arith.mulf %111, %112 : vector<2x24x24xf32>
    %cst_37 = arith.constant -1.000000e+30 : f32
    %114 = vector.broadcast %cst_37 : f32 to vector<2x24x24xf32>
    %115 = arith.select %38, %113, %114 : vector<2x24x24xi1>, vector<2x24x24xf32>
    %cst_38 = arith.constant dense<0xFF800000> : vector<2x24xf32>
    %116 = vector.multi_reduction <maximumf>, %115, %cst_38 [2] : vector<2x24x24xf32> to vector<2x24xf32>
    %117 = vector.shape_cast %116 : vector<2x24xf32> to vector<2x24x1xf32>
    %118 = vector.broadcast %117 : vector<2x24x1xf32> to vector<2x24x24xf32>
    %119 = arith.subf %115, %118 : vector<2x24x24xf32>
    %120 = math.exp %119 : vector<2x24x24xf32>
    %cst_39 = arith.constant dense<0.000000e+00> : vector<2x24xf32>
    %121 = vector.multi_reduction <add>, %120, %cst_39 [2] : vector<2x24x24xf32> to vector<2x24xf32>
    %122 = vector.shape_cast %121 : vector<2x24xf32> to vector<2x24x1xf32>
    %123 = tpu.reciprocal %122 {approx = true} : vector<2x24x1xf32> -> vector<2x24x1xf32>
    %124 = vector.broadcast %123 : vector<2x24x1xf32> to vector<2x24x24xf32>
    %125 = arith.mulf %120, %124 : vector<2x24x24xf32>
    %126 = arith.truncf %125 : vector<2x24x24xf32> to vector<2x24x24xbf16>
    "tpu.trace_start"() <{level = 10 : i32, message = "bqk,bkd->bqd"}> : () -> ()
    %cst_40 = arith.constant dense<0.000000e+00> : vector<2x24x32xf32>
    %127 = tpu.matmul %126, %110, %cst_40 {dimension_numbers = #tpu.dot_dimension_numbers<[2], [1], [1], [2], [0, 0, 0, 1, 1, 2], [0], [0]>} : vector<2x24x24xbf16>, vector<2x24x32xbf16>, vector<2x24x32xf32> -> vector<2x24x32xf32>
    "tpu.trace_stop"() : () -> ()
    %128 = vector.shape_cast %127 : vector<2x24x32xf32> to vector<48x32xf32>
    %129 = arith.truncf %128 : vector<48x32xf32> to vector<48x32xbf16>
    %c64 = arith.constant 64 : index
    %c0_41 = arith.constant 0 : index
    %130 = vector.load %arg6[%c64, %c0_41] : memref<128x128xbf16, #tpu.memory_space<vmem>>, vector<32x128xbf16>
    %cst_42 = arith.constant dense<0.000000e+00> : vector<48x128xf32>
    %131 = tpu.matmul %129, %130, %cst_42 {dimension_numbers = #tpu.dot_dimension_numbers<[1], [0], [0], [1], [0, 0, 1, 1], [], []>} : vector<48x32xbf16>, vector<32x128xbf16>, vector<48x128xf32> -> vector<48x128xf32>
    %132 = arith.addf %101, %131 : vector<48x128xf32>
    %133 = vector.extract_strided_slice %33 {offsets = [0, 96], sizes = [48, 32], strides = [1, 1]} : vector<48x128xf32> to vector<48x32xf32>
    %134 = vector.shape_cast %133 : vector<48x32xf32> to vector<2x24x32xf32>
    %135 = arith.truncf %134 : vector<2x24x32xf32> to vector<2x24x32xbf16>
    %136 = vector.extract_strided_slice %34 {offsets = [0, 96], sizes = [48, 32], strides = [1, 1]} : vector<48x128xf32> to vector<48x32xf32>
    %137 = vector.shape_cast %136 : vector<48x32xf32> to vector<2x24x32xf32>
    %138 = arith.truncf %137 : vector<2x24x32xf32> to vector<2x24x32xbf16>
    %139 = vector.extract_strided_slice %35 {offsets = [0, 96], sizes = [48, 32], strides = [1, 1]} : vector<48x128xf32> to vector<48x32xf32>
    %140 = vector.shape_cast %139 : vector<48x32xf32> to vector<2x24x32xf32>
    %141 = arith.truncf %140 : vector<2x24x32xf32> to vector<2x24x32xbf16>
    "tpu.trace_start"() <{level = 10 : i32, message = "bqd,bkd->bqk"}> : () -> ()
    %cst_43 = arith.constant dense<0.000000e+00> : vector<2x24x24xf32>
    %142 = tpu.matmul %135, %138, %cst_43 {dimension_numbers = #tpu.dot_dimension_numbers<[2], [2], [1], [1], [0, 0, 0, 1, 1, 1], [0], [0]>} : vector<2x24x32xbf16>, vector<2x24x32xbf16>, vector<2x24x24xf32> -> vector<2x24x24xf32>
    "tpu.trace_stop"() : () -> ()
    %cst_44 = arith.constant 0.176776692 : f32
    %143 = vector.broadcast %cst_44 : f32 to vector<2x24x24xf32>
    %144 = arith.mulf %142, %143 : vector<2x24x24xf32>
    %cst_45 = arith.constant -1.000000e+30 : f32
    %145 = vector.broadcast %cst_45 : f32 to vector<2x24x24xf32>
    %146 = arith.select %38, %144, %145 : vector<2x24x24xi1>, vector<2x24x24xf32>
    %cst_46 = arith.constant dense<0xFF800000> : vector<2x24xf32>
    %147 = vector.multi_reduction <maximumf>, %146, %cst_46 [2] : vector<2x24x24xf32> to vector<2x24xf32>
    %148 = vector.shape_cast %147 : vector<2x24xf32> to vector<2x24x1xf32>
    %149 = vector.broadcast %148 : vector<2x24x1xf32> to vector<2x24x24xf32>
    %150 = arith.subf %146, %149 : vector<2x24x24xf32>
    %151 = math.exp %150 : vector<2x24x24xf32>
    %cst_47 = arith.constant dense<0.000000e+00> : vector<2x24xf32>
    %152 = vector.multi_reduction <add>, %151, %cst_47 [2] : vector<2x24x24xf32> to vector<2x24xf32>
    %153 = vector.shape_cast %152 : vector<2x24xf32> to vector<2x24x1xf32>
    %154 = tpu.reciprocal %153 {approx = true} : vector<2x24x1xf32> -> vector<2x24x1xf32>
    %155 = vector.broadcast %154 : vector<2x24x1xf32> to vector<2x24x24xf32>
    %156 = arith.mulf %151, %155 : vector<2x24x24xf32>
    %157 = arith.truncf %156 : vector<2x24x24xf32> to vector<2x24x24xbf16>
    "tpu.trace_start"() <{level = 10 : i32, message = "bqk,bkd->bqd"}> : () -> ()
    %cst_48 = arith.constant dense<0.000000e+00> : vector<2x24x32xf32>
    %158 = tpu.matmul %157, %141, %cst_48 {dimension_numbers = #tpu.dot_dimension_numbers<[2], [1], [1], [2], [0, 0, 0, 1, 1, 2], [0], [0]>} : vector<2x24x24xbf16>, vector<2x24x32xbf16>, vector<2x24x32xf32> -> vector<2x24x32xf32>
    "tpu.trace_stop"() : () -> ()
    %159 = vector.shape_cast %158 : vector<2x24x32xf32> to vector<48x32xf32>
    %160 = arith.truncf %159 : vector<48x32xf32> to vector<48x32xbf16>
    %c96 = arith.constant 96 : index
    %c0_49 = arith.constant 0 : index
    %161 = vector.load %arg6[%c96, %c0_49] : memref<128x128xbf16, #tpu.memory_space<vmem>>, vector<32x128xbf16>
    %cst_50 = arith.constant dense<0.000000e+00> : vector<48x128xf32>
    %162 = tpu.matmul %160, %161, %cst_50 {dimension_numbers = #tpu.dot_dimension_numbers<[1], [0], [0], [1], [0, 0, 1, 1], [], []>} : vector<48x32xbf16>, vector<32x128xbf16>, vector<48x128xf32> -> vector<48x128xf32>
    %163 = arith.addf %132, %162 : vector<48x128xf32>
    %164 = arith.addf %4, %163 : vector<48x128xf32>
    %c3 = arith.constant 3 : index
    %c0_51 = arith.constant 0 : index
    %165 = vector.load %arg3[%c3, %c0_51] : memref<16x512xf32, #tpu.memory_space<vmem>>, vector<1x128xf32>
    %166 = vector.broadcast %165 : vector<1x128xf32> to vector<48x128xf32>
    %167 = arith.addf %164, %166 : vector<48x128xf32>
    %c4 = arith.constant 4 : index
    %c0_52 = arith.constant 0 : index
    %168 = vector.load %arg3[%c4, %c0_52] : memref<16x512xf32, #tpu.memory_space<vmem>>, vector<1x128xf32>
    %c5 = arith.constant 5 : index
    %c0_53 = arith.constant 0 : index
    %169 = vector.load %arg3[%c5, %c0_53] : memref<16x512xf32, #tpu.memory_space<vmem>>, vector<1x128xf32>
    %cst_54 = arith.constant dense<0.000000e+00> : vector<48xf32>
    %170 = vector.multi_reduction <add>, %167, %cst_54 [1] : vector<48x128xf32> to vector<48xf32>
    %171 = vector.shape_cast %170 : vector<48xf32> to vector<48x1xf32>
    %cst_55 = arith.constant 1.280000e+02 : f32
    %172 = vector.broadcast %cst_55 : f32 to vector<48x1xf32>
    %173 = arith.divf %171, %172 : vector<48x1xf32>
    %174 = vector.broadcast %173 : vector<48x1xf32> to vector<48x128xf32>
    %175 = arith.subf %167, %174 : vector<48x128xf32>
    %176 = arith.mulf %175, %175 : vector<48x128xf32>
    %cst_56 = arith.constant dense<0.000000e+00> : vector<48xf32>
    %177 = vector.multi_reduction <add>, %176, %cst_56 [1] : vector<48x128xf32> to vector<48xf32>
    %178 = vector.shape_cast %177 : vector<48xf32> to vector<48x1xf32>
    %cst_57 = arith.constant 1.280000e+02 : f32
    %179 = vector.broadcast %cst_57 : f32 to vector<48x1xf32>
    %180 = arith.divf %178, %179 : vector<48x1xf32>
    %cst_58 = arith.constant 9.99999997E-7 : f32
    %181 = vector.broadcast %cst_58 : f32 to vector<48x1xf32>
    %182 = arith.addf %180, %181 : vector<48x1xf32>
    %183 = math.rsqrt %182 : vector<48x1xf32>
    %184 = vector.broadcast %183 : vector<48x1xf32> to vector<48x128xf32>
    %185 = arith.mulf %175, %184 : vector<48x128xf32>
    %186 = vector.broadcast %168 : vector<1x128xf32> to vector<48x128xf32>
    %187 = arith.mulf %185, %186 : vector<48x128xf32>
    %188 = vector.broadcast %169 : vector<1x128xf32> to vector<48x128xf32>
    %189 = arith.addf %187, %188 : vector<48x128xf32>
    %190 = arith.truncf %189 : vector<48x128xf32> to vector<48x128xbf16>
    %c0_59 = arith.constant 0 : index
    %c0_60 = arith.constant 0 : index
    %191 = vector.load %arg7[%c0_59, %c0_60] : memref<128x256xbf16, #tpu.memory_space<vmem>>, vector<128x256xbf16>
    %cst_61 = arith.constant dense<0.000000e+00> : vector<48x256xf32>
    %192 = tpu.matmul %190, %191, %cst_61 {dimension_numbers = #tpu.dot_dimension_numbers<[1], [0], [0], [1], [0, 0, 1, 1], [], []>} : vector<48x128xbf16>, vector<128x256xbf16>, vector<48x256xf32> -> vector<48x256xf32>
    %c6 = arith.constant 6 : index
    %c0_62 = arith.constant 0 : index
    %193 = vector.load %arg3[%c6, %c0_62] : memref<16x512xf32, #tpu.memory_space<vmem>>, vector<1x256xf32>
    %194 = vector.broadcast %193 : vector<1x256xf32> to vector<48x256xf32>
    %195 = arith.addf %192, %194 : vector<48x256xf32>
    %196 = arith.mulf %195, %195 : vector<48x256xf32>
    %197 = arith.mulf %195, %196 : vector<48x256xf32>
    %cst_63 = arith.constant 4.471500e-02 : f32
    %198 = vector.broadcast %cst_63 : f32 to vector<48x256xf32>
    %199 = arith.mulf %198, %197 : vector<48x256xf32>
    %200 = arith.addf %195, %199 : vector<48x256xf32>
    %cst_64 = arith.constant 0.797884583 : f32
    %201 = vector.broadcast %cst_64 : f32 to vector<48x256xf32>
    %202 = arith.mulf %201, %200 : vector<48x256xf32>
    %203 = math.tanh %202 : vector<48x256xf32>
    %cst_65 = arith.constant 1.000000e+00 : f32
    %204 = vector.broadcast %cst_65 : f32 to vector<48x256xf32>
    %205 = arith.addf %204, %203 : vector<48x256xf32>
    %cst_66 = arith.constant 5.000000e-01 : f32
    %206 = vector.broadcast %cst_66 : f32 to vector<48x256xf32>
    %207 = arith.mulf %206, %205 : vector<48x256xf32>
    %208 = arith.mulf %195, %207 : vector<48x256xf32>
    %209 = arith.truncf %208 : vector<48x256xf32> to vector<48x256xbf16>
    %c0_67 = arith.constant 0 : index
    %c0_68 = arith.constant 0 : index
    %210 = vector.load %arg8[%c0_67, %c0_68] : memref<256x128xbf16, #tpu.memory_space<vmem>>, vector<256x128xbf16>
    %cst_69 = arith.constant dense<0.000000e+00> : vector<48x128xf32>
    %211 = tpu.matmul %209, %210, %cst_69 {dimension_numbers = #tpu.dot_dimension_numbers<[1], [0], [0], [1], [0, 0, 1, 1], [], []>} : vector<48x256xbf16>, vector<256x128xbf16>, vector<48x128xf32> -> vector<48x128xf32>
    %c7 = arith.constant 7 : index
    %c0_70 = arith.constant 0 : index
    %212 = vector.load %arg3[%c7, %c0_70] : memref<16x512xf32, #tpu.memory_space<vmem>>, vector<1x128xf32>
    %213 = vector.broadcast %212 : vector<1x128xf32> to vector<48x128xf32>
    %214 = arith.addf %211, %213 : vector<48x128xf32>
    %215 = arith.addf %167, %214 : vector<48x128xf32>
    %c8 = arith.constant 8 : index
    %c0_71 = arith.constant 0 : index
    %216 = vector.load %arg3[%c8, %c0_71] : memref<16x512xf32, #tpu.memory_space<vmem>>, vector<1x128xf32>
    %c9 = arith.constant 9 : index
    %c0_72 = arith.constant 0 : index
    %217 = vector.load %arg3[%c9, %c0_72] : memref<16x512xf32, #tpu.memory_space<vmem>>, vector<1x128xf32>
    %cst_73 = arith.constant dense<0.000000e+00> : vector<48xf32>
    %218 = vector.multi_reduction <add>, %215, %cst_73 [1] : vector<48x128xf32> to vector<48xf32>
    %219 = vector.shape_cast %218 : vector<48xf32> to vector<48x1xf32>
    %cst_74 = arith.constant 1.280000e+02 : f32
    %220 = vector.broadcast %cst_74 : f32 to vector<48x1xf32>
    %221 = arith.divf %219, %220 : vector<48x1xf32>
    %222 = vector.broadcast %221 : vector<48x1xf32> to vector<48x128xf32>
    %223 = arith.subf %215, %222 : vector<48x128xf32>
    %224 = arith.mulf %223, %223 : vector<48x128xf32>
    %cst_75 = arith.constant dense<0.000000e+00> : vector<48xf32>
    %225 = vector.multi_reduction <add>, %224, %cst_75 [1] : vector<48x128xf32> to vector<48xf32>
    %226 = vector.shape_cast %225 : vector<48xf32> to vector<48x1xf32>
    %cst_76 = arith.constant 1.280000e+02 : f32
    %227 = vector.broadcast %cst_76 : f32 to vector<48x1xf32>
    %228 = arith.divf %226, %227 : vector<48x1xf32>
    %cst_77 = arith.constant 9.99999997E-7 : f32
    %229 = vector.broadcast %cst_77 : f32 to vector<48x1xf32>
    %230 = arith.addf %228, %229 : vector<48x1xf32>
    %231 = math.rsqrt %230 : vector<48x1xf32>
    %232 = vector.broadcast %231 : vector<48x1xf32> to vector<48x128xf32>
    %233 = arith.mulf %223, %232 : vector<48x128xf32>
    %234 = vector.broadcast %216 : vector<1x128xf32> to vector<48x128xf32>
    %235 = arith.mulf %233, %234 : vector<48x128xf32>
    %236 = vector.broadcast %217 : vector<1x128xf32> to vector<48x128xf32>
    %237 = arith.addf %235, %236 : vector<48x128xf32>
    %238 = vector.shape_cast %237 : vector<48x128xf32> to vector<2x24x128xf32>
    %239 = vector.extract_strided_slice %238 {offsets = [0, 0, 0], sizes = [2, 1, 128], strides = [1, 1, 1]} : vector<2x24x128xf32> to vector<2x1x128xf32>
    %240 = vector.shape_cast %239 : vector<2x1x128xf32> to vector<2x128xf32>
    %c0_78 = arith.constant 0 : index
    %c0_79 = arith.constant 0 : index
    %241 = vector.load %arg9[%c0_78, %c0_79] : memref<128x512xbf16, #tpu.memory_space<vmem>>, vector<128x512xbf16>
    %242 = arith.extf %241 : vector<128x512xbf16> to vector<128x512xf32>
    %cst_80 = arith.constant dense<0.000000e+00> : vector<2x512xf32>
    %243 = tpu.matmul %240, %242, %cst_80 {dimension_numbers = #tpu.dot_dimension_numbers<[1], [0], [0], [1], [0, 0, 1, 1], [], []>} : vector<2x128xf32>, vector<128x512xf32>, vector<2x512xf32> -> vector<2x512xf32>
    %c10 = arith.constant 10 : index
    %c0_81 = arith.constant 0 : index
    %244 = vector.load %arg3[%c10, %c0_81] : memref<16x512xf32, #tpu.memory_space<vmem>>, vector<1x512xf32>
    %245 = vector.broadcast %244 : vector<1x512xf32> to vector<2x512xf32>
    %246 = arith.addf %243, %245 : vector<2x512xf32>
    %c0_82 = arith.constant 0 : index
    %c0_83 = arith.constant 0 : index
    %c0_84 = arith.constant 0 : index
    %247 = vector.load %arg10[%c0_82, %c0_83, %c0_84] : memref<1x2x512xf32, #tpu.memory_space<vmem>>, vector<1x2x512xf32>
    %248 = vector.shape_cast %247 : vector<1x2x512xf32> to vector<2x512xf32>
    %249 = vector.shape_cast %246 : vector<2x512xf32> to vector<1x2x512xf32>
    tpu.vector_store %arg10[%c0_82, %c0_83, %c0_84], %249 {strides = array<i32>} : memref<1x2x512xf32, #tpu.memory_space<vmem>>, vector<1x2x512xf32>,
    return
  }
  func.func @transform_0(%arg0: i32) -> (i32, i32) {
    %c0_i32 = arith.constant 0 : i32
    %c0_i32_0 = arith.constant 0 : i32
    return %arg0, %c0_i32 : i32, i32
  }
  func.func @transform_1(%arg0: i32) -> (i32, i32) {
    %c0_i32 = arith.constant 0 : i32
    %c0_i32_0 = arith.constant 0 : i32
    %c0_i32_1 = arith.constant 0 : i32
    return %c0_i32, %c0_i32_0 : i32, i32
  }
  func.func @transform_2(%arg0: i32) -> (i32, i32) {
    %c0_i32 = arith.constant 0 : i32
    %c0_i32_0 = arith.constant 0 : i32
    %c0_i32_1 = arith.constant 0 : i32
    return %c0_i32, %c0_i32_0 : i32, i32
  }
  func.func @transform_3(%arg0: i32) -> (i32, i32) {
    %c0_i32 = arith.constant 0 : i32
    %c0_i32_0 = arith.constant 0 : i32
    %c0_i32_1 = arith.constant 0 : i32
    return %c0_i32, %c0_i32_0 : i32, i32
  }
  func.func @transform_4(%arg0: i32) -> (i32, i32) {
    %c0_i32 = arith.constant 0 : i32
    %c0_i32_0 = arith.constant 0 : i32
    %c0_i32_1 = arith.constant 0 : i32
    return %c0_i32, %c0_i32_0 : i32, i32
  }
  func.func @transform_5(%arg0: i32) -> (i32, i32) {
    %c0_i32 = arith.constant 0 : i32
    %c0_i32_0 = arith.constant 0 : i32
    %c0_i32_1 = arith.constant 0 : i32
    return %c0_i32, %c0_i32_0 : i32, i32
  }
  func.func @transform_6(%arg0: i32) -> (i32, i32) {
    %c0_i32 = arith.constant 0 : i32
    %c0_i32_0 = arith.constant 0 : i32
    %c0_i32_1 = arith.constant 0 : i32
    return %c0_i32, %c0_i32_0 : i32, i32
  }
  func.func @transform_7(%arg0: i32) -> (i32, i32) {
    %c0_i32 = arith.constant 0 : i32
    %c0_i32_0 = arith.constant 0 : i32
    %c0_i32_1 = arith.constant 0 : i32
    return %c0_i32, %c0_i32_0 : i32, i32
  }
  func.func @transform_8(%arg0: i32) -> (i32, i32) {
    %c0_i32 = arith.constant 0 : i32
    %c0_i32_0 = arith.constant 0 : i32
    %c0_i32_1 = arith.constant 0 : i32
    return %c0_i32, %c0_i32_0 : i32, i32
  }
  func.func @transform_9(%arg0: i32) -> (i32, i32, i32) {
    %c0_i32 = arith.constant 0 : i32
    %c0_i32_0 = arith.constant 0 : i32
    %c0_i32_1 = arith.constant 0 : i32
    return %arg0, %c0_i32, %c0_i32_0 : i32, i32, i32
  }
}

</mosaic_0001>

<bundles_post_ra>
// kernel: tpu_custom_call.1
= control target key start
LH: loop header
LB: loop body
LE: loop exit
PB: predicated region body
PF: predicated region fallthrough
CT: control target
= control target key end

     0   :  { %6 = vsyncpa [#allocation3], 0  ;;  %s127_s0 = inlined_call_operand.hbm [shape: f32[8,128], index: 0, kind: input, shape index: {}]   ;;  %s128_s1 = inlined_call_operand.hbm [shape: f32[8,128], index: 1, kind: output, shape index: {}]  }
   0x1   :  { %7 = vsyncpa [#allocation4], 0  ;;  %s91_s6 = smov [#allocation2]   ;;  %s43_s10 = scalar_lea.hbm %s127_s0, 128 }
   0x2   :  { %s14_s7 = sshll.u32 %s91_s6, 4  ;;  %p44_p0 = scmp.ne.s32.totalorder %s127_s0, %s43_s10  ;;  %s15_s7 = int_to_ptr.vmem [resolvable:$true] %s14_s7 }
   0x3   :  { %p47_p1 = scmp.lt.u32.totalorder %s43_s10, %s127_s0 }
   0x5   :  { %p49_p2 = pnand %p47_p1, %p44_p0 }
   0x7   :  { %52 = shalt.err (!%p49_p2)
}
   0x8   :  { %s53_s15 = scalar_lea.vmem %s15_s7, 128  ;;  %p58_p4 = scmp.lt.s32.totalorder %s15_s7, %s15_s7 }
   0x9   :  { %p54_p3 = scmp.ne.s32.totalorder %s15_s7, %s53_s15  ;;  %p59_p5 = scmp.lt.s32.totalorder %s53_s15, %s53_s15 }
   0xb   :  { %p60_p6 = por %p59_p5, %p58_p4 }
   0xd   :  { %p61_p7 = pnand %p60_p6, %p54_p3 }
   0xf   :  { %64 = shalt.err (!%p61_p7)
}
  0x10   :  { %17 = dma.hbm_to_vmem [thread:$0]  %s127_s0, 128, %s15_s7, [#allocation3]  }
  0x11   :  { %87 = dma.done.wait [#allocation3], 128  }
  0x12   :  { %88 = vsyncadd [#allocation3], 4294967168  ;;  %v21_v0 = vld [vmem:[#allocation2] sm:$0xff]  ;;  %s92_s18 = smov [#allocation5]  }
  0x13   :  { %41 = verf.f32 %v21_v0  ;;  %s30_s19 = sshll.u32 %s92_s18, 4  ;;  %s31_s19 = int_to_ptr.vmem [resolvable:$true] %s30_s19 }
  0x14   :  { %s65_s20 = scalar_lea.vmem %s31_s19, 128  ;;  %p70_p9 = scmp.lt.s32.totalorder %s31_s19, %s31_s19 }
  0x15   :  { %p66_p8 = scmp.ne.s32.totalorder %s31_s19, %s65_s20  ;;  %p71_p10 = scmp.lt.s32.totalorder %s65_s20, %s65_s20 }
  0x17   :  { %p72_p11 = por %p71_p10, %p70_p9 }
  0x19   :  { %p73_p12 = pnand %p72_p11, %p66_p8 }
  0x1d   :  { %v42_v1 = vpop.eup %41 }
  0x1e   :  { %23 = vst [vmem:[#allocation5] sm:$0xff] %v42_v1 }
  0x1f   :  { %76 = shalt.err (!%p73_p12)
}
  0x20   :  { %s77_s0 = scalar_lea.hbm %s128_s1, 128 }
  0x21   :  { %p78_p13 = scmp.ne.s32.totalorder %s128_s1, %s77_s0  ;;  %p81_p0 = scmp.lt.u32.totalorder %s77_s0, %s128_s1 }
  0x23   :  { %p83_p1 = pnand %p81_p0, %p78_p13 }
  0x25   :  { %86 = shalt.err (!%p83_p1)
}
  0x26   :  { %33 = dma.vmem_to_hbm [thread:$0]  %s31_s19, 128, %s128_s1, [#allocation4]  }
  0x27   :  { %89 = dma.done.wait [#allocation4], 128  }
  0x28   :  { %90 = vsyncadd [#allocation4], 4294967168 }
  0x29   :  { %37 = vsyncpa [#allocation3], 1 }
  0x2a   :  { %38 = vsyncpa [#allocation4], 1 }

// kernel: tpu_custom_call.1
= control target key start
LH: loop header
LB: loop body
LE: loop exit
PB: predicated region body
PF: predicated region fallthrough
CT: control target
= control target key end

     0   :  { %s6432_s0 = inlined_call_operand.hbm [shape: bf16[96,256], index: 0, kind: input, shape index: {}]   ;;  %s6433_s1 = inlined_call_operand.hbm [shape: f32[48,128], index: 1, kind: input, shape index: {}]   ;;  %s6434_s2 = inlined_call_operand.hbm [shape: f32[16,512], index: 2, kind: input, shape index: {}]   ;;  %s6435_s3 = inlined_call_operand.hbm [shape: bf16[256,128], index: 3, kind: input, shape index: {}]   ;;  %s6436_s4 = inlined_call_operand.hbm [shape: bf16[128,384], index: 4, kind: input, shape index: {}]   ;;  %s6437_s5 = inlined_call_operand.hbm [shape: bf16[128,128], index: 5, kind: input, shape index: {}]   ;;  %s6438_s6 = inlined_call_operand.hbm [shape: bf16[128,256], index: 6, kind: input, shape index: {}]   ;;  %s6439_s7 = inlined_call_operand.hbm [shape: bf16[256,128], index: 7, kind: input, shape index: {}]   ;;  %s6440_s8 = inlined_call_operand.hbm [shape: bf16[128,512], index: 8, kind: input, shape index: {}]   ;;  %s6441_s9 = inlined_call_operand.hbm [shape: f32[2,2,512], index: 9, kind: output, shape index: {}]  }
   0x1   :  { %6450 = sst [smem:[#allocation24_spill]] %s6433_s1 }
   0x2   :  { %6451 = sst [smem:[#allocation25_spill]] %s6434_s2 }
   0x3   :  { %6452 = sst [smem:[#allocation26_spill]] %s6435_s3 }
   0x4   :  { %6453 = sst [smem:[#allocation27_spill]] %s6436_s4 }
   0x5   :  { %6454 = sst [smem:[#allocation28_spill]] %s6441_s9 }
   0x6   :  { %14 = vsyncpa [#allocation3], 0 }
   0x7   :  { %16 = vsyncpa [#allocation3 + $0x1], 0 }
   0x8   :  { %17 = vsyncpa [#allocation6], 0 }
   0x9   :  { %18 = vsyncpa [#allocation9], 0 }
   0xa   :  { %19 = vsyncpa [#allocation12], 0 }
   0xb   :  { %20 = vsyncpa [#allocation15], 0 }
   0xc   :  { %21 = vsyncpa [#allocation4], 0 }
   0xd   :  { %23 = vsyncpa [#allocation4 + $0x1], 0  ;;  %s5375_s30 = smov 0   ;;  %s5377_s10 = smov 0  }
   0xe   :  { %s5379_s11 = smov 0   ;;  %s5381_s12 = smov 0  }
   0xf LB: > { %s5298_s13 = smov [#allocation5]   ;;  %s5396_s15 = sadd.s32 4294967295, %s5296_s12   ;;  %s5296_s12 = sphi %s5381_s12, %s6485_s12   ;;  %s5292_s11 = sphi %s5379_s11, %s6484_s11   ;;  %s5288_s10 = sphi %s5377_s10, %s6483_s10   ;;  %s5284_s30 = sphi %s5375_s30, %s6482_s30  }
  0x10   : > { %s266_s14 = sshll.u32 %s5298_s13, 4  ;;  %p3849_p0 = scmp.ge.s32.totalorder %s5296_s12, 1  ;;  %s5401_s14 = int_to_ptr.vmem [resolvable:$true] %s266_s14 }
  0x11   : > { %p6445_p1 = scmp.eq.s32.totalorder %s5396_s15, 0  ;;  %p254_p2 = scmp.lt.s32.totalorder %s5296_s12, 3 }
  0x12   : > { %s5299_s17 = smov [#allocation8]   ;;  %s5300_s20 = smov [#allocation11]  }
  0x13   : > { %p5403_p3 = pnand %p3849_p0, %p254_p2  ;;  %s292_s18 = sshll.u32 %s5299_s17, 4  ;;  %s5416_s18 = int_to_ptr.vmem [resolvable:$true] %s292_s18 }
  0x14   : > { %s5418_s21 = sshll.u32 %s5300_s20, 4  ;;  %s6457_s1 = sld [smem:[#allocation24_spill]]  ;;  %s319_s21 = int_to_ptr.vmem [resolvable:$true] %s5418_s21 }
  0x15   : > { %s6455_s16 = scalar_select %p5403_p3, 1, 0 }
  0x16   : > { %p4551_p5 = pneg %p5403_p3 }
  0x18   : > { %p5412_p6 = pnand %p4551_p5, %p6445_p1 }
  0x1a   : > { %s4960_s24 = scalar_lea.hbm %s6457_s1, 768  ;;  %p5428_p8 = pneg %p5412_p6 }
  0x1b   : > { %p4961_p7 = scmp.ne.s32.totalorder %s6457_s1, %s4960_s24  ;;  %p4967_p11 = scmp.lt.u32.totalorder %s4960_s24, %s6457_s1 }
  0x1d   : > { %p4963_p9 = pnand %p5428_p8, %p4961_p7 }
  0x1f   : > { %p4964_p10 = pneg %p4963_p9 }
  0x21   : > { %p4969_p12 = pnand %p4967_p11, %p4964_p10 }
  0x23   : > { %4972 = shalt.err (!%p4969_p12)
}
  0x24   : > { %s4973_s13 = scalar_lea.vmem %s5401_s14, 768  ;;  %p4981_p5 = scmp.lt.s32.totalorder %s5401_s14, %s5401_s14 }
  0x25   : > { %p4974_p13 = scmp.ne.s32.totalorder %s5401_s14, %s4973_s13  ;;  %p4982_p4 = scmp.lt.s32.totalorder %s4973_s13, %s4973_s13 }
  0x27   : > { %p4976_p0 = pnand %p4974_p13, %p5428_p8  ;;  %p4983_p7 = por %p4982_p4, %p4981_p5 }
  0x29   : > { %p4977_p2 = pneg %p4976_p0 }
  0x2b   : > { %p4984_p9 = pnand %p4983_p7, %p4977_p2 }
  0x2d   : > { %4987 = shalt.err (!%p4984_p9)
}
  0x2e   : > { %s6443_s17 = smov 128   ;;  %s6447_s20 = smov 8  }
  0x2f   : > { %4554 = dma.hbm_to_vmem [thread:$0]  (!%p5412_p6), %s6457_s1, 768, %s5401_s14, [#allocation6], %s6443_s17, %s6443_s17, %s6447_s20  }
  0x30   : > { %s6459_s3 = sld [smem:[#allocation26_spill]] }
  0x36   : > { %s4988_s26 = scalar_lea.hbm %s6459_s3, 2048 }
  0x37   : > { %p4989_p4 = scmp.ne.s32.totalorder %s6459_s3, %s4988_s26  ;;  %p4995_p12 = scmp.lt.u32.totalorder %s4988_s26, %s6459_s3 }
  0x39   : > { %p4991_p10 = pnand %p4989_p4, %p5428_p8 }
  0x3b   : > { %p4992_p11 = pneg %p4991_p10 }
  0x3d   : > { %p4997_p13 = pnand %p4995_p12, %p4992_p11 }
  0x3f   : > { %5000 = shalt.err (!%p4997_p13)
}
  0x40   : > { %s5001_s14 = scalar_lea.vmem %s5416_s18, 2048  ;;  %p5009_p7 = scmp.lt.s32.totalorder %s5416_s18, %s5416_s18 }
  0x41   : > { %p5002_p0 = scmp.ne.s32.totalorder %s5416_s18, %s5001_s14  ;;  %p5010_p9 = scmp.lt.s32.totalorder %s5001_s14, %s5001_s14 }
  0x43   : > { %p5004_p2 = pnand %p5002_p0, %p5428_p8  ;;  %p5011_p4 = por %p5010_p9, %p5009_p7 }
  0x45   : > { %p5005_p5 = pneg %p5004_p2 }
  0x47   : > { %p5012_p10 = pnand %p5011_p4, %p5005_p5 }
  0x49   : > { %5015 = shalt.err (!%p5012_p10)
}
  0x4a   : > { %s5303_s22 = smov 64   ;;  %s5304_s9 = smov 4  }
  0x4b   : > { %4560 = dma.hbm_to_vmem [thread:$0]  (!%p5412_p6), %s6459_s3, 2048, %s5416_s18, [#allocation9], %s5303_s22, %s5303_s22, %s5304_s9  }
  0x4c   : > { %s5016_s28 = scalar_lea.hbm %s6437_s5, 1024 }
  0x4d   : > { %p5017_p11 = scmp.ne.s32.totalorder %s6437_s5, %s5016_s28  ;;  %p5023_p0 = scmp.lt.u32.totalorder %s5016_s28, %s6437_s5 }
  0x4f   : > { %p5019_p12 = pnand %p5017_p11, %p5428_p8 }
  0x51   : > { %p5020_p13 = pneg %p5019_p12 }
  0x53   : > { %p5025_p2 = pnand %p5023_p0, %p5020_p13 }
  0x55   : > { %5028 = shalt.err (!%p5025_p2)
}
  0x56   : > { %s5029_s23 = scalar_lea.vmem %s319_s21, 1024  ;;  %p5037_p4 = scmp.lt.s32.totalorder %s319_s21, %s319_s21 }
  0x57   : > { %p5030_p5 = scmp.ne.s32.totalorder %s319_s21, %s5029_s23  ;;  %p5038_p10 = scmp.lt.s32.totalorder %s5029_s23, %s5029_s23 }
  0x59   : > { %p5032_p7 = pnand %p5030_p5, %p5428_p8  ;;  %p5039_p1 = por %p5038_p10, %p5037_p4 }
  0x5b   : > { %p5033_p9 = pneg %p5032_p7 }
  0x5d   : > { %p5040_p3 = pnand %p5039_p1, %p5033_p9 }
  0x5f   : > { %5043 = shalt.err (!%p5040_p3)
}
  0x60   : > { %4566 = dma.hbm_to_vmem [thread:$0]  (!%p5412_p6), %s6437_s5, 1024, %s319_s21, [#allocation12], %s5303_s22, %s5303_s22, %s5304_s9  }
  0x61   : > { %s5305_s24 = smov [#allocation14]   ;;  %s5306_s26 = smov [#allocation7]  }
  0x62   : > { %s344_s25 = sshll.u32 %s5305_s24, 4  ;;  %s279_s28 = sshll.u32 %s5306_s26, 4  ;;  %s345_s25 = int_to_ptr.vmem [resolvable:$true] %s344_s25  ;;  %s280_s28 = int_to_ptr.vmem [resolvable:$true] %s279_s28 }
  0x63   : > { %s5044_s14 = scalar_lea.hbm %s6439_s7, 2048 }
  0x64   : > { %p5045_p1 = scmp.ne.s32.totalorder %s6439_s7, %s5044_s14  ;;  %p5051_p12 = scmp.lt.u32.totalorder %s5044_s14, %s6439_s7 }
  0x66   : > { %p5047_p3 = pnand %p5045_p1, %p5428_p8 }
  0x68   : > { %p5048_p11 = pneg %p5047_p3 }
  0x6a   : > { %p5053_p13 = pnand %p5051_p12, %p5048_p11 }
  0x6c   : > { %5056 = shalt.err (!%p5053_p13)
}
  0x6d   : > { %s5057_s21 = scalar_lea.vmem %s345_s25, 2048  ;;  %p5065_p7 = scmp.lt.s32.totalorder %s345_s25, %s345_s25 }
  0x6e   : > { %p5058_p0 = scmp.ne.s32.totalorder %s345_s25, %s5057_s21  ;;  %p5066_p9 = scmp.lt.s32.totalorder %s5057_s21, %s5057_s21 }
  0x70   : > { %p5060_p2 = pnand %p5058_p0, %p5428_p8  ;;  %p5067_p4 = por %p5066_p9, %p5065_p7 }
  0x72   : > { %p5061_p5 = pneg %p5060_p2 }
  0x74   : > { %p5068_p10 = pnand %p5067_p4, %p5061_p5 }
  0x76   : > { %5071 = shalt.err (!%p5068_p10)
}
  0x77   : > { %4572 = dma.hbm_to_vmem [thread:$0]  (!%p5412_p6), %s6439_s7, 2048, %s345_s25, [#allocation15], %s5303_s22, %s5303_s22, %s5304_s9  }
  0x78   : > { %s6460_s2 = sld [smem:[#allocation25_spill]] }
  0x7e   : > { %s5072_s26 = scalar_lea.hbm %s6460_s2, 1024 }
  0x7f   : > { %p5073_p1 = scmp.ne.s32.totalorder %s6460_s2, %s5072_s26  ;;  %p5079_p12 = scmp.lt.u32.totalorder %s5072_s26, %s6460_s2 }
  0x81   : > { %p5075_p3 = pnand %p5073_p1, %p5428_p8 }
  0x83   : > { %p5076_p11 = pneg %p5075_p3 }
  0x85   : > { %p5081_p13 = pnand %p5079_p12, %p5076_p11 }
  0x87   : > { %5084 = shalt.err (!%p5081_p13)
}
  0x88   : > { %s5085_s18 = scalar_lea.vmem %s280_s28, 1024  ;;  %p5093_p7 = scmp.lt.s32.totalorder %s280_s28, %s280_s28 }
  0x89   : > { %p5086_p0 = scmp.ne.s32.totalorder %s280_s28, %s5085_s18  ;;  %p5094_p9 = scmp.lt.s32.totalorder %s5085_s18, %s5085_s18 }
  0x8b   : > { %p5088_p2 = pnand %p5086_p0, %p5428_p8  ;;  %p5095_p4 = por %p5094_p9, %p5093_p7 }
  0x8d   : > { %p5089_p5 = pneg %p5088_p2 }
  0x8f   : > { %p5096_p10 = pnand %p5095_p4, %p5089_p5 }
  0x91   : > { %5099 = shalt.err (!%p5096_p10)
}
  0x92   : > { %s5307_s22 = smov 512   ;;  %s5308_s9 = smov 32  }
  0x93   : > { %4557 = dma.hbm_to_vmem [thread:$0]  (!%p5412_p6), %s6460_s2, 1024, %s280_s28, [#allocation6], %s5307_s22, %s5307_s22, %s5308_s9  }
  0x94   : > { %s5309_s1 = smov [#allocation10]   ;;  %s6461_s4 = sld [smem:[#allocation27_spill]] }
  0x95   : > { %s305_s20 = sshll.u32 %s5309_s1, 4  ;;  %s306_s20 = int_to_ptr.vmem [resolvable:$true] %s305_s20 }
  0x9a   : > { %s5100_s26 = scalar_lea.hbm %s6461_s4, 3072 }
  0x9b   : > { %p5101_p1 = scmp.ne.s32.totalorder %s6461_s4, %s5100_s26  ;;  %p5107_p12 = scmp.lt.u32.totalorder %s5100_s26, %s6461_s4 }
  0x9d   : > { %p5103_p3 = pnand %p5101_p1, %p5428_p8 }
  0x9f   : > { %p5104_p11 = pneg %p5103_p3 }
  0xa1   : > { %p5109_p13 = pnand %p5107_p12, %p5104_p11 }
  0xa3   : > { %5112 = shalt.err (!%p5109_p13)
}
  0xa4   : > { %s5113_s28 = scalar_lea.vmem %s306_s20, 3072  ;;  %p5121_p7 = scmp.lt.s32.totalorder %s306_s20, %s306_s20 }
  0xa5   : > { %p5114_p0 = scmp.ne.s32.totalorder %s306_s20, %s5113_s28  ;;  %p5122_p9 = scmp.lt.s32.totalorder %s5113_s28, %s5113_s28 }
  0xa7   : > { %p5116_p2 = pnand %p5114_p0, %p5428_p8  ;;  %p5123_p4 = por %p5122_p9, %p5121_p7 }
  0xa9   : > { %p5117_p5 = pneg %p5116_p2 }
  0xab   : > { %p5124_p10 = pnand %p5123_p4, %p5117_p5 }
  0xad   : > { %5127 = shalt.err (!%p5124_p10)
}
  0xae   : > { %s5310_s18 = smov 192   ;;  %s5311_s22 = smov 12  }
  0xaf   : > { %4563 = dma.hbm_to_vmem [thread:$0]  (!%p5412_p6), %s6461_s4, 3072, %s306_s20, [#allocation9], %s5310_s18, %s5310_s18, %s5311_s22  }
  0xb0   : > { %s5312_s21 = smov [#allocation13]   ;;  %s5313_s17 = smov [#allocation16]  }
  0xb1   : > { %s331_s1 = sshll.u32 %s5312_s21, 4  ;;  %s357_s24 = sshll.u32 %s5313_s17, 4  ;;  %s332_s1 = int_to_ptr.vmem [resolvable:$true] %s331_s1  ;;  %s5557_s24 = int_to_ptr.vmem [resolvable:$true] %s357_s24 }
  0xb2   : > { %s5128_s13 = scalar_lea.hbm %s6438_s6, 2048 }
  0xb3   : > { %p5129_p1 = scmp.ne.s32.totalorder %s6438_s6, %s5128_s13  ;;  %p5135_p12 = scmp.lt.u32.totalorder %s5128_s13, %s6438_s6 }
  0xb5   : > { %p5131_p3 = pnand %p5129_p1, %p5428_p8 }
  0xb7   : > { %p5132_p11 = pneg %p5131_p3 }
  0xb9   : > { %p5137_p13 = pnand %p5135_p12, %p5132_p11 }
  0xbb   : > { %5140 = shalt.err (!%p5137_p13)
}
  0xbc   : > { %s5141_s18 = scalar_lea.vmem %s332_s1, 2048  ;;  %p5149_p7 = scmp.lt.s32.totalorder %s332_s1, %s332_s1 }
  0xbd   : > { %p5142_p0 = scmp.ne.s32.totalorder %s332_s1, %s5141_s18  ;;  %p5150_p9 = scmp.lt.s32.totalorder %s5141_s18, %s5141_s18 }
  0xbf   : > { %p5144_p2 = pnand %p5142_p0, %p5428_p8  ;;  %p5151_p4 = por %p5150_p9, %p5149_p7 }
  0xc1   : > { %p5145_p5 = pneg %p5144_p2 }
  0xc3   : > { %p5152_p10 = pnand %p5151_p4, %p5145_p5 }
  0xc5   : > { %5155 = shalt.err (!%p5152_p10)
}
  0xc6   : > { %s6462_s22 = smov 8   ;;  %s6463_s9 = smov 128  }
  0xc7   : > { %4569 = dma.hbm_to_vmem [thread:$0]  (!%p5412_p6), %s6438_s6, 2048, %s332_s1, [#allocation12], %s6463_s9, %s6463_s9, %s6462_s22  }
  0xc8   : > { %s5156_s29 = scalar_lea.hbm %s6440_s8, 4096 }
  0xc9   : > { %p5157_p1 = scmp.ne.s32.totalorder %s6440_s8, %s5156_s29  ;;  %p5163_p12 = scmp.lt.u32.totalorder %s5156_s29, %s6440_s8 }
  0xcb   : > { %p5159_p3 = pnand %p5157_p1, %p5428_p8 }
  0xcd   : > { %p5160_p11 = pneg %p5159_p3 }
  0xcf   : > { %p5165_p13 = pnand %p5163_p12, %p5160_p11 }
  0xd1   : > { %5168 = shalt.err (!%p5165_p13)
}
  0xd2   : > { %s5169_s1 = scalar_lea.vmem %s5557_s24, 4096  ;;  %p5177_p7 = scmp.lt.s32.totalorder %s5557_s24, %s5557_s24 }
  0xd3   : > { %p5170_p0 = scmp.ne.s32.totalorder %s5557_s24, %s5169_s1  ;;  %p5178_p9 = scmp.lt.s32.totalorder %s5169_s1, %s5169_s1 }
  0xd5   : > { %p5172_p2 = pnand %p5170_p0, %p5428_p8  ;;  %p5179_p4 = por %p5178_p9, %p5177_p7 }
  0xd7   : > { %p5173_p5 = pneg %p5172_p2 }
  0xd9   : > { %p5180_p10 = pnand %p5179_p4, %p5173_p5 }
  0xdb   : > { %5183 = shalt.err (!%p5180_p10)
}
  0xdc   : > { %s5314_s20 = smov 256   ;;  %s5315_s27 = smov 16  }
  0xdd   : > { %4575 = dma.hbm_to_vmem [thread:$0]  (!%p5412_p6), %s6440_s8, 4096, %s5557_s24, [#allocation15], %s5314_s20, %s5314_s20, %s5315_s27  }
  0xde   : > { %s3848_s21 = sadd.s32 4294967294, %s5296_s12   ;;  %s5605_s17 = sadd.s32 1, %s5296_s12  }
  0xdf   : > { %s33_s26 = ssub.s32 %s5296_s12, %s5605_s17  ;;  %s36_s29 = sadd.s32 1, %s5292_s11 }
  0xe0   : > { %p34_p8 = scmp.eq.s32.totalorder %s33_s26, 0  ;;  %p43_p1 = scmp.ne.s32.totalorder %s5292_s11, %s5288_s10 }
  0xe1   : > { %p44_p3 = scmp.eq.s32.totalorder %s5296_s12, 0  ;;  %p49_p11 = scmp.ne.s32.totalorder %s5288_s10, %s5284_s30 }
  0xe2   : > { %s5616_s13 = scalar_select %p34_p8, %s5292_s11, %s36_s29  }
  0xe3   : > { %p45_p12 = por %p44_p3, %p43_p1  ;;  %p6464_p13 = scmp.eq.s32.totalorder %s5396_s15, 0 }
  0xe4   : > { %p241_p6 = scmp.eq.s32.totalorder %s5396_s15, 1  ;;  %p247_p2 = scmp.eq.s32.totalorder %s3848_s21, 1 }
  0xe5   : > { %p5620_p0 = por %p6464_p13, %p49_p11  ;;  %p4592_p5 = scmp.lt.s32.totalorder %s5296_s12, 2 }
  0xe6   : > { %s371_s24 = sand.u32 1, %s5292_s11   ;;  %p5627_p7 = por %p241_p6, %p43_p1 }
  0xe7   : > { %p5631_p9 = por %p247_p2, %p49_p11  ;;  %s4513_s28 = smul.u32 48, %s371_s24 }
  0xe8   : > { %s6466_s14 = scalar_select %p5627_p7, 1, 0 }
  0xe9   : > { %s6467_s23 = scalar_select %p5631_p9, 1, 0 }
  0xea   : > { %s4009_s1 = smul.u32 768, %s5296_s12  ;;  %p5636_p4 = pnand %p4592_p5, %p45_p12 }
  0xeb   : > { %s375_s21 = scalar_lea.vmem [#allocation2], %s4513_s28  ;;  %s5647_s29 = scalar_lea.sflag [#allocation3], %s371_s24 }
  0xec   : > { %s5643_s25 = scalar_lea.hbm %s6432_s0, %s4009_s1  ;;  %s383_s26 = sshll.u32 %s375_s21, 4  ;;  %s5645_s26 = int_to_ptr.vmem [resolvable:$true] %s383_s26 }
  0xed   : > { %s5184_s2 = scalar_lea.hbm %s5643_s25, 768  ;;  %p5186_p8 = pneg %p5636_p4 }
  0xee   : > { %p5185_p10 = scmp.ne.s32.totalorder %s5643_s25, %s5184_s2  ;;  %s5189_s18 = scalar_lea.hbm %s6432_s0, 1536 }
  0xef   : > { %p5190_p11 = scmp.lt.u32.totalorder %s5643_s25, %s6432_s0  ;;  %p5191_p12 = scmp.lt.u32.totalorder %s5189_s18, %s5184_s2 }
  0xf0   : > { %p5187_p1 = pnand %p5186_p8, %p5185_p10  ;;  %p5193_p6 = scmp.lt.u32.totalorder %s5184_s2, %s5643_s25 }
  0xf1   : > { %p5192_p13 = por %p5191_p12, %p5190_p11 }
  0xf2   : > { %p5188_p3 = pneg %p5187_p1 }
  0xf3   : > { %p5194_p2 = por %p5193_p6, %p5192_p13 }
  0xf5   : > { %p5195_p5 = pnand %p5194_p2, %p5188_p3 }
  0xf7   : > { %5198 = shalt.err (!%p5195_p5)
}
  0xf8   : > { %s5199_s24 = scalar_lea.vmem %s5645_s26, 768  ;;  %s5316_s28 = smov [#allocation2]  }
  0xf9   : > { %p5200_p10 = scmp.ne.s32.totalorder %s5645_s26, %s5199_s24  ;;  %s5204_s21 = sshll.u32 %s5316_s28, 4  ;;  %s5205_s21 = int_to_ptr.vmem [resolvable:$false] %s5204_s21 }
  0xfa   : > { %s5206_s3 = scalar_lea.vmem %s5205_s21, 1536  ;;  %p5207_p7 = scmp.lt.s32.totalorder %s5645_s26, %s5205_s21 }
  0xfb   : > { %p5202_p1 = pnand %p5200_p10, %p5186_p8  ;;  %p5208_p11 = scmp.lt.s32.totalorder %s5206_s3, %s5199_s24 }
  0xfd   : > { %p5203_p9 = pneg %p5202_p1  ;;  %p5209_p12 = por %p5208_p11, %p5207_p7 }
  0xff   : > { %p5210_p13 = pnand %p5209_p12, %p5203_p9 }
 0x101   : > { %5213 = shalt.err (!%p5210_p13)
}
 0x102   : > { %4579 = dma.hbm_to_vmem [thread:$0]  (!%p5636_p4), %s5643_s25, 768, %s5645_s26, %s5647_s29, %s6463_s9, %s6463_s9, %s6462_s22  }
 0x103   : > { %p6469_p8 = scmp.ne.s32.totalorder %s6455_s16, 0 }
 0x104   : > { %s5681_s2 = sand.u32 (!%p6469_p8), 1, %s5288_s10  }
 0x105   : > { %395 = sbr.rel (%p6469_p8) target bundleno = 5584 (0x15d0), region = 56  ;;  %s398_s1 = scalar_lea.sflag (!%p6469_p8), [#allocation3], %s5681_s2 }
 0x106   : > { %s4514_s4 = smul.u32 (!%p6469_p8), 48, %s5681_s2 }
 0x108   : > { %s5685_s27 = scalar_lea.vmem (!%p6469_p8), [#allocation2], %s4514_s4 }
 0x10c   : > { %5259 = dma.done.wait (%p5620_p0), %s398_s1, 768  }
 0x10d   : > { %5261 = vsyncadd (%p5620_p0), %s398_s1, 4294966528  ;;  %p6470_p7 = scmp.eq.s32.totalorder %s5396_s15, 0 }
 0x10f   : > { %5263 = dma.done.wait (%p6470_p7), [#allocation6], 1792   ;;  %p6471_p9 = pmov %p6470_p7 }
 0x110   : > { %p6472_p4 = pmov %p6470_p7 }
 0x111   : > { %5265 = vsyncadd (%p6471_p9), [#allocation6], 4294965504 }
 0x112   : > { %5267 = dma.done.wait (%p6472_p4), [#allocation9], 5120   ;;  %p6473_p3 = pmov %p6472_p4 }
 0x114   : > { %5269 = vsyncadd (%p6473_p3), [#allocation9], 4294962176  ;;  %p6474_p6 = pmov %p6473_p3 }
 0x115   : > { %p6475_p2 = pmov %p6473_p3 }
 0x116   : > { %5271 = dma.done.wait (%p6474_p6), [#allocation12], 3072  }
 0x117   : > { %5273 = vsyncadd (%p6475_p2), [#allocation12], 4294964224  ;;  %p6476_p0 = pmov %p6475_p2 }
 0x119   : > { %5275 = dma.done.wait (%p6476_p0), [#allocation15], 6144   ;;  %p6477_p5 = pmov %p6476_p0 }
 0x11a   : > { %v4659_v0 = vld [vmem:[#allocation8 + $0x40] sm:$0xff]   ;;  %v4661_v2 = vld [vmem:[#allocation8 + $0x48] sm:$0xff]   ;;  %v4663_v4 = vld [vmem:[#allocation8 + $0x50] sm:$0xff]   ;;  %v5317_v54 = vmov 0.0   ;;  %vm5319_vm0 = vmmov 0   ;;  %vm1094_vm1 = vcmask 261120  }
 0x11b   : > { %5277 = vsyncadd (%p6477_p5), [#allocation15], 4294961152  ;;  %v4660_v1 = vld [vmem:[#allocation8] sm:$0xff]   ;;  %4010 = vmatprep.subr.bf16.mxu0 %v4659_v0  ;;  %v4662_v3 = vld [vmem:[#allocation8 + $0x8] sm:$0xff]   ;;  %vm1304_vm2 = vcmask 1043456   ;;  %vm1227_vm4 = vcmask 195584  }
 0x11c   : > { %4011 = vmatpush3.bf16.msra.mxu0 %v4660_v1  ;;  %v4664_v5 = vld [vmem:[#allocation8 + $0x10] sm:$0xff]   ;;  %v4665_v6 = vld [vmem:[#allocation8 + $0x58] sm:$0xff]   ;;  %v4667_v8 = vld [vmem:[#allocation8 + $0x60] sm:$0xff]   ;;  %s5320_s16 = smov 96   ;;  %s5321_s22 = smov 64   ;;  %vm3519_vm5 = vcmask 1041409  }
 0x11d   : > { %4012 = vmatprep.subr.bf16.mxu0 %v4661_v2  ;;  %v4666_v7 = vld [vmem:[#allocation8 + $0x18] sm:$0xff]   ;;  %v4668_v9 = vld [vmem:[#allocation8 + $0x20] sm:$0xff]   ;;  %v4669_v10 = vld [vmem:[#allocation8 + $0x68] sm:$0xff]   ;;  %s5322_s9 = smov 32   ;;  %s3870_s19 = sshll.u32 %s5681_s2, 3 }
 0x11e   : > { %v4677_v11 = vld [vmem:[%s5685_s27 + $0x4] ss:$8 sps:$4 sm:$0xff]   ;;  %v4675_v17 = vld [vmem:[%s5685_s27] ss:$8 sps:$4 sm:$0xff]   ;;  %v4678_v18 = vld [vmem:[%s5685_s27 + $0x14] ss:$8 sps:$4 sm:$0xff]  }
 0x11f   : > { %v4670_v12 = vld [vmem:[#allocation8 + $0x28] sm:$0xff]   ;;  %v4671_v13 = vld [vmem:[#allocation8 + $0x70] sm:$0xff]   ;;  %672 = vmatprep.mubr.bf16.mxu0 %v4677_v11  ;;  %v4673_v15 = vld [vmem:[#allocation8 + $0x78] sm:$0xff]   ;;  %s4008_s20 = sshll.u32 %s5396_s15, 7  ;;  %s467_s25 = scalar_lea.vmem [#allocation17], %s3870_s19 }
 0x120   : > { %4013 = vmatpush3.bf16.msra.mxu0 %v4662_v3  ;;  %v4672_v14 = vld [vmem:[#allocation8 + $0x30] sm:$0xff]   ;;  %v4674_v16 = vld [vmem:[#allocation8 + $0x38] sm:$0xff]   ;;  %v510_v33 = vld [vmem:[#allocation5 + $0x10] sm:$0xff]  ;;  %s3702_s26 = sshll.u32 %s467_s25, 4  ;;  %s6478_s24 = sld [smem:[#allocation28_spill]]  ;;  %s6390_s26 = int_to_ptr.vmem [resolvable:$true] %s3702_s26 }
 0x121   : > { %4014 = vmatprep.subr.bf16.mxu0 %v4663_v4  ;;  %v4680_v19 = vld [vmem:[%s5685_s27 + $0x10] ss:$8 sps:$4 sm:$0xff]   ;;  %v4681_v20 = vld [vmem:[%s5685_s27 + $0x24] ss:$8 sps:$4 sm:$0xff]   ;;  %v4683_v21 = vld [vmem:[%s5685_s27 + $0x20] ss:$8 sps:$4 sm:$0xff]  }
 0x122   : > { %v508_v23 = vld [vmem:[#allocation5] sm:$0xff]  ;;  %v509_v30 = vld [vmem:[#allocation5 + $0x8] sm:$0xff]  ;;  %v511_v40 = vld [vmem:[#allocation5 + $0x18] sm:$0xff]  ;;  %s3688_s21 = scalar_lea.sflag [#allocation4], %s5681_s2  ;;  %s5214_s3 = scalar_lea.vmem %s6390_s26, 128 }
 0x123   : > { %v512_v43 = vld [vmem:[#allocation5 + $0x20] sm:$0xff]  ;;  %v513_v47 = vld [vmem:[#allocation5 + $0x28] sm:$0xff]  ;;  %v4686_v53 = vld [vmem:[#allocation10] ss:$12 sps:$4 sm:$0xff]   ;;  %p5215_p10 = scmp.ne.s32.totalorder %s6390_s26, %s5214_s3  ;;  %p6479_p1 = scmp.ne.s32.totalorder %s6466_s14, 0 }
 0x124   : > { %4015 = vmatpush3.bf16.msra.mxu0 %v4664_v5  ;;  %v4684_v52 = vld [vmem:[#allocation10 + $0x4] ss:$12 sps:$4 sm:$0xff]   ;;  %v4687_v55 = vld [vmem:[#allocation10 + $0x8] ss:$12 sps:$4 sm:$0xff]   ;;  %s5324_s15 = smov [#allocation17]  }
 0x125   : > { %4016 = vmatprep.subr.bf16.mxu0 %v4665_v6  ;;  %v4688_v56 = vld [vmem:[#allocation10 + $0x1c] ss:$12 sps:$4 sm:$0xff]   ;;  %959 = vmatprep.subr.bf16.mxu1 %v4684_v52  ;;  %p5216_p11 = pnand %p5215_p10, %p6479_p1  ;;  %s5218_s4 = sshll.u32 %s5324_s15, 4  ;;  %s5219_s4 = int_to_ptr.vmem [resolvable:$false] %s5218_s4 }
 0x126   : > { %960 = vmatpush1.bf16.msra.mxu1 %v4686_v53  ;;  %s6388_s28 = scalar_lea.hbm %s6478_s24, %s4008_s20  ;;  %s5220_s1 = scalar_lea.vmem %s5219_s4, 256 }
 0x127   : > { %961 = vmatprep.subr.bf16.mxu1 %v4688_v56  ;;  %p5217_p12 = pneg %p5216_p11  ;;  %p5221_p13 = scmp.lt.s32.totalorder %s6390_s26, %s5219_s4 }
 0x128   : > { %4017 = vmatpush3.bf16.msra.mxu0 %v4666_v7  ;;  %p5222_p8 = scmp.lt.s32.totalorder %s5220_s1, %s5214_s3 }
 0x129   : > { %4018 = vmatprep.subr.bf16.mxu0 %v4667_v8 }
 0x12a   : > { %p5223_p7 = por %p5222_p8, %p5221_p13 }
 0x12c   : > { %4019 = vmatpush3.bf16.msra.mxu0 %v4668_v9  ;;  %p5224_p9 = pnand %p5223_p7, %p5217_p12 }
 0x12d   : > { %4020 = vmatprep.subr.bf16.mxu0 %v4669_v10 }
 0x130   : > { %4021 = vmatpush3.bf16.msra.mxu0 %v4670_v12 }
 0x131   : > { %4022 = vmatprep.subr.bf16.mxu0 %v4671_v13 }
 0x134   : > { %4023 = vmatpush3.bf16.msra.mxu0 %v4672_v14  ;;  %v4690_v14 = vld [vmem:[#allocation10 + $0x18] ss:$12 sps:$4 sm:$0xff]  }
 0x135   : > { %4024 = vmatprep.subr.bf16.mxu0 %v4673_v15  ;;  %v4691_v15 = vld [vmem:[#allocation10 + $0x20] ss:$12 sps:$4 sm:$0xff]   ;;  %962 = vmatpush1.bf16.msra.mxu1 %v4690_v14 }
 0x138   : > { %4025 = vmatpush3.bf16.msra.mxu0 %v4674_v16 }
 0x139   : > { %4173 = vmatprep.subr.bf16.mxu0 %v5317_v54 }
 0x13b   : > { %673 = vmatmul.mubr.bf16.vlgmr.msra.gmra.mrb[0].mxu0 %v4675_v17 }
 0x13c   : > { %680 = vmatprep.mubr.bf16.mxu0 %v4678_v18  ;;  %4174 = vmatpush3.bf16.msra.mxu0 %v4687_v55  ;;  %v4692_v18 = vld [vmem:[#allocation10 + $0x34] ss:$12 sps:$4 sm:$0xff]  }
 0x13d   : > { %4175 = vmatprep.subr.bf16.mxu0 %v5317_v54  ;;  %963 = vmatprep.subr.bf16.mxu1 %v4692_v18 }
 0x140   : > { %4176 = vmatpush3.bf16.msra.mxu0 %v4691_v15 }
 0x141   : > { %4177 = vmatprep.subr.bf16.mxu0 %v5317_v54 }
 0x143   : > { %681 = vmatmul.mubr.bf16.gmra.mrb[4].mxu0 %v4680_v19 }
 0x144   : > { %688 = vmatprep.mubr.bf16.mxu0 %v4681_v20  ;;  %v4694_v20 = vld [vmem:[#allocation10 + $0x30] ss:$12 sps:$4 sm:$0xff]  }
 0x145   : > { %964 = vmatpush1.bf16.msra.mxu1 %v4694_v20 }
 0x14b   : > { %689 = vmatmul.mubr.bf16.gmra.mrb[8].mxu0 %v4683_v21  ;;  %v4695_v21 = vld [vmem:[#allocation10 + $0x38] ss:$12 sps:$4 sm:$0xff]  }
 0x14c   : > { %4178 = vmatpush3.bf16.msra.mxu0 %v4695_v21  ;;  %4189 = vmatprep.mubr.msk.bf16.mxu0 %vm5319_vm0, %v5317_v54 }
 0x14d   : > { %4179 = vmatprep.subr.bf16.mxu0 %v5317_v54 }
 0x20e   : > { %v4026_v22 = vpop.f32.mrb[0].mxu0 }
 0x20f   : > { %v4027_v24 = vpop.f32.mrb[1].mxu0 }
 0x210   : > { %v4028_v25 = vadd.f32 %v4027_v24, %v4026_v22  ;;  %v4029_v26 = vpop.f32.mrb[2].mxu0  ;;  %v4696_v22 = vld [vmem:[#allocation10 + $0x4c] ss:$12 sps:$4 sm:$0xff]   ;;  %v4699_v24 = vld [vmem:[#allocation10 + $0x50] ss:$12 sps:$4 sm:$0xff]  }
 0x211   : > { %v4030_v27 = vpop.f32.mrb[3].mxu0  ;;  %965 = vmatprep.subr.bf16.mxu1 %v4696_v22  ;;  %4180 = vmatpush3.bf16.msra.mxu0 %v4699_v24 }
 0x212   : > { %v5713_v28 = vadd.f32 %v4028_v25, %v508_v23  ;;  %v4031_v29 = vadd.f32 %v4030_v27, %v4029_v26  ;;  %v4698_v23 = vld [vmem:[#allocation10 + $0x48] ss:$12 sps:$4 sm:$0xff]   ;;  %v4700_v25 = vld [vmem:[#allocation10 + $0x64] ss:$12 sps:$4 sm:$0xff]   ;;  %4181 = vmatprep.subr.bf16.mxu0 %v5317_v54  ;;  %v4702_v26 = vld [vmem:[#allocation10 + $0x60] ss:$12 sps:$4 sm:$0xff]  }
 0x213   : > { %966 = vmatpush1.bf16.msra.mxu1 %v4698_v23  ;;  %v4703_v27 = vld [vmem:[#allocation10 + $0x68] ss:$12 sps:$4 sm:$0xff]  }
 0x214   : > { %699 = vadd.xlane.f32.xlu0 %v5713_v28  ;;  %v5716_v31 = vadd.f32 %v4031_v29, %v509_v30  ;;  %967 = vmatprep.subr.bf16.mxu1 %v4700_v25  ;;  %v4704_v29 = vld [vmem:[#allocation10 + $0x7c] ss:$12 sps:$4 sm:$0xff]   ;;  %v4706_v30 = vld [vmem:[#allocation10 + $0x78] ss:$12 sps:$4 sm:$0xff]  }
 0x215   : > { %4182 = vmatpush3.bf16.msra.mxu0 %v4703_v27 }
 0x216   : > { %v4032_v32 = vpop.f32.mrb[4].mxu0  ;;  %4183 = vmatprep.subr.bf16.mxu0 %v5317_v54 }
 0x217   : > { %v4033_v34 = vpop.f32.mrb[5].mxu0  ;;  %968 = vmatpush1.bf16.msra.mxu1 %v4702_v26 }
 0x218   : > { %v4034_v35 = vadd.f32 %v4033_v34, %v4032_v32  ;;  %701 = vadd.xlane.f32.xlu0 %v5716_v31  ;;  %v4035_v36 = vpop.f32.mrb[6].mxu0  ;;  %v4707_v32 = vld [vmem:[#allocation10 + $0x80] ss:$12 sps:$4 sm:$0xff]   ;;  %969 = vmatprep.subr.bf16.mxu1 %v4704_v29  ;;  %v4710_v34 = vld [vmem:[#allocation10 + $0x90] ss:$12 sps:$4 sm:$0xff]  }
 0x219   : > { %v4036_v37 = vpop.f32.mrb[7].mxu0  ;;  %4184 = vmatpush3.bf16.msra.mxu0 %v4707_v32  ;;  %v816_v32 = vlaneseq }
 0x21a   : > { %v5719_v38 = vadd.f32 %v4034_v35, %v510_v33  ;;  %v4037_v39 = vadd.f32 %v4036_v37, %v4035_v36  ;;  %v4708_v33 = vld [vmem:[#allocation10 + $0x94] ss:$12 sps:$4 sm:$0xff]   ;;  %4185 = vmatprep.subr.bf16.mxu0 %v5317_v54  ;;  %v4711_v35 = vld [vmem:[#allocation10 + $0x98] ss:$12 sps:$4 sm:$0xff]  }
 0x21b   : > { %970 = vmatpush1.bf16.msra.mxu1 %v4706_v30  ;;  %v4712_v36 = vld [vmem:[#allocation10 + $0xac] ss:$12 sps:$4 sm:$0xff]   ;;  %v4714_v37 = vld [vmem:[#allocation10 + $0xa8] ss:$12 sps:$4 sm:$0xff]  }
 0x21c   : > { %703 = vadd.xlane.f32.xlu1 %v5719_v38  ;;  %v5722_v41 = vadd.f32 %v4037_v39, %v511_v40  ;;  %971 = vmatprep.subr.bf16.mxu1 %v4708_v33  ;;  %v4715_v39 = vld [vmem:[#allocation10 + $0xb0] ss:$12 sps:$4 sm:$0xff]   ;;  %v5318_v40 = vmov 0  }
 0x21d   : > { %4186 = vmatpush3.bf16.msra.mxu0 %v4711_v35  ;;  %991 = vmatprep.mubr.bf16.mxu1 %v5318_v40 }
 0x21e   : > { %v4038_v42 = vpop.f32.mrb[8].mxu0  ;;  %4187 = vmatprep.subr.bf16.mxu0 %v5317_v54 }
 0x21f   : > { %v4039_v44 = vpop.f32.mrb[9].mxu0  ;;  %972 = vmatpush1.bf16.msra.mxu1 %v4710_v34  ;;  %v814_v34 = vld [vmem:[#allocation7 + $0x2] ss:$8 sm:$0x7] }
 0x220   : > { %v4040_v45 = vadd.f32 %v4039_v44, %v4038_v42  ;;  %v4041_v46 = vpop.f32.mrb[10].mxu0  ;;  %705 = vadd.xlane.f32.xlu1 %v5722_v41  ;;  %973 = vmatprep.subr.bf16.mxu1 %v4712_v36 }
 0x221   : > { %v4042_v48 = vpop.f32.mrb[11].mxu0  ;;  %4188 = vmatpush3.bf16.msra.mxu0 %v4715_v39 }
 0x222   : > { %v5725_v49 = vadd.f32 %v4040_v45, %v512_v43  ;;  %v4043_v50 = vadd.f32 %v4042_v48, %v4041_v46 }
 0x223   : > { %974 = vmatpush1.bf16.msra.mxu1 %v4714_v37 }
 0x224   : > { %v5727_v51 = vadd.f32 %v4043_v50, %v513_v47  ;;  %707 = vadd.xlane.f32.xlu0 %v5725_v49 }
 0x226   : > { %709 = vadd.xlane.f32.xlu1 %v5727_v51 }
 0x2a1   : > { %v700_v57 = vpop.xlane.xlu0 %699 }
 0x2a2   : > { %v712_v58 = vmul.f32 0.0078125, %v700_v57 }
 0x2a4   : > { %v5734_v59 = vsub.f32 %v5713_v28, %v712_v58 }
 0x2a5   : > { %v702_v60 = vpop.xlane.xlu0 %701 }
 0x2a6   : > { %v713_v61 = vmul.f32 0.0078125, %v702_v60  ;;  %v724_v62 = vmul.f32 %v5734_v59, %v5734_v59 }
 0x2a8   : > { %730 = vadd.xlane.f32.xlu0 %v724_v62  ;;  %v5739_v63 = vsub.f32 %v5716_v31, %v713_v61  ;;  %v697_v62 = vld [vmem:[#allocation7] ss:$0 sm:$0xff] }
 0x2a9   : > { %v704_v0 = vpop.xlane.xlu1 %703 }
 0x2aa   : > { %v714_v1 = vmul.f32 0.0078125, %v704_v0  ;;  %v725_v2 = vmul.f32 %v5739_v63, %v5739_v63 }
 0x2ac   : > { %732 = vadd.xlane.f32.xlu1 %v725_v2  ;;  %v5744_v3 = vsub.f32 %v5719_v38, %v714_v1 }
 0x2ad   : > { %v706_v4 = vpop.xlane.xlu1 %705 }
 0x2ae   : > { %v715_v5 = vmul.f32 0.0078125, %v706_v4  ;;  %v726_v6 = vmul.f32 %v5744_v3, %v5744_v3 }
 0x2b0   : > { %734 = vadd.xlane.f32.xlu0 %v726_v6  ;;  %v5749_v7 = vsub.f32 %v5722_v41, %v715_v5 }
 0x2b1   : > { %v708_v8 = vpop.xlane.xlu0 %707 }
 0x2b2   : > { %v716_v9 = vmul.f32 0.0078125, %v708_v8  ;;  %v727_v10 = vmul.f32 %v5749_v7, %v5749_v7 }
 0x2b3   : > { %v710_v11 = vpop.xlane.xlu1 %709 }
 0x2b4   : > { %v717_v12 = vmul.f32 0.0078125, %v710_v11  ;;  %736 = vadd.xlane.f32.xlu1 %v727_v10  ;;  %v5754_v13 = vsub.f32 %v5725_v49, %v716_v9  ;;  %v698_v9 = vld [vmem:[#allocation7 + $0x1] ss:$0 sm:$0xff] }
 0x2b6   : > { %v728_v16 = vmul.f32 %v5754_v13, %v5754_v13  ;;  %v5759_v17 = vsub.f32 %v5727_v51, %v717_v12 }
 0x2b8   : > { %738 = vadd.xlane.f32.xlu0 %v728_v16  ;;  %v729_v19 = vmul.f32 %v5759_v17, %v5759_v17 }
 0x2ba   : > { %740 = vadd.xlane.f32.xlu1 %v729_v19 }
 0x335   : > { %v731_v42 = vpop.xlane.xlu0 %730 }
 0x336   : > { %v742_v43 = vmul.f32 0.0078125, %v731_v42 }
 0x338   : > { %v748_v44 = vadd.f32 1e-06, %v742_v43 }
 0x339   : > { %v733_v45 = vpop.xlane.xlu1 %732 }
 0x33a   : > { %4812 = vrsqrt.f32 %v748_v44  ;;  %v743_v46 = vmul.f32 0.0078125, %v733_v45 }
 0x33c   : > { %v749_v47 = vadd.f32 1e-06, %v743_v46 }
 0x33d   : > { %v735_v48 = vpop.xlane.xlu0 %734 }
 0x33e   : > { %4814 = vrsqrt.f32 %v749_v47  ;;  %v744_v50 = vmul.f32 0.0078125, %v735_v48 }
 0x340   : > { %v750_v52 = vadd.f32 1e-06, %v744_v50 }
 0x341   : > { %v737_v53 = vpop.xlane.xlu1 %736 }
 0x342   : > { %4816 = vrsqrt.f32 %v750_v52  ;;  %v745_v55 = vmul.f32 0.0078125, %v737_v53 }
 0x344   : > { %v4813_v56 = vpop.eup %4812  ;;  %v751_v57 = vadd.f32 1e-06, %v745_v55 }
 0x345   : > { %v739_v58 = vpop.xlane.xlu0 %738  ;;  %v760_v60 = vmul.f32 %v4813_v56, %v5734_v59 }
 0x346   : > { %4818 = vrsqrt.f32 %v751_v57  ;;  %v746_v61 = vmul.f32 0.0078125, %v739_v58 }
 0x347   : > { %v741_v0 = vpop.xlane.xlu1 %740  ;;  %v766_v6 = vmul.f32 %v760_v60, %v697_v62 }
 0x348   : > { %v4815_v1 = vpop.eup %4814  ;;  %v752_v2 = vadd.f32 1e-06, %v746_v61  ;;  %v747_v4 = vmul.f32 0.0078125, %v741_v0 }
 0x349   : > { %v761_v5 = vmul.f32 %v4815_v1, %v5739_v63  ;;  %v772_v12 = vadd.f32 %v766_v6, %v698_v9 }
 0x34a   : > { %4820 = vrsqrt.f32 %v752_v2  ;;  %v753_v8 = vadd.f32 1e-06, %v747_v4 }
 0x34b   : > { %v767_v10 = vmul.f32 %v761_v5, %v697_v62 }
 0x34c   : > { %v4817_v11 = vpop.eup %4816  ;;  %4822 = vrsqrt.f32 %v753_v8 }
 0x34d   : > { %v773_v14 = vadd.f32 %v767_v10, %v698_v9  ;;  %v762_v59 = vmul.f32 %v4817_v11, %v5744_v3 }
 0x34f   : > { %v778_v15 = vpack.c.bf16 %v773_v14, %v772_v12  ;;  %v768_v19 = vmul.f32 %v762_v59, %v697_v62 }
 0x350   : > { %v4819_v16 = vpop.eup %4818 }
 0x351   : > { %992 = vmatmul.mubr.bf16.vlgmr.msra.gmra.mrb[0].mxu1 %v778_v15  ;;  %4190 = vmatmul.mubr.bf16.vlgmr.msra.gmra.mrb[12].mxu0 %v778_v15  ;;  %v763_v18 = vmul.f32 %v4819_v16, %v5749_v7  ;;  %v774_v21 = vadd.f32 %v768_v19, %v698_v9 }
 0x352   : > { %1001 = vmatprep.mubr.bf16.mxu1 %v5318_v40  ;;  %4193 = vmatprep.mubr.msk.bf16.mxu0 %vm5319_vm0, %v5317_v54 }
 0x353   : > { %v769_v63 = vmul.f32 %v763_v18, %v697_v62 }
 0x354   : > { %v4821_v20 = vpop.eup %4820 }
 0x355   : > { %v775_v22 = vadd.f32 %v769_v63, %v698_v9  ;;  %v764_v23 = vmul.f32 %v4821_v20, %v5754_v13  ;;  %v5785_v13 = vshrl.u32 %v816_v32, 7 }
 0x356   : > { %v4823_v24 = vpop.eup %4822 }
 0x357   : > { %v779_v3 = vpack.c.bf16 %v775_v22, %v774_v21  ;;  %v765_v25 = vmul.f32 %v4823_v24, %v5759_v17  ;;  %v770_v26 = vmul.f32 %v764_v23, %v697_v62  ;;  %v5788_v17 = vsub.s32 0, %v5785_v13 }
 0x358   : > { %v826_v33 = vsub.s32 2, %v5785_v13  ;;  %v5792_v35 = vsub.s32 1, %v5785_v13 }
 0x359   : > { %1002 = vmatmul.mubr.bf16.gmra.mrb[4].mxu1 %v779_v3  ;;  %4194 = vmatmul.mubr.bf16.gmra.mrb[16].mxu0 %v779_v3  ;;  %v771_v7 = vmul.f32 %v765_v25, %v697_v62  ;;  %v776_v29 = vadd.f32 %v770_v26, %v698_v9  ;;  %v5795_v36 = vrot.slane %v814_v34, %v5788_v17 }
 0x35a   : > { %1011 = vmatprep.mubr.bf16.mxu1 %v5318_v40  ;;  %4197 = vmatprep.mubr.msk.bf16.mxu0 %vm5319_vm0, %v5317_v54  ;;  %v5799_v37 = vrot.slane %v814_v34, %v826_v33  ;;  %v823_v43 = vrot.slane %v814_v34, %v5792_v35 }
 0x35b   : > { %v777_v27 = vadd.f32 %v771_v7, %v698_v9 }
 0x35d   : > { %v780_v30 = vpack.c.bf16 %v777_v27, %v776_v29 }
 0x361   : > { %1012 = vmatmul.mubr.bf16.gmra.mrb[8].mxu1 %v780_v30  ;;  %4198 = vmatmul.mubr.bf16.gmra.mrb[20].mxu0 %v780_v30 }
 0x424   : > { %v993_v39 = vpop.f32.mrb[0].mxu1  ;;  %v1056_v42 = vpop.f32.mrb[12].mxu0 }
 0x425   : > { %v995_v44 = vpop.f32.mrb[1].mxu1  ;;  %v4191_v45 = vpop.f32.mrb[13].mxu0  ;;  %v994_v48 = vadd.f32 %v993_v39, %v5795_v36  ;;  %v1057_v50 = vadd.f32 %v1056_v42, %v5799_v37 }
 0x426   : > { %v997_v46 = vpop.f32.mrb[2].mxu1  ;;  %v1059_v47 = vpop.f32.mrb[14].mxu0  ;;  %v996_v57 = vadd.f32 %v995_v44, %v823_v43 }
 0x427   : > { %v998_v52 = vadd.f32 %v997_v46, %v5795_v36  ;;  %v1060_v53 = vadd.f32 %v1059_v47, %v5799_v37  ;;  %v999_v55 = vpop.f32.mrb[3].mxu1  ;;  %v4192_v56 = vpop.f32.mrb[15].mxu0 }
 0x428   : > { %v1000_v58 = vadd.f32 %v999_v55, %v823_v43 }
 0x429   : > { %v5806_v60 = vpack.c.bf16 %v998_v52, %v994_v48  ;;  %v5808_v61 = vpack.c.bf16 %v1060_v53, %v1057_v50 }
 0x42a   : > { %v5810_v62 = vpack.c.bf16 %v1000_v58, %v996_v57 }
 0x42b   : > { %4205 = vmatprep.mubr.msk.bf16.mxu1 %vm1094_vm1, %v5806_v60 }
 0x42c   : > { %v1003_v0 = vpop.f32.mrb[4].mxu1  ;;  %v1064_v1 = vpop.f32.mrb[16].mxu0  ;;  %4457 = vmatprep.subr.msk.bf16.mxu1 %vm1094_vm1, %v5810_v62  ;;  %v1102_v2 = vsel %vm1094_vm1, %v5810_v62, 0 }
 0x42d   : > { %v1005_v4 = vpop.f32.mrb[5].mxu1  ;;  %v4195_v5 = vpop.f32.mrb[17].mxu0  ;;  %4202 = vmatpush3.bf16.xpose.msra.mxu1 %v1102_v2  ;;  %v1004_v22 = vadd.f32 %v1003_v0, %v5795_v36  ;;  %v1065_v50 = vadd.f32 %v1064_v1, %v5799_v37 }
 0x42e   : > { %v1006_v6 = vadd.f32 %v1005_v4, %v823_v43  ;;  %v1007_v8 = vpop.f32.mrb[6].mxu1  ;;  %v1067_v9 = vpop.f32.mrb[18].mxu0 }
 0x42f   : > { %v1009_v10 = vpop.f32.mrb[7].mxu1  ;;  %v4196_v11 = vpop.f32.mrb[19].mxu0  ;;  %v1008_v16 = vadd.f32 %v1007_v8, %v5795_v36  ;;  %v1068_v18 = vadd.f32 %v1067_v9, %v5799_v37  ;;  %v5839_v44 = vpack.c.bf16 %v1004_v22, %v1004_v22  ;;  %v5865_v53 = vpack.c.bf16 %v1065_v50, %v1065_v50 }
 0x430   : > { %v5818_v12 = vpack.c.bf16 %v1006_v6, %v1006_v6  ;;  %v1010_v23 = vadd.f32 %v1009_v10, %v823_v43 }
 0x431   : > { %v1306_v55 = vsel %vm1304_vm2, %v5865_v53, 0 }
 0x432   : > { %4458 = vmatprep.subr.msk.bf16.mxu1 %vm1094_vm1, %v5818_v12  ;;  %v1105_v15 = vsel %vm1094_vm1, %v5818_v12, 0 }
 0x434   : > { %v1013_v14 = vpop.f32.mrb[8].mxu1  ;;  %v1072_v59 = vpop.f32.mrb[20].mxu0 }
 0x435   : > { %v1014_v19 = vadd.f32 %v1013_v14, %v5795_v36  ;;  %v1073_v63 = vadd.f32 %v1072_v59, %v5799_v37  ;;  %v1015_v20 = vpop.f32.mrb[9].mxu1  ;;  %v4199_v21 = vpop.f32.mrb[21].mxu0  ;;  %4204 = vmatpush3.bf16.xpose.msra.mxu1 %v1105_v15 }
 0x436   : > { %v1016_v24 = vadd.f32 %v1015_v20, %v823_v43  ;;  %v1017_v3 = vpop.f32.mrb[10].mxu1  ;;  %v1075_v25 = vpop.f32.mrb[22].mxu0 }
 0x437   : > { %v5829_v26 = vpack.c.bf16 %v1014_v19, %v1008_v16  ;;  %v5831_v7 = vpack.c.bf16 %v1073_v63, %v1068_v18  ;;  %v1076_v27 = vadd.f32 %v1075_v25, %v5799_v37  ;;  %v1019_v29 = vpop.f32.mrb[11].mxu1  ;;  %v4200_v30 = vpop.f32.mrb[23].mxu0  ;;  %v1018_v48 = vadd.f32 %v1017_v3, %v5795_v36 }
 0x438   : > { %v5834_v34 = vpack.c.bf16 %v1016_v24, %v1010_v23  ;;  %v1020_v39 = vadd.f32 %v1019_v29, %v823_v43  ;;  %v5875_v36 = vand.u32 127, %v816_v32 }
 0x439   : > { %v5836_v42 = vpack.c.bf16 %v1076_v27, %v1076_v27  ;;  %4225 = vmatprep.subr.bf16.mxu0 %v5831_v7  ;;  %v5863_v52 = vpack.c.bf16 %v1018_v48, %v1018_v48 }
 0x43a   : > { %4459 = vmatprep.subr.msk.bf16.mxu1 %vm1094_vm1, %v5834_v34  ;;  %4226 = vmatpush3.bf16.msra.mxu0 %v5831_v7  ;;  %v5846_v45 = vpack.c.bf16 %v1020_v39, %v1020_v39  ;;  %v1162_v43 = vsel %vm1094_vm1, %v5834_v34, 0  ;;  %vm1081_vm3 = vcmp.lt.s32.totalorder %v5875_v36, 17 }
 0x43b   : > { %4462 = vmatprep.subr.msk.bf16.mxu0 %vm1304_vm2, %v5836_v42  ;;  %v1363_v46 = vsel %vm1304_vm2, %v5836_v42, 0 }
 0x43c   : > { %4206 = vmatmul.mubr.msk.bf16.vlgmr.msra.gmra.mrb[12].mxu1 %vm1094_vm1, %v5839_v44  ;;  %v1165_v47 = vsel %vm1094_vm1, %v5846_v45, 0 }
 0x43d   : > { %4210 = vmatpush3.bf16.xpose.msra.mxu1 %v1162_v43  ;;  %4213 = vmatprep.mubr.msk.bf16.mxu1 %vm1094_vm1, %v5829_v26 }
 0x43e   : > { %4460 = vmatprep.subr.msk.bf16.mxu1 %vm1094_vm1, %v5846_v45  ;;  %4228 = vmatpush3.bf16.msra.mxu0 %v1363_v46 }
 0x445   : > { %4212 = vmatpush3.bf16.xpose.msra.mxu1 %v1165_v47 }
 0x446   : > { %4217 = vmatprep.subr.bf16.mxu1 %v5808_v61 }
 0x44c   : > { %4214 = vmatmul.mubr.msk.bf16.vlgmr.msra.gmra.mrb[16].mxu1 %vm1094_vm1, %v5863_v52 }
 0x44d   : > { %4218 = vmatpush3.bf16.msra.mxu1 %v5808_v61 }
 0x44e   : > { %4461 = vmatprep.subr.msk.bf16.mxu1 %vm1304_vm2, %v5865_v53 }
 0x451   : > { %4220 = vmatpush3.bf16.msra.mxu1 %v1306_v55 }
 0x50f   : > { %v4207_v37 = vpop.f32.mrb[12].mxu1 }
 0x510   : > { %v1141_v56 = vpop.f32.mrb[13].mxu1  ;;  %v1217_v57 = vmul.f32 0.17677669, %v4207_v37 }
 0x511   : > { %v1215_v58 = vmul.f32 0.17677669, %v1141_v56  ;;  %v4208_v0 = vpop.f32.mrb[14].mxu1 }
 0x512   : > { %v1144_v1 = vpop.f32.mrb[15].mxu1  ;;  %v1223_v6 = vsel %vm1081_vm3, %v1217_v57, -1e+30 }
 0x513   : > { %v1216_v2 = vmul.f32 0.17677669, %v1144_v1  ;;  %v1221_v4 = vsel %vm1081_vm3, %v1215_v58, -1e+30  ;;  %v1234_v9 = vsel %vm1227_vm4, %v1223_v6, -inf }
 0x514   : > { %v1228_v5 = vsel %vm1227_vm4, %v1221_v4, -inf }
 0x515   : > { %1229 = vmax.xlane.f32.xlu0 %v1228_v5  ;;  %v1222_v32 = vsel %vm1081_vm3, %v1216_v2, -1e+30 }
 0x516   : > { %v1231_v8 = vsel %vm1227_vm4, %v1222_v32, -inf }
 0x517   : > { %1232 = vmax.xlane.f32.xlu1 %v1231_v8 }
 0x519   : > { %1235 = vmax.xlane.f32.xlu0 %v1234_v9 }
 0x51f   : > { %v4215_v10 = vpop.f32.mrb[16].mxu1 }
 0x520   : > { %v1201_v11 = vpop.f32.mrb[17].mxu1  ;;  %v1220_v14 = vmul.f32 0.17677669, %v4215_v10 }
 0x521   : > { %v1218_v59 = vmul.f32 0.17677669, %v1201_v11  ;;  %v4216_v15 = vpop.f32.mrb[18].mxu1 }
 0x522   : > { %v1204_v16 = vpop.f32.mrb[19].mxu1  ;;  %v1226_v21 = vsel %vm1081_vm3, %v1220_v14, -1e+30 }
 0x523   : > { %v1219_v18 = vmul.f32 0.17677669, %v1204_v16  ;;  %v1224_v19 = vsel %vm1081_vm3, %v1218_v59, -1e+30  ;;  %v1243_v23 = vsel %vm1227_vm4, %v1226_v21, -inf }
 0x524   : > { %v1237_v63 = vsel %vm1227_vm4, %v1224_v19, -inf }
 0x525   : > { %1238 = vmax.xlane.f32.xlu1 %v1237_v63  ;;  %v1225_v20 = vsel %vm1081_vm3, %v1219_v18, -1e+30 }
 0x526   : > { %v1240_v22 = vsel %vm1227_vm4, %v1225_v20, -inf }
 0x527   : > { %1241 = vmax.xlane.f32.xlu0 %v1240_v22 }
 0x529   : > { %1244 = vmax.xlane.f32.xlu1 %v1243_v23 }
 0x5a2   : > { %v1230_v24 = vpop.xlane.xlu0 %1229 }
 0x5a3   : > { %v1246_v25 = vsub.f32 %v1221_v4, %v1230_v24 }
 0x5a4   : > { %v1233_v3 = vpop.xlane.xlu1 %1232 }
 0x5a5   : > { %v1247_v27 = vsub.f32 %v1222_v32, %v1233_v3  ;;  %v1252_v43 = vmul.f32 1.442695, %v1246_v25 }
 0x5a6   : > { %v1236_v29 = vpop.xlane.xlu0 %1235 }
 0x5a7   : > { %v1254_v30 = vmul.f32 1.442695, %v1247_v27  ;;  %v1248_v39 = vsub.f32 %v1223_v6, %v1236_v29 }
 0x5a9   : > { %4824 = vpow2.f32 %v1254_v30  ;;  %v1256_v46 = vmul.f32 1.442695, %v1248_v39 }
 0x5ab   : > { %4826 = vpow2.f32 %v1256_v46 }
 0x5ac   : > { %4828 = vpow2.f32 %v1252_v43 }
 0x5b2   : > { %v1239_v47 = vpop.xlane.xlu1 %1238 }
 0x5b3   : > { %v4825_v48 = vpop.eup %4824  ;;  %v1249_v56 = vsub.f32 %v1224_v19, %v1239_v47 }
 0x5b4   : > { %v1242_v50 = vpop.xlane.xlu0 %1241  ;;  %v1267_v55 = vsel %vm1227_vm4, %v4825_v48, 0.0 }
 0x5b5   : > { %v4827_v37 = vpop.eup %4826  ;;  %v1250_v57 = vsub.f32 %v1225_v20, %v1242_v50  ;;  %1268 = vadd.xlane.f32.xlu1 %v1267_v55  ;;  %v1258_v5 = vmul.f32 1.442695, %v1249_v56 }
 0x5b6   : > { %v1245_v58 = vpop.xlane.xlu1 %1244  ;;  %v1270_v0 = vsel %vm1227_vm4, %v4827_v37, 0.0  ;;  %v4829_v1 = vpop.eup %4828 }
 0x5b7   : > { %v1260_v2 = vmul.f32 1.442695, %v1250_v57  ;;  %v1251_v4 = vsub.f32 %v1226_v21, %v1245_v58  ;;  %1271 = vadd.xlane.f32.xlu0 %v1270_v0  ;;  %v1264_v6 = vsel %vm1227_vm4, %v4829_v1, 0.0 }
 0x5b9   : > { %4830 = vpow2.f32 %v1260_v2  ;;  %v1262_v32 = vmul.f32 1.442695, %v1251_v4 }
 0x5bb   : > { %4832 = vpow2.f32 %v1262_v32  ;;  %1265 = vadd.xlane.f32.xlu0 %v1264_v6 }
 0x5bc   : > { %4834 = vpow2.f32 %v1258_v5 }
 0x5c3   : > { %v4831_v8 = vpop.eup %4830 }
 0x5c4   : > { %v1276_v9 = vsel %vm1227_vm4, %v4831_v8, 0.0 }
 0x5c5   : > { %v4833_v10 = vpop.eup %4832  ;;  %1277 = vadd.xlane.f32.xlu0 %v1276_v9 }
 0x5c6   : > { %v1279_v11 = vsel %vm1227_vm4, %v4833_v10, 0.0  ;;  %v4835_v14 = vpop.eup %4834 }
 0x5c7   : > { %1280 = vadd.xlane.f32.xlu1 %v1279_v11  ;;  %v1273_v59 = vsel %vm1227_vm4, %v4835_v14, 0.0 }
 0x5cb   : > { %1274 = vadd.xlane.f32.xlu1 %v1273_v59 }
 0x5db   : > { %1428 = vrot.lane.b32.xlu0 %v5810_v62, %s5320_s16 }
 0x5dc   : > { %1430 = vrot.lane.b32.xlu1 %v5818_v12, %s5320_s16 }
 0x5df   : > { %1424 = vrot.lane.b32.xlu0 %v5839_v44, %s5320_s16 }
 0x5e0   : > { %1500 = vrot.lane.b32.xlu1 %v5834_v34, %s5320_s16 }
 0x5e3   : > { %1494 = vrot.lane.b32.xlu0 %v5829_v26, %s5320_s16 }
 0x5e4   : > { %1422 = vrot.lane.b32.xlu1 %v5806_v60, %s5320_s16 }
 0x5e8   : > { %1502 = vrot.lane.b32.xlu1 %v5846_v45, %s5320_s16 }
 0x5ec   : > { %1496 = vrot.lane.b32.xlu1 %v5863_v52, %s5320_s16 }
 0x642   : > { %v1269_v15 = vpop.xlane.xlu1 %1268 }
 0x644   : > { %v1272_v16 = vpop.xlane.xlu0 %1271 }
 0x645   : > { %4836 = vrcp.f32 %v1272_v16 }
 0x646   : > { %4838 = vrcp.f32 %v1269_v15 }
 0x648   : > { %v1266_v18 = vpop.xlane.xlu0 %1265 }
 0x649   : > { %4840 = vrcp.f32 %v1266_v18 }
 0x64f   : > { %v4837_v19 = vpop.eup %4836 }
 0x650   : > { %v4839_v63 = vpop.eup %4838  ;;  %v1290_v22 = vmul.f32 %v4837_v19, %v4827_v37 }
 0x651   : > { %v1289_v3 = vmul.f32 %v4839_v63, %v4825_v48 }
 0x652   : > { %v1278_v20 = vpop.xlane.xlu0 %1277  ;;  %v1295_v30 = vpack.c.bf16 %v1290_v22, %v1290_v22 }
 0x653   : > { %v4841_v21 = vpop.eup %4840 }
 0x654   : > { %v1281_v23 = vpop.xlane.xlu1 %1280  ;;  %v1288_v24 = vmul.f32 %v4841_v21, %v4829_v1 }
 0x655   : > { %4842 = vrcp.f32 %v1281_v23 }
 0x656   : > { %v1429_v25 = vpop.permute.xlu0 %1428  ;;  %v1294_v27 = vpack.c.bf16 %v1289_v3, %v1288_v24  ;;  %4844 = vrcp.f32 %v1278_v20 }
 0x657   : > { %v1439_v29 = vsel %vm1094_vm1, %v1429_v25, 0  ;;  %4463 = vmatprep.subr.msk.bf16.mxu1 %vm1094_vm1, %v1429_v25 }
 0x658   : > { %v1275_v39 = vpop.xlane.xlu1 %1274  ;;  %4221 = vmatprep.mubr.msk.bf16.mxu1 %vm1227_vm4, %v1294_v27 }
 0x659   : > { %4846 = vrcp.f32 %v1275_v39  ;;  %4222 = vmatmul.mubr.msk.bf16.vlgmr.msra.gmra.mrb[20].mxu1 %vm1227_vm4, %v1295_v30 }
 0x65a   : > { %4234 = vmatpush3.bf16.xpose.msra.mxu1 %v1439_v29  ;;  %v1425_v56 = vpop.permute.xlu0 %1424 }
 0x65c   : > { %v1431_v43 = vpop.permute.xlu1 %1430 }
 0x65d   : > { %4464 = vmatprep.subr.msk.bf16.mxu1 %vm1094_vm1, %v1431_v43  ;;  %v1442_v50 = vsel %vm1094_vm1, %v1431_v43, 0 }
 0x65e   : > { %v1495_v5 = vpop.permute.xlu0 %1494 }
 0x65f   : > { %v4843_v46 = vpop.eup %4842 }
 0x660   : > { %v1501_v47 = vpop.permute.xlu1 %1500  ;;  %v4845_v48 = vpop.eup %4844  ;;  %v1293_v37 = vmul.f32 %v4843_v46, %v4833_v10 }
 0x661   : > { %4465 = vmatprep.subr.msk.bf16.mxu0 %vm1094_vm1, %v1501_v47  ;;  %v1292_v0 = vmul.f32 %v4845_v48, %v4831_v8  ;;  %v1511_v32 = vsel %vm1094_vm1, %v1501_v47, 0 }
 0x662   : > { %4236 = vmatpush3.bf16.xpose.msra.mxu1 %v1442_v50  ;;  %v1297_v2 = vpack.c.bf16 %v1293_v37, %v1293_v37 }
 0x663   : > { %v4847_v55 = vpop.eup %4846 }
 0x664   : > { %v1423_v57 = vpop.permute.xlu1 %1422  ;;  %v1291_v58 = vmul.f32 %v4847_v55, %v4835_v14 }
 0x665   : > { %4237 = vmatprep.mubr.msk.bf16.mxu1 %vm1094_vm1, %v1423_v57 }
 0x666   : > { %v1296_v1 = vpack.c.bf16 %v1292_v0, %v1291_v58 }
 0x668   : > { %v1503_v4 = vpop.permute.xlu1 %1502  ;;  %4229 = vmatprep.mubr.msk.bf16.mxu0 %vm1227_vm4, %v1296_v1 }
 0x669   : > { %4238 = vmatmul.mubr.msk.bf16.vlgmr.msra.gmra.mrb[24].mxu1 %vm1094_vm1, %v1425_v56  ;;  %4230 = vmatmul.mubr.msk.bf16.vlgmr.msra.gmra.mrb[24].mxu0 %vm1227_vm4, %v1297_v2  ;;  %v1514_v6 = vsel %vm1094_vm1, %v1503_v4, 0 }
 0x66a   : > { %4242 = vmatpush3.bf16.xpose.msra.mxu0 %v1511_v32  ;;  %4245 = vmatprep.mubr.msk.bf16.mxu0 %vm1094_vm1, %v1495_v5 }
 0x66b   : > { %4466 = vmatprep.subr.msk.bf16.mxu0 %vm1094_vm1, %v1503_v4 }
 0x66c   : > { %v1497_v8 = vpop.permute.xlu1 %1496 }
 0x672   : > { %4244 = vmatpush3.bf16.xpose.msra.mxu0 %v1514_v6 }
 0x679   : > { %4246 = vmatmul.mubr.msk.bf16.vlgmr.msra.gmra.mrb[28].mxu0 %vm1094_vm1, %v1497_v8 }
 0x72c   : > { %v5934_v9 = vpop.f32.mrb[20].mxu1 }
 0x72d   : > { %v5936_v10 = vpop.f32.mrb[21].mxu1 }
 0x72e   : > { %v4224_v11 = vpop.f32.mrb[22].mxu1 }
 0x72f   : > { %v5938_v14 = vpop.f32.mrb[23].mxu1 }
 0x730   : > { %v1413_v59 = vpack.c.bf16 %v5938_v14, %v5936_v10 }
 0x73c   : > { %v4239_v15 = vpop.f32.mrb[24].mxu1  ;;  %v5942_v16 = vpop.f32.mrb[24].mxu0 }
 0x73d   : > { %v1478_v18 = vpop.f32.mrb[25].mxu1  ;;  %v5944_v19 = vpop.f32.mrb[25].mxu0  ;;  %v1566_v63 = vmul.f32 0.17677669, %v4239_v15 }
 0x73e   : > { %v1564_v20 = vmul.f32 0.17677669, %v1478_v18  ;;  %v1414_v21 = vpack.c.bf16 %v5944_v19, %v5934_v9  ;;  %v4240_v22 = vpop.f32.mrb[26].mxu1  ;;  %v4232_v23 = vpop.f32.mrb[26].mxu0 }
 0x73f   : > { %v1481_v24 = vpop.f32.mrb[27].mxu1  ;;  %v5948_v3 = vpop.f32.mrb[27].mxu0  ;;  %v1572_v43 = vsel %vm1081_vm3, %v1566_v63, -1e+30 }
 0x740   : > { %v1565_v25 = vmul.f32 0.17677669, %v1481_v24  ;;  %v1415_v27 = vpack.c.bf16 %v5942_v16, %v5948_v3  ;;  %v1570_v29 = vsel %vm1081_vm3, %v1564_v20, -1e+30  ;;  %v1582_v47 = vsel %vm1227_vm4, %v1572_v43, -inf }
 0x741   : > { %v1576_v30 = vsel %vm1227_vm4, %v1570_v29, -inf }
 0x742   : > { %1577 = vmax.xlane.f32.xlu0 %v1576_v30  ;;  %v1571_v39 = vsel %vm1081_vm3, %v1565_v25, -1e+30 }
 0x743   : > { %v1579_v46 = vsel %vm1227_vm4, %v1571_v39, -inf }
 0x744   : > { %1580 = vmax.xlane.f32.xlu1 %v1579_v46 }
 0x746   : > { %1583 = vmax.xlane.f32.xlu0 %v1582_v47 }
 0x74c   : > { %v4247_v48 = vpop.f32.mrb[28].mxu0 }
 0x74d   : > { %v1569_v50 = vmul.f32 0.17677669, %v4247_v48  ;;  %v1550_v55 = vpop.f32.mrb[29].mxu0 }
 0x74e   : > { %v1567_v37 = vmul.f32 0.17677669, %v1550_v55  ;;  %v4248_v56 = vpop.f32.mrb[30].mxu0 }
 0x74f   : > { %v1553_v57 = vpop.f32.mrb[31].mxu0  ;;  %v1575_v58 = vsel %vm1081_vm3, %v1569_v50, -1e+30 }
 0x750   : > { %v1568_v0 = vmul.f32 0.17677669, %v1553_v57  ;;  %v1591_v1 = vsel %vm1227_vm4, %v1575_v58, -inf  ;;  %v1573_v2 = vsel %vm1081_vm3, %v1567_v37, -1e+30 }
 0x751   : > { %1592 = vmax.xlane.f32.xlu1 %v1591_v1  ;;  %v1585_v4 = vsel %vm1227_vm4, %v1573_v2, -inf }
 0x752   : > { %1586 = vmax.xlane.f32.xlu0 %v1585_v4  ;;  %v1574_v5 = vsel %vm1081_vm3, %v1568_v0, -1e+30 }
 0x753   : > { %v1588_v32 = vsel %vm1227_vm4, %v1574_v5, -inf }
 0x756   : > { %1589 = vmax.xlane.f32.xlu0 %v1588_v32 }
 0x7cf   : > { %v1578_v6 = vpop.xlane.xlu0 %1577 }
 0x7d0   : > { %v1594_v11 = vsub.f32 %v1570_v29, %v1578_v6 }
 0x7d1   : > { %v1581_v8 = vpop.xlane.xlu1 %1580 }
 0x7d2   : > { %v1595_v15 = vsub.f32 %v1571_v39, %v1581_v8  ;;  %v1600_v22 = vmul.f32 1.442695, %v1594_v11 }
 0x7d3   : > { %v1584_v18 = vpop.xlane.xlu0 %1583 }
 0x7d4   : > { %v1602_v63 = vmul.f32 1.442695, %v1595_v15  ;;  %v1596_v20 = vsub.f32 %v1572_v43, %v1584_v18 }
 0x7d6   : > { %4848 = vpow2.f32 %v1602_v63  ;;  %v1604_v23 = vmul.f32 1.442695, %v1596_v20 }
 0x7d8   : > { %4850 = vpow2.f32 %v1604_v23 }
 0x7d9   : > { %4852 = vpow2.f32 %v1600_v22 }
 0x7de   : > { %v1593_v24 = vpop.xlane.xlu1 %1592 }
 0x7df   : > { %v1599_v25 = vsub.f32 %v1575_v58, %v1593_v24  ;;  %v1587_v30 = vpop.xlane.xlu0 %1586 }
 0x7e0   : > { %v4849_v46 = vpop.eup %4848  ;;  %v1597_v47 = vsub.f32 %v1573_v2, %v1587_v30 }
 0x7e1   : > { %v1610_v48 = vmul.f32 1.442695, %v1599_v25  ;;  %v1615_v50 = vsel %vm1227_vm4, %v4849_v46, 0.0 }
 0x7e2   : > { %v4851_v55 = vpop.eup %4850  ;;  %v1606_v37 = vmul.f32 1.442695, %v1597_v47  ;;  %1616 = vadd.xlane.f32.xlu1 %v1615_v50 }
 0x7e3   : > { %4854 = vpow2.f32 %v1610_v48  ;;  %v1590_v29 = vpop.xlane.xlu0 %1589  ;;  %v1618_v39 = vsel %vm1227_vm4, %v4851_v55, 0.0  ;;  %v4853_v43 = vpop.eup %4852 }
 0x7e4   : > { %v1598_v56 = vsub.f32 %v1574_v5, %v1590_v29  ;;  %1619 = vadd.xlane.f32.xlu0 %v1618_v39  ;;  %4856 = vpow2.f32 %v1606_v37  ;;  %v1612_v58 = vsel %vm1227_vm4, %v4853_v43, 0.0 }
 0x7e6   : > { %v1608_v57 = vmul.f32 1.442695, %v1598_v56 }
 0x7e8   : > { %4858 = vpow2.f32 %v1608_v57  ;;  %1613 = vadd.xlane.f32.xlu0 %v1612_v58 }
 0x7ed   : > { %v4855_v0 = vpop.eup %4854 }
 0x7ee   : > { %v1627_v1 = vsel %vm1227_vm4, %v4855_v0, 0.0  ;;  %v4857_v2 = vpop.eup %4856 }
 0x7ef   : > { %1628 = vadd.xlane.f32.xlu1 %v1627_v1  ;;  %v1621_v32 = vsel %vm1227_vm4, %v4857_v2, 0.0 }
 0x7f2   : > { %v4859_v4 = vpop.eup %4858 }
 0x7f3   : > { %1622 = vadd.xlane.f32.xlu1 %v1621_v32  ;;  %v1624_v6 = vsel %vm1227_vm4, %v4859_v4, 0.0 }
 0x7f4   : > { %1625 = vadd.xlane.f32.xlu0 %v1624_v6 }
 0x804   : > { %1650 = vrot.lane.b32.xlu1 %v5865_v53, %s5320_s16 }
 0x808   : > { %1712 = vrot.lane.b32.xlu1 %v5831_v7, %s5320_s16 }
 0x80a   : > { %1648 = vrot.lane.b32.xlu0 %v5808_v61, %s5320_s16 }
 0x80c   : > { %1714 = vrot.lane.b32.xlu1 %v5836_v42, %s5320_s16 }
 0x80e   : > { %1941 = vrot.lane.b32.xlu0 %v5810_v62, %s5321_s22 }
 0x810   : > { %1943 = vrot.lane.b32.xlu1 %v5818_v12, %s5321_s22 }
 0x812   : > { %2009 = vrot.lane.b32.xlu0 %v5834_v34, %s5321_s22 }
 0x814   : > { %1937 = vrot.lane.b32.xlu1 %v5806_v60, %s5321_s22 }
 0x816   : > { %1939 = vrot.lane.b32.xlu0 %v5839_v44, %s5321_s22 }
 0x818   : > { %2011 = vrot.lane.b32.xlu1 %v5846_v45, %s5321_s22 }
 0x81a   : > { %2005 = vrot.lane.b32.xlu0 %v5829_v26, %s5321_s22 }
 0x81c   : > { %2007 = vrot.lane.b32.xlu1 %v5863_v52, %s5321_s22 }
 0x86f   : > { %v1617_v5 = vpop.xlane.xlu1 %1616 }
 0x870   : > { %4860 = vrcp.f32 %v1617_v5 }
 0x871   : > { %v1620_v8 = vpop.xlane.xlu0 %1619 }
 0x875   : > { %v1614_v11 = vpop.xlane.xlu0 %1613 }
 0x876   : > { %4862 = vrcp.f32 %v1614_v11  ;;  %v4718_v11 = vld [vmem:[#allocation11 + $0x18] sm:$0xff]  }
 0x877   : > { %4864 = vrcp.f32 %v1620_v8  ;;  %v4717_v8 = vld [vmem:[#allocation11] sm:$0xff]  }
 0x87a   : > { %v4861_v18 = vpop.eup %4860 }
 0x87b   : > { %v1637_v24 = vmul.f32 %v4861_v18, %v4849_v46  ;;  %v4716_v46 = vld [vmem:[#allocation11 + $0x10] sm:$0xff]  }
 0x87c   : > { %v1629_v15 = vpop.xlane.xlu1 %1628 }
 0x87d   : > { %4866 = vrcp.f32 %v1629_v15 }
 0x880   : > { %v4863_v63 = vpop.eup %4862  ;;  %v1623_v20 = vpop.xlane.xlu1 %1622 }
 0x881   : > { %4868 = vrcp.f32 %v1623_v20  ;;  %v1626_v22 = vpop.xlane.xlu0 %1625  ;;  %v1636_v23 = vmul.f32 %v4863_v63, %v4853_v43  ;;  %v4865_v47 = vpop.eup %4864 }
 0x882   : > { %4870 = vrcp.f32 %v1626_v22  ;;  %v1638_v50 = vmul.f32 %v4865_v47, %v4851_v55 }
 0x883   : > { %v1642_v25 = vpack.c.bf16 %v1637_v24, %v1636_v23 }
 0x884   : > { %v1651_v30 = vpop.permute.xlu1 %1650  ;;  %v1643_v1 = vpack.c.bf16 %v1638_v50, %v1638_v50 }
 0x885   : > { %4253 = vmatprep.mubr.msk.bf16.mxu1 %vm1227_vm4, %v1642_v25  ;;  %v1649_v48 = vpop.permute.xlu0 %1648  ;;  %v1660_v39 = vsel %vm1304_vm2, %v1651_v30, 0 }
 0x886   : > { %4249 = vmatprep.subr.bf16.mxu1 %v1649_v48 }
 0x887   : > { %4250 = vmatpush3.bf16.msra.mxu1 %v1649_v48  ;;  %v4867_v29 = vpop.eup %4866 }
 0x888   : > { %v1713_v37 = vpop.permute.xlu1 %1712  ;;  %4467 = vmatprep.subr.msk.bf16.mxu1 %vm1304_vm2, %v1651_v30  ;;  %v1641_v57 = vmul.f32 %v4867_v29, %v4855_v0 }
 0x889   : > { %4257 = vmatprep.subr.bf16.mxu0 %v1713_v37 }
 0x88a   : > { %4258 = vmatpush3.bf16.msra.mxu0 %v1713_v37  ;;  %v1645_v0 = vpack.c.bf16 %v1641_v57, %v1641_v57 }
 0x88b   : > { %v4869_v43 = vpop.eup %4868  ;;  %4252 = vmatpush3.bf16.msra.mxu1 %v1660_v39 }
 0x88c   : > { %v4871_v56 = vpop.eup %4870  ;;  %v1715_v58 = vpop.permute.xlu1 %1714  ;;  %4265 = vmatprep.subr.bf16.mxu1 %v5317_v54  ;;  %v1639_v32 = vmul.f32 %v4869_v43, %v4857_v2 }
 0x88d   : > { %v1724_v55 = vsel %vm1304_vm2, %v1715_v58, 0  ;;  %4468 = vmatprep.subr.msk.bf16.mxu0 %vm1304_vm2, %v1715_v58  ;;  %v1640_v6 = vmul.f32 %v4871_v56, %v4859_v4  ;;  %v1942_v2 = vpop.permute.xlu0 %1941  ;;  %v4719_v4 = vld [vmem:[#allocation11 + $0x8] sm:$0xff]  }
 0x88e   : > { %4254 = vmatmul.mubr.msk.bf16.vlgmr.msra.gmra.mrb[28].mxu1 %vm1227_vm4, %v1643_v1  ;;  %4260 = vmatpush3.bf16.msra.mxu0 %v1724_v55  ;;  %v1952_v48 = vsel %vm1094_vm1, %v1942_v2, 0 }
 0x88f   : > { %4266 = vmatpush3.bf16.msra.mxu1 %v4716_v46  ;;  %v1644_v5 = vpack.c.bf16 %v1640_v6, %v1639_v32  ;;  %4281 = vmatprep.subr.bf16.mxu0 %v5317_v54 }
 0x890   : > { %4267 = vmatprep.subr.bf16.mxu1 %v5317_v54  ;;  %4269 = vmatprep.mubr.msk.bf16.mxu1 %vm5319_vm0, %v5317_v54  ;;  %v1944_v15 = vpop.permute.xlu1 %1943 }
 0x891   : > { %4261 = vmatprep.mubr.msk.bf16.mxu0 %vm1227_vm4, %v1644_v5  ;;  %v2010_v18 = vpop.permute.xlu0 %2009  ;;  %v1955_v39 = vsel %vm1094_vm1, %v1944_v15, 0 }
 0x892   : > { %4262 = vmatmul.mubr.msk.bf16.vlgmr.msra.gmra.mrb[32].mxu0 %vm1227_vm4, %v1645_v0  ;;  %v2020_v20 = vsel %vm1094_vm1, %v2010_v18, 0 }
 0x893   : > { %4282 = vmatpush3.bf16.msra.mxu0 %v4717_v8  ;;  %4268 = vmatpush3.bf16.msra.mxu1 %v4718_v11 }
 0x894   : > { %4469 = vmatprep.subr.msk.bf16.mxu1 %vm1094_vm1, %v1942_v2  ;;  %4283 = vmatprep.subr.bf16.mxu0 %v5317_v54  ;;  %v1938_v63 = vpop.permute.xlu1 %1937 }
 0x895   : > { %4285 = vmatprep.mubr.msk.bf16.mxu0 %vm5319_vm0, %v5317_v54  ;;  %v1940_v10 = vpop.permute.xlu0 %1939 }
 0x897   : > { %4284 = vmatpush3.bf16.msra.mxu0 %v4719_v4 }
 0x898   : > { %4471 = vmatprep.subr.msk.bf16.mxu0 %vm1094_vm1, %v2010_v18  ;;  %v2012_v22 = vpop.permute.xlu1 %2011 }
 0x899   : > { %v2023_v14 = vsel %vm1094_vm1, %v2012_v22, 0 }
 0x89a   : > { %4286 = vmatmul.mubr.msk.bf16.vlgmr.msra.gmra.mrb[36].mxu0 %vm1094_vm1, %v1413_v59  ;;  %v2006_v59 = vpop.permute.xlu0 %2005 }
 0x89b   : > { %4289 = vmatprep.mubr.msk.bf16.mxu0 %vm5319_vm0, %v5317_v54 }
 0x89c   : > { %v2008_v23 = vpop.permute.xlu1 %2007 }
 0x8a0   : > { %4306 = vmatpush3.bf16.xpose.msra.mxu0 %v2020_v20 }
 0x8a1   : > { %4472 = vmatprep.subr.msk.bf16.mxu0 %vm1094_vm1, %v2012_v22 }
 0x8a2   : > { %4290 = vmatmul.mubr.msk.bf16.gmra.mrb[40].mxu0 %vm1094_vm1, %v1414_v21 }
 0x8a3   : > { %4293 = vmatprep.mubr.msk.bf16.mxu0 %vm5319_vm0, %v5317_v54 }
 0x8a8   : > { %4308 = vmatpush3.bf16.xpose.msra.mxu0 %v2023_v14 }
 0x8aa   : > { %4294 = vmatmul.mubr.msk.bf16.gmra.mrb[44].mxu0 %vm1094_vm1, %v1415_v27 }
 0x8ab   : > { %4309 = vmatprep.mubr.msk.bf16.mxu0 %vm1094_vm1, %v2006_v59 }
 0x8b2   : > { %4310 = vmatmul.mubr.msk.bf16.vlgmr.msra.gmra.mrb[48].mxu0 %vm1094_vm1, %v2008_v23 }
 0x961   : > { %v4255_v9 = vpop.f32.mrb[28].mxu1 }
 0x962   : > { %v1696_v19 = vpop.f32.mrb[29].mxu1 }
 0x963   : > { %v4256_v21 = vpop.f32.mrb[30].mxu1 }
 0x964   : > { %v1699_v24 = vpop.f32.mrb[31].mxu1 }
 0x965   : > { %v1774_v25 = vpack.c.bf16 %v1699_v24, %v1696_v19  ;;  %v4263_v30 = vpop.f32.mrb[32].mxu0 }
 0x966   : > { %v1760_v47 = vpop.f32.mrb[33].mxu0 }
 0x967   : > { %v1775_v50 = vpack.c.bf16 %v1760_v47, %v4255_v9  ;;  %v4264_v37 = vpop.f32.mrb[34].mxu0  ;;  %4270 = vmatmul.mubr.msk.bf16.vlgmr.msra.gmra.mrb[32].mxu1 %vm1094_vm1, %v1774_v25 }
 0x968   : > { %4298 = vmatpush3.bf16.xpose.msra.mxu1 %v1952_v48  ;;  %v1763_v16 = vpop.f32.mrb[35].mxu0  ;;  %4273 = vmatprep.mubr.msk.bf16.mxu1 %vm5319_vm0, %v5317_v54 }
 0x969   : > { %v1776_v3 = vpack.c.bf16 %v4263_v30, %v1763_v16  ;;  %4470 = vmatprep.subr.msk.bf16.mxu1 %vm1094_vm1, %v1944_v15 }
 0x96d   : > { %v1914_v27 = vpop.f32.mrb[36].mxu0 }
 0x96e   : > { %v4287_v29 = vpop.f32.mrb[37].mxu0 }
 0x96f   : > { %4274 = vmatmul.mubr.msk.bf16.gmra.mrb[36].mxu1 %vm1094_vm1, %v1775_v50  ;;  %v1917_v43 = vpop.f32.mrb[38].mxu0 }
 0x970   : > { %4300 = vmatpush3.bf16.xpose.msra.mxu1 %v1955_v39  ;;  %v4288_v46 = vpop.f32.mrb[39].mxu0  ;;  %4277 = vmatprep.mubr.msk.bf16.mxu1 %vm5319_vm0, %v5317_v54 }
 0x975   : > { %v1922_v56 = vpop.f32.mrb[40].mxu0 }
 0x976   : > { %v4291_v57 = vpop.f32.mrb[41].mxu0 }
 0x977   : > { %4278 = vmatmul.mubr.msk.bf16.gmra.mrb[40].mxu1 %vm1094_vm1, %v1776_v3  ;;  %v1925_v58 = vpop.f32.mrb[42].mxu0 }
 0x978   : > { %v4292_v1 = vpop.f32.mrb[43].mxu0  ;;  %4301 = vmatprep.mubr.msk.bf16.mxu1 %vm1094_vm1, %v1938_v63 }
 0x97d   : > { %v1930_v32 = vpop.f32.mrb[44].mxu0 }
 0x97e   : > { %v4295_v55 = vpop.f32.mrb[45].mxu0 }
 0x97f   : > { %v1933_v6 = vpop.f32.mrb[46].mxu0  ;;  %4302 = vmatmul.mubr.msk.bf16.vlgmr.msra.gmra.mrb[44].mxu1 %vm1094_vm1, %v1940_v10 }
 0x980   : > { %v4296_v5 = vpop.f32.mrb[47].mxu0 }
 0x985   : > { %v4311_v8 = vpop.f32.mrb[48].mxu0 }
 0x986   : > { %v2059_v11 = vpop.f32.mrb[49].mxu0  ;;  %v2078_v39 = vmul.f32 0.17677669, %v4311_v8 }
 0x987   : > { %v4312_v0 = vpop.f32.mrb[50].mxu0  ;;  %v2076_v57 = vmul.f32 0.17677669, %v2059_v11 }
 0x988   : > { %v2062_v2 = vpop.f32.mrb[51].mxu0  ;;  %v2084_v55 = vsel %vm1081_vm3, %v2078_v39, -1e+30 }
 0x989   : > { %v2077_v5 = vmul.f32 0.17677669, %v2062_v2  ;;  %v2082_v8 = vsel %vm1081_vm3, %v2076_v57, -1e+30  ;;  %v2100_v11 = vsel %vm1227_vm4, %v2084_v55, -inf }
 0x98a   : > { %v2094_v0 = vsel %vm1227_vm4, %v2082_v8, -inf }
 0xa3a   : > { %v1836_v4 = vpop.f32.mrb[32].mxu1 }
 0xa3b   : > { %v6051_v15 = vadd.f32 %v1914_v27, %v1836_v4  ;;  %v4271_v18 = vpop.f32.mrb[33].mxu1  ;;  %v2083_v4 = vsel %vm1081_vm3, %v2077_v5, -1e+30 }
 0xa3c   : > { %v1839_v20 = vpop.f32.mrb[34].mxu1  ;;  %v2097_v18 = vsel %vm1227_vm4, %v2083_v4, -inf }
 0xa3d   : > { %v6053_v22 = vadd.f32 %v1917_v43, %v1839_v20  ;;  %v4272_v14 = vpop.f32.mrb[35].mxu1 }
 0xa42   : > { %v1844_v59 = vpop.f32.mrb[36].mxu1 }
 0xa43   : > { %v6055_v63 = vadd.f32 %v1922_v56, %v1844_v59  ;;  %v4275_v23 = vpop.f32.mrb[37].mxu1 }
 0xa44   : > { %v1847_v9 = vpop.f32.mrb[38].mxu1 }
 0xa45   : > { %v6057_v19 = vadd.f32 %v1925_v58, %v1847_v9  ;;  %v4276_v10 = vpop.f32.mrb[39].mxu1 }
 0xa4a   : > { %v1852_v21 = vpop.f32.mrb[40].mxu1 }
 0xa4b   : > { %v6059_v24 = vadd.f32 %v1930_v32, %v1852_v21  ;;  %v4279_v25 = vpop.f32.mrb[41].mxu1 }
 0xa4c   : > { %v1855_v30 = vpop.f32.mrb[42].mxu1 }
 0xa4d   : > { %v6061_v47 = vadd.f32 %v1933_v6, %v1855_v30  ;;  %v4280_v48 = vpop.f32.mrb[43].mxu1 }
 0xa52   : > { %v4303_v50 = vpop.f32.mrb[44].mxu1 }
 0xa53   : > { %v1991_v37 = vpop.f32.mrb[45].mxu1  ;;  %v2075_v16 = vmul.f32 0.17677669, %v4303_v50 }
 0xa54   : > { %v2073_v3 = vmul.f32 0.17677669, %v1991_v37  ;;  %v4304_v27 = vpop.f32.mrb[46].mxu1 }
 0xa55   : > { %v1994_v29 = vpop.f32.mrb[47].mxu1  ;;  %v2081_v1 = vsel %vm1081_vm3, %v2075_v16, -1e+30 }
 0xa56   : > { %v2074_v43 = vmul.f32 0.17677669, %v1994_v29  ;;  %v2079_v46 = vsel %vm1081_vm3, %v2073_v3, -1e+30  ;;  %v2091_v6 = vsel %vm1227_vm4, %v2081_v1, -inf }
 0xa57   : > { %v2085_v56 = vsel %vm1227_vm4, %v2079_v46, -inf }
 0xa58   : > { %2086 = vmax.xlane.f32.xlu0 %v2085_v56  ;;  %v2080_v58 = vsel %vm1081_vm3, %v2074_v43, -1e+30 }
 0xa59   : > { %v2088_v32 = vsel %vm1227_vm4, %v2080_v58, -inf }
 0xa5a   : > { %2089 = vmax.xlane.f32.xlu1 %v2088_v32 }
 0xa5c   : > { %2092 = vmax.xlane.f32.xlu0 %v2091_v6 }
 0xa5e   : > { %2101 = vmax.xlane.f32.xlu1 %v2100_v11 }
 0xa60   : > { %2095 = vmax.xlane.f32.xlu0 %v2094_v0 }
 0xa64   : > { %2098 = vmax.xlane.f32.xlu0 %v2097_v18 }
 0xae5   : > { %v2087_v20 = vpop.xlane.xlu0 %2086 }
 0xae6   : > { %v2103_v37 = vsub.f32 %v2079_v46, %v2087_v20 }
 0xae7   : > { %v2090_v14 = vpop.xlane.xlu1 %2089 }
 0xae8   : > { %v2109_v27 = vmul.f32 1.442695, %v2103_v37  ;;  %v2104_v5 = vsub.f32 %v2080_v58, %v2090_v14 }
 0xae9   : > { %v2093_v59 = vpop.xlane.xlu0 %2092 }
 0xaea   : > { %v2105_v21 = vsub.f32 %v2081_v1, %v2093_v59 }
 0xaeb   : > { %v2102_v2 = vpop.xlane.xlu1 %2101 }
 0xaec   : > { %v2108_v23 = vsub.f32 %v2084_v55, %v2102_v2  ;;  %v2113_v16 = vmul.f32 1.442695, %v2105_v21 }
 0xaed   : > { %v2096_v9 = vpop.xlane.xlu0 %2095 }
 0xaee   : > { %v2106_v10 = vsub.f32 %v2082_v8, %v2096_v9  ;;  %v2119_v25 = vmul.f32 1.442695, %v2108_v23  ;;  %v2111_v8 = vmul.f32 1.442695, %v2104_v5 }
 0xaf0   : > { %v2115_v30 = vmul.f32 1.442695, %v2106_v10 }
 0xaf1   : > { %v2099_v48 = vpop.xlane.xlu0 %2098 }
 0xaf2   : > { %4872 = vpow2.f32 %v2115_v30  ;;  %v2107_v50 = vsub.f32 %v2083_v4, %v2099_v48 }
 0xaf3   : > { %4874 = vpow2.f32 %v2119_v25 }
 0xaf4   : > { %v2117_v3 = vmul.f32 1.442695, %v2107_v50 }
 0xaf6   : > { %4876 = vpow2.f32 %v2117_v3 }
 0xaf7   : > { %4878 = vpow2.f32 %v2113_v16 }
 0xaf8   : > { %4880 = vpow2.f32 %v2109_v27 }
 0xaf9   : > { %4882 = vpow2.f32 %v2111_v8 }
 0xafc   : > { %v4873_v29 = vpop.eup %4872 }
 0xafd   : > { %v2130_v39 = vsel %vm1227_vm4, %v4873_v29, 0.0  ;;  %v4875_v43 = vpop.eup %4874 }
 0xafe   : > { %2131 = vadd.xlane.f32.xlu1 %v2130_v39  ;;  %v2136_v57 = vsel %vm1227_vm4, %v4875_v43, 0.0 }
 0xb00   : > { %v4877_v56 = vpop.eup %4876 }
 0xb01   : > { %v2133_v1 = vsel %vm1227_vm4, %v4877_v56, 0.0  ;;  %v6084_v32 = vpop.eup %4878 }
 0xb02   : > { %2137 = vadd.xlane.f32.xlu1 %v2136_v57  ;;  %2134 = vadd.xlane.f32.xlu0 %v2133_v1  ;;  %v2127_v46 = vsel %vm1227_vm4, %v6084_v32, 0.0  ;;  %v6088_v55 = vpop.eup %4880  ;;  %v4720_v57 = vld [vmem:[#allocation11 + $0x20] sm:$0xff]  }
 0xb03   : > { %v2121_v6 = vsel %vm1227_vm4, %v6088_v55, 0.0  ;;  %v4883_v11 = vpop.eup %4882 }
 0xb04   : > { %v2124_v0 = vsel %vm1227_vm4, %v4883_v11, 0.0 }
 0xb06   : > { %2128 = vadd.xlane.f32.xlu0 %v2127_v46 }
 0xb0a   : > { %2122 = vadd.xlane.f32.xlu0 %v2121_v6 }
 0xb13   : > { %2157 = vrot.lane.b32.xlu1 %v5865_v53, %s5321_s22 }
 0xb17   : > { %2217 = vrot.lane.b32.xlu1 %v5831_v7, %s5321_s22 }
 0xb20   : > { %2155 = vrot.lane.b32.xlu0 %v5808_v61, %s5321_s22 }
 0xb24   : > { %2374 = vrot.lane.b32.xlu0 %v5810_v62, %s5322_s9 }
 0xb28   : > { %2442 = vrot.lane.b32.xlu0 %v5834_v34, %s5322_s9 }
 0xb2c   : > { %2372 = vrot.lane.b32.xlu0 %v5839_v44, %s5322_s9 }
 0xb30   : > { %2438 = vrot.lane.b32.xlu0 %v5829_v26, %s5322_s9 }
 0xb3b   : > { %2125 = vadd.xlane.f32.xlu1 %v2124_v0 }
 0xb4c   : > { %2219 = vrot.lane.b32.xlu1 %v5836_v42, %s5321_s22 }
 0xb50   : > { %2376 = vrot.lane.b32.xlu1 %v5818_v12, %s5322_s9 }
 0xb54   : > { %2370 = vrot.lane.b32.xlu1 %v5806_v60, %s5322_s9 }
 0xb58   : > { %2444 = vrot.lane.b32.xlu1 %v5846_v45, %s5322_s9 }
 0xb5c   : > { %2440 = vrot.lane.b32.xlu1 %v5863_v52, %s5322_s9 }
 0xb8b   : > { %v2132_v62 = vpop.xlane.xlu1 %2131 }
 0xb8c   : > { %4884 = vrcp.f32 %v2132_v62 }
 0xb8f   : > { %v2138_v26 = vpop.xlane.xlu1 %2137  ;;  %v2135_v34 = vpop.xlane.xlu0 %2134 }
 0xb90   : > { %4886 = vrcp.f32 %v2135_v34 }
 0xb91   : > { %4888 = vrcp.f32 %v2138_v26 }
 0xb93   : > { %v2158_v44 = vpop.permute.xlu1 %2157  ;;  %v2129_v58 = vpop.xlane.xlu0 %2128 }
 0xb94   : > { %v2167_v59 = vsel %vm1304_vm2, %v2158_v44, 0  ;;  %4890 = vrcp.f32 %v2129_v58 }
 0xb96   : > { %v4885_v12 = vpop.eup %4884 }
 0xb97   : > { %v2218_v4 = vpop.permute.xlu1 %2217  ;;  %v2123_v18 = vpop.xlane.xlu0 %2122  ;;  %v2148_v14 = vmul.f32 %v4885_v12, %v4873_v29 }
 0xb98   : > { %4321 = vmatprep.subr.bf16.mxu0 %v2218_v4  ;;  %4892 = vrcp.f32 %v2123_v18 }
 0xb99   : > { %4322 = vmatpush3.bf16.msra.mxu0 %v2218_v4 }
 0xb9a   : > { %v4887_v20 = vpop.eup %4886 }
 0xb9b   : > { %v2156_v60 = vpop.permute.xlu0 %2155  ;;  %v2149_v45 = vmul.f32 %v4887_v20, %v4877_v56  ;;  %v4889_v2 = vpop.eup %4888 }
 0xb9c   : > { %4313 = vmatprep.subr.bf16.mxu1 %v2156_v60  ;;  %v2150_v9 = vmul.f32 %v4889_v2, %v4875_v43 }
 0xb9d   : > { %4314 = vmatpush3.bf16.msra.mxu1 %v2156_v60  ;;  %v2153_v52 = vpack.c.bf16 %v2149_v45, %v2148_v14 }
 0xb9e   : > { %4473 = vmatprep.subr.msk.bf16.mxu1 %vm1304_vm2, %v2158_v44  ;;  %v2154_v30 = vpack.c.bf16 %v2150_v9, %v2150_v9  ;;  %v4891_v48 = vpop.eup %4890 }
 0xb9f   : > { %4325 = vmatprep.mubr.msk.bf16.mxu0 %vm1227_vm4, %v2153_v52  ;;  %v2375_v25 = vpop.permute.xlu0 %2374  ;;  %v2147_v3 = vmul.f32 %v4891_v48, %v6084_v32  ;;  %v4721_v32 = vld [vmem:[#allocation11 + $0x28] sm:$0xff]  }
 0xba0   : > { %v2385_v43 = vsel %vm1094_vm1, %v2375_v25, 0 }
 0xba1   : > { %4316 = vmatpush3.bf16.msra.mxu1 %v2167_v59  ;;  %v2152_v1 = vpack.c.bf16 %v2147_v3, %v2147_v3 }
 0xba2   : > { %4329 = vmatprep.subr.bf16.mxu1 %v5317_v54  ;;  %v4893_v37 = vpop.eup %4892 }
 0xba3   : > { %v2145_v29 = vmul.f32 %v4893_v37, %v6088_v55  ;;  %v2443_v46 = vpop.permute.xlu0 %2442 }
 0xba4   : > { %v2453_v12 = vsel %vm1094_vm1, %v2443_v46, 0 }
 0xba7   : > { %v2373_v6 = vpop.permute.xlu0 %2372 }
 0xbc8   : > { %v2126_v23 = vpop.xlane.xlu1 %2125 }
 0xbc9   : > { %4894 = vrcp.f32 %v2126_v23 }
 0xbcc   : > { %v2220_v10 = vpop.permute.xlu1 %2219 }
 0xbcd   : > { %v2229_v21 = vsel %vm1304_vm2, %v2220_v10, 0  ;;  %4474 = vmatprep.subr.msk.bf16.mxu0 %vm1304_vm2, %v2220_v10 }
 0xbce   : > { %4324 = vmatpush3.bf16.msra.mxu0 %v2229_v21 }
 0xbcf   : > { %4475 = vmatprep.subr.msk.bf16.mxu0 %vm1094_vm1, %v2375_v25 }
 0xbd0   : > { %v2377_v50 = vpop.permute.xlu1 %2376 }
 0xbd1   : > { %4326 = vmatmul.mubr.msk.bf16.vlgmr.msra.gmra.mrb[52].mxu0 %vm1227_vm4, %v2154_v30  ;;  %v2388_v55 = vsel %vm1094_vm1, %v2377_v50, 0 }
 0xbd3   : > { %v4895_v16 = vpop.eup %4894 }
 0xbd4   : > { %v2371_v27 = vpop.permute.xlu1 %2370  ;;  %v2146_v39 = vmul.f32 %v4895_v16, %v4883_v11 }
 0xbd5   : > { %4349 = vmatprep.mubr.msk.bf16.mxu0 %vm1094_vm1, %v2371_v27 }
 0xbd6   : > { %v2151_v56 = vpack.c.bf16 %v2146_v39, %v2145_v29 }
 0xbd7   : > { %4346 = vmatpush3.bf16.xpose.msra.mxu0 %v2385_v43 }
 0xbd8   : > { %4317 = vmatprep.mubr.msk.bf16.mxu1 %vm1227_vm4, %v2151_v56  ;;  %4476 = vmatprep.subr.msk.bf16.mxu0 %vm1094_vm1, %v2377_v50  ;;  %v2445_v20 = vpop.permute.xlu1 %2444  ;;  %v2439_v50 = vpop.permute.xlu0 %2438 }
 0xbd9   : > { %4318 = vmatmul.mubr.msk.bf16.vlgmr.msra.gmra.mrb[48].mxu1 %vm1227_vm4, %v2152_v1  ;;  %v2456_v14 = vsel %vm1094_vm1, %v2445_v20, 0 }
 0xbda   : > { %4330 = vmatpush3.bf16.msra.mxu1 %v4720_v57  ;;  %4333 = vmatprep.mubr.msk.bf16.mxu1 %vm5319_vm0, %v5317_v54 }
 0xbdb   : > { %4331 = vmatprep.subr.bf16.mxu1 %v5317_v54 }
 0xbdc   : > { %v2441_v16 = vpop.permute.xlu1 %2440 }
 0xbde   : > { %4332 = vmatpush3.bf16.msra.mxu1 %v4721_v32 }
 0xbdf   : > { %4477 = vmatprep.subr.msk.bf16.mxu1 %vm1094_vm1, %v2443_v46  ;;  %4348 = vmatpush3.bf16.xpose.msra.mxu0 %v2388_v55 }
 0xbe6   : > { %4350 = vmatmul.mubr.msk.bf16.vlgmr.msra.gmra.mrb[56].mxu0 %vm1094_vm1, %v2373_v6 }
 0xca4   : > { %v4327_v5 = vpop.f32.mrb[52].mxu0 }
 0xca5   : > { %v2265_v8 = vpop.f32.mrb[53].mxu0 }
 0xca6   : > { %v4328_v11 = vpop.f32.mrb[54].mxu0 }
 0xca7   : > { %v2268_v0 = vpop.f32.mrb[55].mxu0 }
 0xca8   : > { %v2281_v62 = vpack.c.bf16 %v4327_v5, %v2268_v0 }
 0xcac   : > { %v4319_v26 = vpop.f32.mrb[48].mxu1 }
 0xcad   : > { %v2280_v34 = vpack.c.bf16 %v2265_v8, %v4319_v26  ;;  %v2203_v44 = vpop.f32.mrb[49].mxu1 }
 0xcae   : > { %v4320_v58 = vpop.f32.mrb[50].mxu1 }
 0xcaf   : > { %v2206_v4 = vpop.f32.mrb[51].mxu1 }
 0xcb0   : > { %v2279_v18 = vpack.c.bf16 %v2206_v4, %v2203_v44 }
 0xcb2   : > { %4334 = vmatmul.mubr.msk.bf16.vlgmr.msra.gmra.mrb[52].mxu1 %vm1094_vm1, %v2279_v18 }
 0xcb3   : > { %4354 = vmatpush3.bf16.xpose.msra.mxu1 %v2453_v12  ;;  %4337 = vmatprep.mubr.msk.bf16.mxu1 %vm5319_vm0, %v5317_v54 }
 0xcb4   : > { %4478 = vmatprep.subr.msk.bf16.mxu1 %vm1094_vm1, %v2445_v20 }
 0xcb9   : > { %v4351_v60 = vpop.f32.mrb[56].mxu0 }
 0xcba   : > { %4338 = vmatmul.mubr.msk.bf16.gmra.mrb[56].mxu1 %vm1094_vm1, %v2280_v34  ;;  %v2424_v45 = vpop.f32.mrb[57].mxu0  ;;  %v2508_v52 = vmul.f32 0.17677669, %v4351_v60 }
 0xcbb   : > { %v2506_v59 = vmul.f32 0.17677669, %v2424_v45  ;;  %4356 = vmatpush3.bf16.xpose.msra.mxu1 %v2456_v14  ;;  %v4352_v2 = vpop.f32.mrb[58].mxu0  ;;  %4341 = vmatprep.mubr.msk.bf16.mxu1 %vm5319_vm0, %v5317_v54 }
 0xcbc   : > { %v2427_v23 = vpop.f32.mrb[59].mxu0  ;;  %4377 = vmatprep.subr.bf16.mxu1 %v5317_v54  ;;  %v2514_v30 = vsel %vm1081_vm3, %v2508_v52, -1e+30 }
 0xcbd   : > { %v2507_v9 = vmul.f32 0.17677669, %v2427_v23  ;;  %v2512_v10 = vsel %vm1081_vm3, %v2506_v59, -1e+30  ;;  %v2524_v37 = vsel %vm1227_vm4, %v2514_v30, -inf }
 0xcbe   : > { %v2518_v21 = vsel %vm1227_vm4, %v2512_v10, -inf }
 0xcbf   : > { %2519 = vmax.xlane.f32.xlu0 %v2518_v21  ;;  %v2513_v25 = vsel %vm1081_vm3, %v2507_v9, -1e+30 }
 0xcc0   : > { %v2521_v48 = vsel %vm1227_vm4, %v2513_v25, -inf }
 0xcc1   : > { %2522 = vmax.xlane.f32.xlu1 %v2521_v48 }
 0xcc2   : > { %4342 = vmatmul.mubr.msk.bf16.gmra.mrb[60].mxu1 %vm1094_vm1, %v2281_v62 }
 0xcc3   : > { %2525 = vmax.xlane.f32.xlu0 %v2524_v37  ;;  %4357 = vmatprep.mubr.msk.bf16.mxu1 %vm1094_vm1, %v2439_v50 }
 0xcca   : > { %4358 = vmatmul.mubr.msk.bf16.vlgmr.msra.gmra.mrb[64].mxu1 %vm1094_vm1, %v2441_v16 }
 0xccb   : > { %4381 = vmatprep.mubr.msk.bf16.mxu1 %vm5319_vm0, %v5317_v54 }
 0xd4c   : > { %v2520_v6 = vpop.xlane.xlu0 %2519 }
 0xd4d   : > { %v2536_v0 = vsub.f32 %v2512_v10, %v2520_v6 }
 0xd4e   : > { %v2523_v57 = vpop.xlane.xlu1 %2522 }
 0xd4f   : > { %v2537_v5 = vsub.f32 %v2513_v25, %v2523_v57  ;;  %v2542_v4 = vmul.f32 1.442695, %v2536_v0 }
 0xd50   : > { %v2526_v26 = vpop.xlane.xlu0 %2525 }
 0xd51   : > { %v2544_v11 = vmul.f32 1.442695, %v2537_v5  ;;  %v2538_v18 = vsub.f32 %v2514_v30, %v2526_v26 }
 0xd53   : > { %4896 = vpow2.f32 %v2544_v11 }
 0xd54   : > { %4898 = vpow2.f32 %v2542_v4 }
 0xd5d   : > { %v4897_v23 = vpop.eup %4896 }
 0xd5e   : > { %v2557_v21 = vsel %vm1227_vm4, %v4897_v23, 0.0  ;;  %v4899_v30 = vpop.eup %4898 }
 0xd5f   : > { %v2554_v48 = vsel %vm1227_vm4, %v4899_v30, 0.0 }
 0xd85   : > { %v2341_v3 = vpop.f32.mrb[52].mxu1 }
 0xd86   : > { %v6163_v27 = vadd.f32 %v2341_v3, %v6051_v15  ;;  %v4335_v29 = vpop.f32.mrb[53].mxu1 }
 0xd87   : > { %v2344_v39 = vpop.f32.mrb[54].mxu1 }
 0xd88   : > { %v6166_v43 = vadd.f32 %v2344_v39, %v6053_v22  ;;  %v4336_v56 = vpop.f32.mrb[55].mxu1 }
 0xd8d   : > { %v2349_v1 = vpop.f32.mrb[56].mxu1 }
 0xd8e   : > { %v6169_v32 = vadd.f32 %v2349_v1, %v6055_v63  ;;  %v4339_v46 = vpop.f32.mrb[57].mxu1 }
 0xd8f   : > { %v2352_v55 = vpop.f32.mrb[58].mxu1 }
 0xd90   : > { %v6172_v8 = vadd.f32 %v2352_v55, %v6057_v19  ;;  %v4340_v15 = vpop.f32.mrb[59].mxu1  ;;  %v2546_v19 = vmul.f32 1.442695, %v2538_v18 }
 0xd92   : > { %4900 = vpow2.f32 %v2546_v19  ;;  %v4722_v19 = vld [vmem:[#allocation11 + $0x30] sm:$0xff]  }
 0xd93   : > { %4378 = vmatpush3.bf16.msra.mxu1 %v4722_v19 }
 0xd94   : > { %4379 = vmatprep.subr.bf16.mxu1 %v5317_v54 }
 0xd95   : > { %v2357_v62 = vpop.f32.mrb[60].mxu1 }
 0xd96   : > { %v6175_v22 = vadd.f32 %v2357_v62, %v6059_v24  ;;  %v4343_v34 = vpop.f32.mrb[61].mxu1 }
 0xd97   : > { %v2360_v44 = vpop.f32.mrb[62].mxu1 }
 0xd98   : > { %v6178_v63 = vadd.f32 %v2360_v44, %v6061_v47  ;;  %v4344_v58 = vpop.f32.mrb[63].mxu1 }
 0xd9c   : > { %v4901_v50 = vpop.eup %4900 }
 0xd9d   : > { %v4359_v12 = vpop.f32.mrb[64].mxu1  ;;  %v2560_v37 = vsel %vm1227_vm4, %v4901_v50, 0.0 }
 0xd9e   : > { %v2511_v20 = vmul.f32 0.17677669, %v4359_v12  ;;  %v2492_v60 = vpop.f32.mrb[65].mxu1 }
 0xd9f   : > { %v2509_v14 = vmul.f32 0.17677669, %v2492_v60  ;;  %v4360_v45 = vpop.f32.mrb[66].mxu1 }
 0xda0   : > { %v2495_v52 = vpop.f32.mrb[67].mxu1  ;;  %v2517_v24 = vsel %vm1081_vm3, %v2511_v20, -1e+30 }
 0xda1   : > { %v2510_v59 = vmul.f32 0.17677669, %v2495_v52  ;;  %v2533_v2 = vsel %vm1227_vm4, %v2517_v24, -inf  ;;  %v2515_v47 = vsel %vm1081_vm3, %v2509_v14, -1e+30 }
 0xda2   : > { %2534 = vmax.xlane.f32.xlu1 %v2533_v2  ;;  %v2527_v9 = vsel %vm1227_vm4, %v2515_v47, -inf }
 0xda3   : > { %2528 = vmax.xlane.f32.xlu0 %v2527_v9  ;;  %v2516_v10 = vsel %vm1081_vm3, %v2510_v59, -1e+30 }
 0xda4   : > { %v2530_v25 = vsel %vm1227_vm4, %v2516_v10, -inf }
 0xda6   : > { %2558 = vadd.xlane.f32.xlu1 %v2557_v21 }
 0xda7   : > { %2531 = vmax.xlane.f32.xlu0 %v2530_v25 }
 0xdab   : > { %2555 = vadd.xlane.f32.xlu0 %v2554_v48 }
 0xdaf   : > { %2561 = vadd.xlane.f32.xlu0 %v2560_v37 }
 0xe2f   : > { %v2535_v16 = vpop.xlane.xlu1 %2534 }
 0xe30   : > { %v2541_v3 = vsub.f32 %v2517_v24, %v2535_v16  ;;  %v2529_v29 = vpop.xlane.xlu0 %2528 }
 0xe31   : > { %v2539_v39 = vsub.f32 %v2515_v47, %v2529_v29 }
 0xe32   : > { %v2552_v36 = vmul.f32 1.442695, %v2541_v3 }
 0xe33   : > { %v2548_v56 = vmul.f32 1.442695, %v2539_v39  ;;  %v2559_v1 = vpop.xlane.xlu1 %2558 }
 0xe34   : > { %4902 = vpow2.f32 %v2552_v36  ;;  %v2532_v57 = vpop.xlane.xlu0 %2531 }
 0xe35   : > { %v2540_v46 = vsub.f32 %v2516_v10, %v2532_v57  ;;  %4904 = vpow2.f32 %v2548_v56 }
 0xe36   : > { %4906 = vrcp.f32 %v2559_v1 }
 0xe37   : > { %v2550_v55 = vmul.f32 1.442695, %v2540_v46 }
 0xe38   : > { %v2556_v6 = vpop.xlane.xlu0 %2555 }
 0xe39   : > { %4908 = vpow2.f32 %v2550_v55 }
 0xe3a   : > { %4910 = vrcp.f32 %v2556_v6 }
 0xe3c   : > { %v2562_v12 = vpop.xlane.xlu0 %2561 }
 0xe3d   : > { %4912 = vrcp.f32 %v2562_v12 }
 0xe3e   : > { %v4903_v5 = vpop.eup %4902 }
 0xe3f   : > { %v2569_v15 = vsel %vm1227_vm4, %v4903_v5, 0.0  ;;  %v4905_v11 = vpop.eup %4904 }
 0xe40   : > { %2570 = vadd.xlane.f32.xlu1 %v2569_v15  ;;  %v4907_v0 = vpop.eup %4906  ;;  %v2563_v26 = vsel %vm1227_vm4, %v4905_v11, 0.0 }
 0xe41   : > { %v2579_v4 = vmul.f32 %v4907_v0, %v4897_v23  ;;  %v2809_v0 = vld [vmem:[#allocation7 + $0x3] ss:$0 sm:$0xff] }
 0xe43   : > { %v4909_v62 = vpop.eup %4908 }
 0xe44   : > { %v4911_v34 = vpop.eup %4910  ;;  %2564 = vadd.xlane.f32.xlu1 %v2563_v26  ;;  %v2566_v44 = vsel %vm1227_vm4, %v4909_v62, 0.0 }
 0xe45   : > { %2567 = vadd.xlane.f32.xlu0 %v2566_v44  ;;  %v2578_v58 = vmul.f32 %v4911_v34, %v4899_v30 }
 0xe47   : > { %v2584_v18 = vpack.c.bf16 %v2579_v4, %v2578_v58 }
 0xe49   : > { %4365 = vmatprep.mubr.msk.bf16.mxu0 %vm1227_vm4, %v2584_v18 }
 0xe55   : > { %2590 = vrot.lane.b32.xlu1 %v5865_v53, %s5322_s9 }
 0xe59   : > { %2650 = vrot.lane.b32.xlu1 %v5831_v7, %s5322_s9  ;;  %v4913_v7 = vpop.eup %4912 }
 0xe5b   : > { %2588 = vrot.lane.b32.xlu0 %v5808_v61, %s5322_s9  ;;  %v2580_v61 = vmul.f32 %v4913_v7, %v4901_v50  ;;  %v4723_v50 = vld [vmem:[#allocation11 + $0x38] sm:$0xff]  }
 0xe5c   : > { %4380 = vmatpush3.bf16.msra.mxu1 %v4723_v50 }
 0xe5d   : > { %2652 = vrot.lane.b32.xlu1 %v5836_v42, %s5322_s9  ;;  %v2585_v2 = vpack.c.bf16 %v2580_v61, %v2580_v61 }
 0xecd   : > { %v2571_v20 = vpop.xlane.xlu1 %2570 }
 0xed1   : > { %v2565_v60 = vpop.xlane.xlu1 %2564 }
 0xed2   : > { %4914 = vrcp.f32 %v2565_v60  ;;  %v2568_v14 = vpop.xlane.xlu0 %2567 }
 0xed3   : > { %4916 = vrcp.f32 %v2568_v14 }
 0xed4   : > { %4918 = vrcp.f32 %v2571_v20 }
 0xed5   : > { %v2591_v53 = vpop.permute.xlu1 %2590 }
 0xed6   : > { %v2589_v45 = vpop.permute.xlu0 %2588  ;;  %v2600_v52 = vsel %vm1304_vm2, %v2591_v53, 0 }
 0xed7   : > { %4361 = vmatprep.subr.bf16.mxu0 %v2589_v45 }
 0xed8   : > { %4362 = vmatpush3.bf16.msra.mxu0 %v2589_v45 }
 0xed9   : > { %4479 = vmatprep.subr.msk.bf16.mxu0 %vm1304_vm2, %v2591_v53  ;;  %v2651_v42 = vpop.permute.xlu1 %2650 }
 0xedc   : > { %v4915_v24 = vpop.eup %4914  ;;  %4364 = vmatpush3.bf16.msra.mxu0 %v2600_v52 }
 0xedd   : > { %v4917_v59 = vpop.eup %4916  ;;  %4369 = vmatprep.subr.bf16.mxu0 %v2651_v42  ;;  %v2581_v47 = vmul.f32 %v4915_v24, %v4905_v11  ;;  %v2653_v10 = vpop.permute.xlu1 %2652  ;;  %v4724_v24 = vld [vmem:[#allocation13] ss:$8 sps:$4 sm:$0xff]  }
 0xede   : > { %v4919_v23 = vpop.eup %4918  ;;  %v2582_v9 = vmul.f32 %v4917_v59, %v4909_v62  ;;  %v2662_v30 = vsel %vm1304_vm2, %v2653_v10, 0  ;;  %v4726_v59 = vld [vmem:[#allocation13 + $0x4] ss:$8 sps:$4 sm:$0xff]  }
 0xedf   : > { %4366 = vmatmul.mubr.msk.bf16.vlgmr.msra.gmra.mrb[60].mxu0 %vm1227_vm4, %v2585_v2  ;;  %v2583_v25 = vmul.f32 %v4919_v23, %v4903_v5  ;;  %v4727_v2 = vld [vmem:[#allocation13 + $0x10] ss:$8 sps:$4 sm:$0xff]  }
 0xee0   : > { %4370 = vmatpush3.bf16.msra.mxu0 %v2651_v42  ;;  %v2586_v21 = vpack.c.bf16 %v2582_v9, %v2581_v47 }
 0xee1   : > { %4480 = vmatprep.subr.msk.bf16.mxu0 %vm1304_vm2, %v2653_v10  ;;  %v2587_v48 = vpack.c.bf16 %v2583_v25, %v2583_v25 }
 0xee2   : > { %4373 = vmatprep.mubr.msk.bf16.mxu0 %vm1227_vm4, %v2586_v21 }
 0xee4   : > { %4372 = vmatpush3.bf16.msra.mxu0 %v2662_v30 }
 0xee5   : > { %3008 = vmatprep.subr.bf16.mxu0 %v4726_v59 }
 0xee7   : > { %4374 = vmatmul.mubr.msk.bf16.vlgmr.msra.gmra.mrb[64].mxu0 %vm1227_vm4, %v2587_v48 }
 0xee8   : > { %3040 = vmatprep.mubr.bf16.mxu0 %v5318_v40  ;;  %3009 = vmatpush1.bf16.msra.mxu0 %v4724_v24 }
 0xfb2   : > { %v4367_v37 = vpop.f32.mrb[60].mxu0 }
 0xfb3   : > { %v2636_v16 = vpop.f32.mrb[61].mxu0 }
 0xfb4   : > { %v4368_v3 = vpop.f32.mrb[62].mxu0 }
 0xfb5   : > { %v2639_v29 = vpop.f32.mrb[63].mxu0 }
 0xfb6   : > { %v2712_v39 = vpack.c.bf16 %v2639_v29, %v2636_v16 }
 0xfb8   : > { %4382 = vmatmul.mubr.msk.bf16.vlgmr.msra.gmra.mrb[68].mxu1 %vm1094_vm1, %v2712_v39  ;;  %v4732_v39 = vld [vmem:[#allocation13 + $0x24] ss:$8 sps:$4 sm:$0xff]  }
 0xfb9   : > { %4385 = vmatprep.mubr.msk.bf16.mxu1 %vm5319_vm0, %v5317_v54 }
 0xfba   : > { %v4375_v36 = vpop.f32.mrb[64].mxu0 }
 0xfbb   : > { %v2698_v56 = vpop.f32.mrb[65].mxu0 }
 0xfbc   : > { %v2713_v57 = vpack.c.bf16 %v2698_v56, %v4367_v37  ;;  %v4376_v1 = vpop.f32.mrb[66].mxu0  ;;  %v4735_v56 = vld [vmem:[#allocation13 + $0x34] ss:$8 sps:$4 sm:$0xff]  }
 0xfbd   : > { %v2701_v46 = vpop.f32.mrb[67].mxu0  ;;  %v4738_v1 = vld [vmem:[#allocation13 + $0x44] ss:$8 sps:$4 sm:$0xff]  }
 0xfbe   : > { %v2714_v55 = vpack.c.bf16 %v4375_v36, %v2701_v46  ;;  %v4730_v36 = vld [vmem:[#allocation13 + $0x20] ss:$8 sps:$4 sm:$0xff]  }
 0xfbf   : > { %v4736_v46 = vld [vmem:[#allocation13 + $0x40] ss:$8 sps:$4 sm:$0xff]  }
 0xfc0   : > { %4386 = vmatmul.mubr.msk.bf16.gmra.mrb[72].mxu1 %vm1094_vm1, %v2713_v57  ;;  %v4733_v57 = vld [vmem:[#allocation13 + $0x30] ss:$8 sps:$4 sm:$0xff]  }
 0xfc1   : > { %4389 = vmatprep.mubr.msk.bf16.mxu1 %vm5319_vm0, %v5317_v54 }
 0xfc8   : > { %4390 = vmatmul.mubr.msk.bf16.gmra.mrb[76].mxu1 %vm1094_vm1, %v2714_v55  ;;  %v4741_v55 = vld [vmem:[#allocation13 + $0x54] ss:$8 sps:$4 sm:$0xff]  }
0x108b   : > { %v2774_v6 = vpop.f32.mrb[68].mxu1 }
0x108c   : > { %v2797_v5 = vadd.f32 %v2774_v6, %v6163_v27  ;;  %v4383_v15 = vpop.f32.mrb[69].mxu1  ;;  %v4739_v6 = vld [vmem:[#allocation13 + $0x50] ss:$8 sps:$4 sm:$0xff]  }
0x108d   : > { %v2777_v11 = vpop.f32.mrb[70].mxu1  ;;  %v4742_v15 = vld [vmem:[#allocation13 + $0x60] ss:$8 sps:$4 sm:$0xff]  }
0x108e   : > { %v2803_v62 = vadd.f32 %v2797_v5, %v5713_v28  ;;  %v2798_v26 = vadd.f32 %v2777_v11, %v6166_v43  ;;  %v4384_v34 = vpop.f32.mrb[71].mxu1  ;;  %v4744_v5 = vld [vmem:[#allocation13 + $0x64] ss:$8 sps:$4 sm:$0xff]   ;;  %v4747_v11 = vld [vmem:[#allocation13 + $0x74] ss:$8 sps:$4 sm:$0xff]  }
0x1090   : > { %v2804_v44 = vadd.f32 %v2798_v26, %v5716_v31  ;;  %v6224_v58 = vadd.f32 %v2809_v0, %v2803_v62 }
0x1092   : > { %2818 = vadd.xlane.f32.xlu0 %v6224_v58  ;;  %v2811_v4 = vadd.f32 %v2809_v0, %v2804_v44 }
0x1093   : > { %v2782_v18 = vpop.f32.mrb[72].mxu1 }
0x1094   : > { %v2799_v19 = vadd.f32 %v2782_v18, %v6169_v32  ;;  %2820 = vadd.xlane.f32.xlu1 %v2811_v4  ;;  %v4387_v27 = vpop.f32.mrb[73].mxu1 }
0x1095   : > { %v2785_v12 = vpop.f32.mrb[74].mxu1 }
0x1096   : > { %v2805_v20 = vadd.f32 %v2799_v19, %v5719_v38  ;;  %v2800_v28 = vadd.f32 %v2785_v12, %v6172_v8  ;;  %v4388_v60 = vpop.f32.mrb[75].mxu1 }
0x1098   : > { %v2806_v43 = vadd.f32 %v2800_v28, %v5722_v41  ;;  %v2812_v14 = vadd.f32 %v2809_v0, %v2805_v20 }
0x109a   : > { %2822 = vadd.xlane.f32.xlu0 %v2812_v14  ;;  %v6232_v45 = vadd.f32 %v2809_v0, %v2806_v43 }
0x109b   : > { %v2790_v31 = vpop.f32.mrb[76].mxu1 }
0x109c   : > { %v2801_v53 = vadd.f32 %v2790_v31, %v6175_v22  ;;  %v4391_v7 = vpop.f32.mrb[77].mxu1  ;;  %v4729_v22 = vld [vmem:[#allocation13 + $0x14] ss:$8 sps:$4 sm:$0xff]  }
0x109d   : > { %v2793_v61 = vpop.f32.mrb[78].mxu1  ;;  %3010 = vmatprep.subr.bf16.mxu0 %v4729_v22  ;;  %v6265_v7 = vld [vmem:[#allocation7 + $0x4] ss:$0 sm:$0xff] }
0x109e   : > { %v2807_v32 = vadd.f32 %v2801_v53, %v5725_v49  ;;  %v2802_v42 = vadd.f32 %v2793_v61, %v6178_v63  ;;  %2824 = vadd.xlane.f32.xlu0 %v6232_v45  ;;  %v4392_v38 = vpop.f32.mrb[79].mxu1  ;;  %3011 = vmatpush1.bf16.msra.mxu0 %v4727_v2 }
0x109f   : > { %3012 = vmatprep.subr.bf16.mxu0 %v4732_v39  ;;  %v4751_v39 = vld [vmem:[#allocation14 + $0x8] sm:$0xff]  }
0x10a0   : > { %v2808_v8 = vadd.f32 %v2802_v42, %v5727_v51  ;;  %v6238_v52 = vadd.f32 %v2809_v0, %v2807_v32 }
0x10a2   : > { %v6240_v41 = vadd.f32 %v2809_v0, %v2808_v8  ;;  %3013 = vmatpush1.bf16.msra.mxu0 %v4730_v36  ;;  %v4745_v0 = vld [vmem:[#allocation13 + $0x70] ss:$8 sps:$4 sm:$0xff]  }
0x10a3   : > { %3014 = vmatprep.subr.bf16.mxu0 %v4735_v56  ;;  %v4753_v36 = vld [vmem:[#allocation14 + $0x10] sm:$0xff]   ;;  %v4754_v56 = vld [vmem:[#allocation14 + $0x58] sm:$0xff]  }
0x10a6   : > { %3015 = vmatpush1.bf16.msra.mxu0 %v4733_v57  ;;  %v4755_v57 = vld [vmem:[#allocation14 + $0x18] sm:$0xff]  }
0x10a7   : > { %3016 = vmatprep.subr.bf16.mxu0 %v4738_v1  ;;  %v4756_v1 = vld [vmem:[#allocation14 + $0x60] sm:$0xff]  }
0x10aa   : > { %3017 = vmatpush1.bf16.msra.mxu0 %v4736_v46  ;;  %v4757_v46 = vld [vmem:[#allocation14 + $0x20] sm:$0xff]  }
0x10ab   : > { %3018 = vmatprep.subr.bf16.mxu0 %v4741_v55  ;;  %v4759_v55 = vld [vmem:[#allocation14 + $0x28] sm:$0xff]  }
0x10ae   : > { %3019 = vmatpush1.bf16.msra.mxu0 %v4739_v6  ;;  %v4760_v6 = vld [vmem:[#allocation14 + $0x70] sm:$0xff]  }
0x10af   : > { %3020 = vmatprep.subr.bf16.mxu0 %v4744_v5  ;;  %v4761_v5 = vld [vmem:[#allocation14 + $0x30] sm:$0xff]  }
0x10b2   : > { %3021 = vmatpush1.bf16.msra.mxu0 %v4742_v15  ;;  %v4762_v15 = vld [vmem:[#allocation14 + $0x78] sm:$0xff]  }
0x10b3   : > { %3022 = vmatprep.subr.bf16.mxu0 %v4747_v11  ;;  %v4763_v11 = vld [vmem:[#allocation14 + $0x38] sm:$0xff]  }
0x10b6   : > { %3023 = vmatpush1.bf16.msra.mxu0 %v4745_v0 }
0x111f   : > { %v2819_v49 = vpop.xlane.xlu0 %2818 }
0x1120   : > { %v2830_v47 = vmul.f32 0.0078125, %v2819_v49 }
0x1121   : > { %v2821_v63 = vpop.xlane.xlu1 %2820 }
0x1122   : > { %v6243_v23 = vsub.f32 %v6224_v58, %v2830_v47  ;;  %v2831_v9 = vmul.f32 0.0078125, %v2821_v63 }
0x1124   : > { %v6245_v51 = vsub.f32 %v2811_v4, %v2831_v9  ;;  %v2842_v10 = vmul.f32 %v6243_v23, %v6243_v23 }
0x1126   : > { %2848 = vadd.xlane.f32.xlu0 %v2842_v10  ;;  %v2843_v21 = vmul.f32 %v6245_v51, %v6245_v51 }
0x1127   : > { %v2823_v25 = vpop.xlane.xlu0 %2822 }
0x1128   : > { %v2832_v30 = vmul.f32 0.0078125, %v2823_v25  ;;  %2850 = vadd.xlane.f32.xlu1 %v2843_v21 }
0x112a   : > { %v6251_v48 = vsub.f32 %v2812_v14, %v2832_v30 }
0x112b   : > { %v2825_v50 = vpop.xlane.xlu0 %2824 }
0x112c   : > { %v2833_v37 = vmul.f32 0.0078125, %v2825_v50  ;;  %v2844_v16 = vmul.f32 %v6251_v48, %v6251_v48 }
0x112e   : > { %v6256_v3 = vsub.f32 %v6232_v45, %v2833_v37  ;;  %2852 = vadd.xlane.f32.xlu0 %v2844_v16  ;;  %v4748_v16 = vld [vmem:[#allocation14 + $0x40] sm:$0xff]  }
0x112f   : > { %4139 = vmatprep.subr.bf16.mxu1 %v4748_v16 }
0x1130   : > { %v2845_v29 = vmul.f32 %v6256_v3, %v6256_v3 }
0x1132   : > { %2854 = vadd.xlane.f32.xlu1 %v2845_v29  ;;  %2826 = vadd.xlane.f32.xlu0 %v6238_v52  ;;  %v4750_v29 = vld [vmem:[#allocation14 + $0x48] sm:$0xff]  }
0x1136   : > { %2828 = vadd.xlane.f32.xlu1 %v6240_v41 }
0x11b3   : > { %v2849_v62 = vpop.xlane.xlu0 %2848 }
0x11b4   : > { %v2860_v26 = vmul.f32 0.0078125, %v2849_v62 }
0x11b5   : > { %v2851_v34 = vpop.xlane.xlu1 %2850 }
0x11b6   : > { %v2866_v44 = vadd.f32 1e-06, %v2860_v26  ;;  %v2861_v4 = vmul.f32 0.0078125, %v2851_v34 }
0x11b8   : > { %4920 = vrsqrt.f32 %v2866_v44  ;;  %v2867_v18 = vadd.f32 1e-06, %v2861_v4 }
0x11ba   : > { %4922 = vrsqrt.f32 %v2867_v18 }
0x11bb   : > { %v2853_v19 = vpop.xlane.xlu0 %2852 }
0x11bc   : > { %v2862_v27 = vmul.f32 0.0078125, %v2853_v19 }
0x11be   : > { %v2868_v12 = vadd.f32 1e-06, %v2862_v27 }
0x11bf   : > { %v2855_v20 = vpop.xlane.xlu1 %2854  ;;  %v2827_v28 = vpop.xlane.xlu0 %2826 }
0x11c0   : > { %4924 = vrsqrt.f32 %v2868_v12  ;;  %v2863_v60 = vmul.f32 0.0078125, %v2855_v20  ;;  %v2834_v43 = vmul.f32 0.0078125, %v2827_v28 }
0x11c2   : > { %v4921_v14 = vpop.eup %4920  ;;  %v2869_v31 = vadd.f32 1e-06, %v2863_v60  ;;  %v6263_v53 = vsub.f32 %v6238_v52, %v2834_v43  ;;  %v6275_v52 = vld [vmem:[#allocation7 + $0x5] ss:$0 sm:$0xff] }
0x11c3   : > { %v2878_v61 = vmul.f32 %v4921_v14, %v6243_v23  ;;  %v2829_v32 = vpop.xlane.xlu1 %2828 }
0x11c4   : > { %v4923_v42 = vpop.eup %4922  ;;  %4926 = vrsqrt.f32 %v2869_v31  ;;  %v2835_v38 = vmul.f32 0.0078125, %v2829_v32  ;;  %v2846_v8 = vmul.f32 %v6263_v53, %v6263_v53  ;;  %v2916_v31 = vld [vmem:[#allocation7 + $0x6] ss:$8 sm:$0x3] }
0x11c5   : > { %v2879_v24 = vmul.f32 %v4923_v42, %v6245_v51  ;;  %v2884_v59 = vmul.f32 %v2878_v61, %v6265_v7  ;;  %v6298_v61 = vrot.slane %v2916_v31, %v5788_v17 }
0x11c6   : > { %v6273_v22 = vsub.f32 %v6240_v41, %v2835_v38  ;;  %2856 = vadd.xlane.f32.xlu0 %v2846_v8 }
0x11c7   : > { %v2885_v2 = vmul.f32 %v2879_v24, %v6265_v7  ;;  %v2890_v47 = vadd.f32 %v2884_v59, %v6275_v52 }
0x11c8   : > { %v2847_v49 = vmul.f32 %v6273_v22, %v6273_v22 }
0x11c9   : > { %v2891_v63 = vadd.f32 %v2885_v2, %v6275_v52 }
0x11ca   : > { %v4925_v23 = vpop.eup %4924  ;;  %2858 = vadd.xlane.f32.xlu1 %v2847_v49 }
0x11cb   : > { %v2896_v9 = vpack.c.bf16 %v2891_v63, %v2890_v47  ;;  %v2880_v51 = vmul.f32 %v4925_v23, %v6251_v48  ;;  %v4749_v48 = vld [vmem:[#allocation14] sm:$0xff]  }
0x11cc   : > { %4140 = vmatpush3.bf16.msra.mxu1 %v4749_v48 }
0x11cd   : > { %3041 = vmatmul.mubr.bf16.vlgmr.msra.gmra.mrb[68].mxu0 %v2896_v9  ;;  %v2886_v21 = vmul.f32 %v2880_v51, %v6265_v7  ;;  %4141 = vmatprep.subr.bf16.mxu1 %v4750_v29 }
0x11ce   : > { %v4927_v41 = vpop.eup %4926  ;;  %3050 = vmatprep.mubr.bf16.mxu0 %v5318_v40 }
0x11cf   : > { %v2881_v10 = vmul.f32 %v4927_v41, %v6256_v3  ;;  %v2892_v30 = vadd.f32 %v2886_v21, %v6275_v52  ;;  %v4752_v3 = vld [vmem:[#allocation14 + $0x50] sm:$0xff]  }
0x11d0   : > { %4142 = vmatpush3.bf16.msra.mxu1 %v4751_v39 }
0x11d1   : > { %v2887_v25 = vmul.f32 %v2881_v10, %v6265_v7  ;;  %4143 = vmatprep.subr.bf16.mxu1 %v4752_v3 }
0x11d3   : > { %v2893_v50 = vadd.f32 %v2887_v25, %v6275_v52 }
0x11d4   : > { %4144 = vmatpush3.bf16.msra.mxu1 %v4753_v36 }
0x11d5   : > { %v2897_v37 = vpack.c.bf16 %v2893_v50, %v2892_v30  ;;  %4145 = vmatprep.subr.bf16.mxu1 %v4754_v56 }
0x11d7   : > { %3051 = vmatmul.mubr.bf16.gmra.mrb[72].mxu0 %v2897_v37 }
0x11d8   : > { %3060 = vmatprep.mubr.bf16.mxu0 %v5318_v40  ;;  %4146 = vmatpush3.bf16.msra.mxu1 %v4755_v57  ;;  %v4758_v40 = vld [vmem:[#allocation14 + $0x68] sm:$0xff]  }
0x11d9   : > { %4147 = vmatprep.subr.bf16.mxu1 %v4756_v1 }
0x11dc   : > { %4148 = vmatpush3.bf16.msra.mxu1 %v4757_v46 }
0x11dd   : > { %4149 = vmatprep.subr.bf16.mxu1 %v4758_v40 }
0x11e0   : > { %4150 = vmatpush3.bf16.msra.mxu1 %v4759_v55 }
0x11e1   : > { %4151 = vmatprep.subr.bf16.mxu1 %v4760_v6 }
0x11e4   : > { %4152 = vmatpush3.bf16.msra.mxu1 %v4761_v5 }
0x11e5   : > { %4153 = vmatprep.subr.bf16.mxu1 %v4762_v15 }
0x11e8   : > { %4154 = vmatpush3.bf16.msra.mxu1 %v4763_v11 }
0x1253   : > { %v2857_v0 = vpop.xlane.xlu0 %2856 }
0x1254   : > { %v2864_v62 = vmul.f32 0.0078125, %v2857_v0 }
0x1256   : > { %v2870_v26 = vadd.f32 1e-06, %v2864_v62 }
0x1257   : > { %v2859_v34 = vpop.xlane.xlu1 %2858 }
0x1258   : > { %4928 = vrsqrt.f32 %v2870_v26  ;;  %v2865_v44 = vmul.f32 0.0078125, %v2859_v34 }
0x125a   : > { %v2871_v4 = vadd.f32 1e-06, %v2865_v44 }
0x125c   : > { %4930 = vrsqrt.f32 %v2871_v4 }
0x1262   : > { %v4929_v18 = vpop.eup %4928 }
0x1263   : > { %v2882_v19 = vmul.f32 %v4929_v18, %v6263_v53  ;;  %v6301_v53 = vrot.slane %v2916_v31, %v5792_v35 }
0x1265   : > { %v2888_v20 = vmul.f32 %v2882_v19, %v6265_v7 }
0x1266   : > { %v4931_v27 = vpop.eup %4930 }
0x1267   : > { %v2883_v12 = vmul.f32 %v4931_v27, %v6273_v22  ;;  %v2894_v60 = vadd.f32 %v2888_v20, %v6275_v52 }
0x1269   : > { %v2889_v28 = vmul.f32 %v2883_v12, %v6265_v7 }
0x126b   : > { %v2895_v43 = vadd.f32 %v2889_v28, %v6275_v52 }
0x126d   : > { %v2898_v14 = vpack.c.bf16 %v2895_v43, %v2894_v60 }
0x126f   : > { %3061 = vmatmul.mubr.bf16.gmra.mrb[76].mxu0 %v2898_v14 }
0x1270   : > { %3586 = vmatprep.mubr.f32.mxu0 %v5317_v54 }
0x12a0   : > { %v3042_v32 = vpop.f32.mrb[68].mxu0 }
0x12a1   : > { %v6304_v42 = vadd.f32 %v3042_v32, %v6298_v61  ;;  %v3044_v7 = vpop.f32.mrb[69].mxu0 }
0x12a2   : > { %v6307_v38 = vadd.f32 %v3044_v7, %v6301_v53  ;;  %v3046_v8 = vpop.f32.mrb[70].mxu0 }
0x12a3   : > { %v3071_v24 = vmul.f32 %v6304_v42, %v6304_v42  ;;  %v6312_v59 = vadd.f32 %v3046_v8, %v6298_v61  ;;  %v3048_v22 = vpop.f32.mrb[71].mxu0 }
0x12a4   : > { %v3072_v52 = vmul.f32 %v6307_v38, %v6307_v38  ;;  %v6317_v2 = vadd.f32 %v3048_v22, %v6301_v53 }
0x12a5   : > { %v3083_v49 = vmul.f32 %v3071_v24, %v6304_v42  ;;  %v3073_v47 = vmul.f32 %v6312_v59, %v6312_v59 }
0x12a6   : > { %v3084_v63 = vmul.f32 %v3072_v52, %v6307_v38  ;;  %v3074_v23 = vmul.f32 %v6317_v2, %v6317_v2 }
0x12a7   : > { %v3095_v9 = vmul.f32 0.044715, %v3083_v49  ;;  %v3085_v51 = vmul.f32 %v3073_v47, %v6312_v59 }
0x12a8   : > { %v3096_v41 = vmul.f32 0.044715, %v3084_v63  ;;  %v3086_v10 = vmul.f32 %v3074_v23, %v6317_v2 }
0x12a9   : > { %v3107_v21 = vadd.f32 %v3095_v9, %v6304_v42  ;;  %v3097_v25 = vmul.f32 0.044715, %v3085_v51 }
0x12aa   : > { %v3108_v30 = vadd.f32 %v3096_v41, %v6307_v38  ;;  %v3098_v50 = vmul.f32 0.044715, %v3086_v10  ;;  %v3052_v37 = vpop.f32.mrb[72].mxu0 }
0x12ab   : > { %v3119_v16 = vmul.f32 0.7978846, %v3107_v21  ;;  %v3109_v48 = vadd.f32 %v3097_v25, %v6312_v59  ;;  %v6331_v29 = vadd.f32 %v3052_v37, %v6298_v61  ;;  %v3054_v39 = vpop.f32.mrb[73].mxu0 }
0x12ac   : > { %v3120_v3 = vmul.f32 0.7978846, %v3108_v30  ;;  %v3110_v36 = vadd.f32 %v3098_v50, %v6317_v2  ;;  %v6335_v56 = vadd.f32 %v3054_v39, %v6301_v53  ;;  %v3056_v57 = vpop.f32.mrb[74].mxu0 }
0x12ad   : > { %4932 = vtanh.f32 %v3119_v16  ;;  %v3121_v1 = vmul.f32 0.7978846, %v3109_v48  ;;  %v3075_v46 = vmul.f32 %v6331_v29, %v6331_v29  ;;  %v6340_v40 = vadd.f32 %v3056_v57, %v6298_v61  ;;  %v3058_v55 = vpop.f32.mrb[75].mxu0 }
0x12ae   : > { %4934 = vtanh.f32 %v3120_v3  ;;  %v3122_v6 = vmul.f32 0.7978846, %v3110_v36  ;;  %v3076_v5 = vmul.f32 %v6335_v56, %v6335_v56  ;;  %v3059_v15 = vadd.f32 %v3058_v55, %v6301_v53 }
0x12af   : > { %4936 = vtanh.f32 %v3121_v1  ;;  %v3087_v11 = vmul.f32 %v3075_v46, %v6331_v29  ;;  %v3077_v0 = vmul.f32 %v6340_v40, %v6340_v40 }
0x12b0   : > { %4938 = vtanh.f32 %v3122_v6  ;;  %v3088_v62 = vmul.f32 %v3076_v5, %v6335_v56  ;;  %v3078_v26 = vmul.f32 %v3059_v15, %v3059_v15 }
0x12b1   : > { %v3099_v34 = vmul.f32 0.044715, %v3087_v11  ;;  %v3089_v44 = vmul.f32 %v3077_v0, %v6340_v40 }
0x12b2   : > { %v3100_v4 = vmul.f32 0.044715, %v3088_v62  ;;  %v3090_v18 = vmul.f32 %v3078_v26, %v3059_v15 }
0x12b3   : > { %v3111_v19 = vadd.f32 %v3099_v34, %v6331_v29  ;;  %v3101_v27 = vmul.f32 0.044715, %v3089_v44 }
0x12b4   : > { %v3112_v12 = vadd.f32 %v3100_v4, %v6335_v56  ;;  %v3102_v20 = vmul.f32 0.044715, %v3090_v18 }
0x12b5   : > { %v3123_v28 = vmul.f32 0.7978846, %v3111_v19  ;;  %v3113_v60 = vadd.f32 %v3101_v27, %v6340_v40 }
0x12b6   : > { %v3124_v43 = vmul.f32 0.7978846, %v3112_v12  ;;  %v3114_v14 = vadd.f32 %v3102_v20, %v3059_v15 }
0x12b7   : > { %v4933_v31 = vpop.eup %4932  ;;  %4940 = vtanh.f32 %v3123_v28  ;;  %v3125_v32 = vmul.f32 0.7978846, %v3113_v60 }
0x12b8   : > { %v4935_v7 = vpop.eup %4934  ;;  %v3143_v8 = vadd.f32 1.0, %v4933_v31  ;;  %4942 = vtanh.f32 %v3124_v43  ;;  %v3126_v24 = vmul.f32 0.7978846, %v3114_v14 }
0x12b9   : > { %v4937_v22 = vpop.eup %4936  ;;  %4944 = vtanh.f32 %v3125_v32  ;;  %v3144_v52 = vadd.f32 1.0, %v4935_v7 }
0x12ba   : > { %v4939_v49 = vpop.eup %4938  ;;  %v3155_v47 = vmul.f32 0.5, %v3143_v8  ;;  %v3145_v63 = vadd.f32 1.0, %v4937_v22  ;;  %4946 = vtanh.f32 %v3126_v24 }
0x12bb   : > { %v3146_v23 = vadd.f32 1.0, %v4939_v49  ;;  %v3156_v9 = vmul.f32 0.5, %v3144_v52 }
0x12bc   : > { %v3157_v51 = vmul.f32 0.5, %v3145_v63  ;;  %v3167_v10 = vmul.f32 %v3155_v47, %v6304_v42 }
0x12bd   : > { %v3158_v41 = vmul.f32 0.5, %v3146_v23  ;;  %v3168_v25 = vmul.f32 %v3156_v9, %v6307_v38 }
0x12be   : > { %v3169_v21 = vmul.f32 %v3157_v51, %v6312_v59 }
0x12bf   : > { %v3170_v30 = vmul.f32 %v3158_v41, %v6317_v2 }
0x12c0   : > { %v3179_v50 = vpack.c.bf16 %v3169_v21, %v3167_v10 }
0x12c1   : > { %v4941_v37 = vpop.eup %4940  ;;  %v3180_v16 = vpack.c.bf16 %v3170_v30, %v3168_v25 }
0x12c2   : > { %v4943_v48 = vpop.eup %4942  ;;  %v3147_v39 = vadd.f32 1.0, %v4941_v37 }
0x12c3   : > { %v4945_v3 = vpop.eup %4944  ;;  %3346 = vmatprep.mubr.bf16.mxu1 %v3180_v16  ;;  %v3148_v36 = vadd.f32 1.0, %v4943_v48 }
0x12c4   : > { %v4947_v57 = vpop.eup %4946  ;;  %3347 = vmatmul.mubr.bf16.vlgmr.msra.gmra.mrb[80].mxu1 %v3179_v50  ;;  %v3149_v1 = vadd.f32 1.0, %v4945_v3  ;;  %v3159_v46 = vmul.f32 0.5, %v3147_v39 }
0x12c5   : > { %v3150_v55 = vadd.f32 1.0, %v4947_v57  ;;  %v3160_v42 = vmul.f32 0.5, %v3148_v36 }
0x12c6   : > { %v3161_v6 = vmul.f32 0.5, %v3149_v1  ;;  %v3171_v38 = vmul.f32 %v3159_v46, %v6331_v29 }
0x12c7   : > { %v3162_v59 = vmul.f32 0.5, %v3150_v55  ;;  %v3172_v5 = vmul.f32 %v3160_v42, %v6335_v56  ;;  %v3217_v55 = vld [vmem:[#allocation7 + $0x7] ss:$0 sm:$0xff] }
0x12c8   : > { %v3173_v2 = vmul.f32 %v3161_v6, %v6340_v40 }
0x12c9   : > { %v3174_v11 = vmul.f32 %v3162_v59, %v3059_v15 }
0x12ca   : > { %v3181_v0 = vpack.c.bf16 %v3173_v2, %v3171_v38 }
0x12cb   : > { %v3182_v62 = vpack.c.bf16 %v3174_v11, %v3172_v5 }
0x12cd   : > { %3353 = vmatprep.mubr.bf16.mxu1 %v3182_v62 }
0x12ce   : > { %3354 = vmatmul.mubr.bf16.gmra.mrb[84].mxu1 %v3181_v0 }
0x1342   : > { %v3062_v26 = vpop.f32.mrb[76].mxu0 }
0x1343   : > { %v3063_v34 = vadd.f32 %v3062_v26, %v6298_v61  ;;  %v3064_v44 = vpop.f32.mrb[77].mxu0 }
0x1344   : > { %v3065_v4 = vadd.f32 %v3064_v44, %v6301_v53  ;;  %v3066_v18 = vpop.f32.mrb[78].mxu0 }
0x1345   : > { %v3079_v19 = vmul.f32 %v3063_v34, %v3063_v34  ;;  %v3067_v27 = vadd.f32 %v3066_v18, %v6298_v61  ;;  %v3068_v29 = vpop.f32.mrb[79].mxu0 }
0x1346   : > { %v3080_v12 = vmul.f32 %v3065_v4, %v3065_v4  ;;  %v3069_v40 = vadd.f32 %v3068_v29, %v6301_v53 }
0x1347   : > { %v3091_v56 = vmul.f32 %v3079_v19, %v3063_v34  ;;  %v3081_v15 = vmul.f32 %v3067_v27, %v3067_v27 }
0x1348   : > { %v3092_v20 = vmul.f32 %v3080_v12, %v3065_v4  ;;  %v3082_v28 = vmul.f32 %v3069_v40, %v3069_v40 }
0x1349   : > { %v3103_v60 = vmul.f32 0.044715, %v3091_v56  ;;  %v3093_v43 = vmul.f32 %v3081_v15, %v3067_v27 }
0x134a   : > { %v3104_v14 = vmul.f32 0.044715, %v3092_v20  ;;  %v3094_v31 = vmul.f32 %v3082_v28, %v3069_v40  ;;  %v4764_v28 = vld [vmem:[#allocation16 + $0x4] ss:$16 sps:$4 sm:$0xff]  }
0x134b   : > { %v3115_v32 = vadd.f32 %v3103_v60, %v3063_v34  ;;  %v3105_v7 = vmul.f32 0.044715, %v3093_v43  ;;  %v4767_v60 = vld [vmem:[#allocation16 + $0xc] ss:$16 sps:$4 sm:$0xff]   ;;  %v4766_v43 = vld [vmem:[#allocation16] ss:$16 sps:$4 sm:$0xff]   ;;  %4394 = vmatprep.subr.bf16.mxu0 %v4764_v28 }
0x134c   : > { %v3116_v8 = vadd.f32 %v3104_v14, %v3065_v4  ;;  %v3106_v24 = vmul.f32 0.044715, %v3094_v31  ;;  %v4769_v14 = vld [vmem:[#allocation16 + $0x8] ss:$16 sps:$4 sm:$0xff]   ;;  %4426 = vmatprep.subr.bf16.mxu1 %v4767_v60  ;;  %4396 = vmatpush1.bf16.msra.mxu0 %v4766_v43  ;;  %v4770_v31 = vld [vmem:[#allocation16 + $0x24] ss:$16 sps:$4 sm:$0xff]  }
0x134d   : > { %v3127_v22 = vmul.f32 0.7978846, %v3115_v32  ;;  %v3117_v52 = vadd.f32 %v3105_v7, %v3067_v27  ;;  %4428 = vmatpush1.bf16.msra.mxu1 %v4769_v14  ;;  %v4773_v32 = vld [vmem:[#allocation16 + $0x2c] ss:$16 sps:$4 sm:$0xff]   ;;  %v4772_v7 = vld [vmem:[#allocation16 + $0x20] ss:$16 sps:$4 sm:$0xff]   ;;  %4398 = vmatprep.subr.bf16.mxu0 %v4770_v31 }
0x134e   : > { %v3128_v49 = vmul.f32 0.7978846, %v3116_v8  ;;  %v3118_v61 = vadd.f32 %v3106_v24, %v3069_v40  ;;  %v4775_v8 = vld [vmem:[#allocation16 + $0x28] ss:$16 sps:$4 sm:$0xff]   ;;  %4430 = vmatprep.subr.bf16.mxu1 %v4773_v32  ;;  %v4776_v24 = vld [vmem:[#allocation16 + $0x44] ss:$16 sps:$4 sm:$0xff]  }
0x134f   : > { %4948 = vtanh.f32 %v3127_v22  ;;  %v3129_v47 = vmul.f32 0.7978846, %v3117_v52  ;;  %v4779_v22 = vld [vmem:[#allocation16 + $0x4c] ss:$16 sps:$4 sm:$0xff]   ;;  %v4778_v52 = vld [vmem:[#allocation16 + $0x40] ss:$16 sps:$4 sm:$0xff]  }
0x1350   : > { %4950 = vtanh.f32 %v3128_v49  ;;  %v3130_v53 = vmul.f32 0.7978846, %v3118_v61  ;;  %4400 = vmatpush1.bf16.msra.mxu0 %v4772_v7  ;;  %v4781_v49 = vld [vmem:[#allocation16 + $0x48] ss:$16 sps:$4 sm:$0xff]   ;;  %v4782_v61 = vld [vmem:[#allocation16 + $0x64] ss:$16 sps:$4 sm:$0xff]  }
0x1351   : > { %4952 = vtanh.f32 %v3129_v47  ;;  %4432 = vmatpush1.bf16.msra.mxu1 %v4775_v8  ;;  %4402 = vmatprep.subr.bf16.mxu0 %v4776_v24  ;;  %v4785_v47 = vld [vmem:[#allocation16 + $0x6c] ss:$16 sps:$4 sm:$0xff]  }
0x1352   : > { %4954 = vtanh.f32 %v3130_v53  ;;  %4434 = vmatprep.subr.bf16.mxu1 %v4779_v22  ;;  %v4784_v53 = vld [vmem:[#allocation16 + $0x60] ss:$16 sps:$4 sm:$0xff]  }
0x1354   : > { %4404 = vmatpush1.bf16.msra.mxu0 %v4778_v52 }
0x1355   : > { %4436 = vmatpush1.bf16.msra.mxu1 %v4781_v49  ;;  %4406 = vmatprep.subr.bf16.mxu0 %v4782_v61 }
0x1356   : > { %4438 = vmatprep.subr.bf16.mxu1 %v4785_v47 }
0x1358   : > { %4408 = vmatpush1.bf16.msra.mxu0 %v4784_v53 }
0x1359   : > { %v4949_v63 = vpop.eup %4948 }
0x135a   : > { %v4951_v23 = vpop.eup %4950  ;;  %v3151_v9 = vadd.f32 1.0, %v4949_v63  ;;  %v4787_v63 = vld [vmem:[#allocation16 + $0x68] ss:$16 sps:$4 sm:$0xff]  }
0x135b   : > { %v4953_v51 = vpop.eup %4952  ;;  %v3152_v41 = vadd.f32 1.0, %v4951_v23  ;;  %4440 = vmatpush1.bf16.msra.mxu1 %v4787_v63  ;;  %v4788_v23 = vld [vmem:[#allocation16 + $0x84] ss:$16 sps:$4 sm:$0xff]  }
0x135c   : > { %v4955_v10 = vpop.eup %4954  ;;  %v3153_v21 = vadd.f32 1.0, %v4953_v51  ;;  %v3163_v25 = vmul.f32 0.5, %v3151_v9  ;;  %v4791_v9 = vld [vmem:[#allocation16 + $0x8c] ss:$16 sps:$4 sm:$0xff]   ;;  %v4790_v51 = vld [vmem:[#allocation16 + $0x80] ss:$16 sps:$4 sm:$0xff]   ;;  %4410 = vmatprep.subr.bf16.mxu0 %v4788_v23 }
0x135d   : > { %v3154_v30 = vadd.f32 1.0, %v4955_v10  ;;  %v3164_v50 = vmul.f32 0.5, %v3152_v41  ;;  %v4793_v41 = vld [vmem:[#allocation16 + $0x88] ss:$16 sps:$4 sm:$0xff]   ;;  %4442 = vmatprep.subr.bf16.mxu1 %v4791_v9  ;;  %4412 = vmatpush1.bf16.msra.mxu0 %v4790_v51  ;;  %v4794_v10 = vld [vmem:[#allocation16 + $0xa4] ss:$16 sps:$4 sm:$0xff]  }
0x135e   : > { %v3165_v37 = vmul.f32 0.5, %v3153_v21  ;;  %v3175_v48 = vmul.f32 %v3163_v25, %v3063_v34  ;;  %v4797_v21 = vld [vmem:[#allocation16 + $0xac] ss:$16 sps:$4 sm:$0xff]   ;;  %v4796_v25 = vld [vmem:[#allocation16 + $0xa0] ss:$16 sps:$4 sm:$0xff]   ;;  %4414 = vmatprep.subr.bf16.mxu0 %v4794_v10 }
0x135f   : > { %v3166_v16 = vmul.f32 0.5, %v3154_v30  ;;  %v3176_v3 = vmul.f32 %v3164_v50, %v3065_v4  ;;  %4444 = vmatpush1.bf16.msra.mxu1 %v4793_v41  ;;  %v4799_v30 = vld [vmem:[#allocation16 + $0xa8] ss:$16 sps:$4 sm:$0xff]   ;;  %v4800_v50 = vld [vmem:[#allocation16 + $0xc4] ss:$16 sps:$4 sm:$0xff]  }
0x1360   : > { %v3177_v39 = vmul.f32 %v3165_v37, %v3067_v27  ;;  %4446 = vmatprep.subr.bf16.mxu1 %v4797_v21  ;;  %v4802_v37 = vld [vmem:[#allocation16 + $0xc0] ss:$16 sps:$4 sm:$0xff]  }
0x1361   : > { %v3178_v36 = vmul.f32 %v3166_v16, %v3069_v40  ;;  %4416 = vmatpush1.bf16.msra.mxu0 %v4796_v25  ;;  %v4803_v16 = vld [vmem:[#allocation16 + $0xcc] ss:$16 sps:$4 sm:$0xff]  }
0x1362   : > { %v3183_v57 = vpack.c.bf16 %v3177_v39, %v3175_v48  ;;  %v4805_v48 = vld [vmem:[#allocation16 + $0xc8] ss:$16 sps:$4 sm:$0xff]   ;;  %v4806_v39 = vld [vmem:[#allocation16 + $0xe4] ss:$16 sps:$4 sm:$0xff]   ;;  %4418 = vmatprep.subr.bf16.mxu0 %v4800_v50 }
0x1363   : > { %v3184_v1 = vpack.c.bf16 %v3178_v36, %v3176_v3  ;;  %4448 = vmatpush1.bf16.msra.mxu1 %v4799_v30  ;;  %v4809_v3 = vld [vmem:[#allocation16 + $0xec] ss:$16 sps:$4 sm:$0xff]   ;;  %v4808_v36 = vld [vmem:[#allocation16 + $0xe0] ss:$16 sps:$4 sm:$0xff]  }
0x1364   : > { %4450 = vmatprep.subr.bf16.mxu1 %v4803_v16 }
0x1365   : > { %3360 = vmatprep.mubr.bf16.mxu1 %v3184_v1  ;;  %4420 = vmatpush1.bf16.msra.mxu0 %v4802_v37 }
0x1366   : > { %3361 = vmatmul.mubr.bf16.gmra.mrb[88].mxu1 %v3183_v57  ;;  %v4811_v57 = vld [vmem:[#allocation16 + $0xe8] ss:$16 sps:$4 sm:$0xff]   ;;  %4422 = vmatprep.subr.bf16.mxu0 %v4806_v39 }
0x1367   : > { %3657 = vmatprep.mubr.f32.mxu1 %v5317_v54  ;;  %4452 = vmatpush1.bf16.msra.mxu1 %v4805_v48 }
0x1368   : > { %4454 = vmatprep.subr.bf16.mxu1 %v4809_v3 }
0x1369   : > { %4424 = vmatpush1.bf16.msra.mxu0 %v4808_v36 }
0x136b   : > { %4456 = vmatpush1.bf16.msra.mxu1 %v4811_v57 }
0x1397   : > { %v4155_v46 = vpop.f32.mrb[80].mxu1 }
0x1398   : > { %v4156_v42 = vpop.f32.mrb[81].mxu1 }
0x1399   : > { %v4157_v6 = vadd.f32 %v4156_v42, %v4155_v46  ;;  %v4158_v59 = vpop.f32.mrb[82].mxu1 }
0x139a   : > { %v4159_v38 = vpop.f32.mrb[83].mxu1 }
0x139b   : > { %v3349_v2 = vadd.f32 %v4157_v6, %v3217_v55 }
0x139d   : > { %v3367_v5 = vadd.f32 %v3349_v2, %v6224_v58 }
0x139f   : > { %3371 = vadd.xlane.f32.xlu1 %v3367_v5 }
0x13a1   : > { %v4161_v11 = vpop.f32.mrb[84].mxu1 }
0x13a2   : > { %v4162_v0 = vpop.f32.mrb[85].mxu1  ;;  %v3369_v11 = vld [vmem:[#allocation7 + $0x20] ss:$0 sm:$0xff] }
0x13a3   : > { %v4164_v62 = vpop.f32.mrb[86].mxu1 }
0x13a4   : > { %v4165_v26 = vpop.f32.mrb[87].mxu1 }
0x13a5   : > { %v4166_v34 = vadd.f32 %v4165_v26, %v4164_v62 }
0x13a7   : > { %v3358_v44 = vadd.f32 %v4166_v34, %v3217_v55  ;;  %v3370_v34 = vld [vmem:[#allocation7 + $0x21] ss:$0 sm:$0xff] }
0x13a9   : > { %v3368_v4 = vadd.f32 %v3358_v44, %v6232_v45 }
0x13ab   : > { %3373 = vadd.xlane.f32.xlu0 %v3368_v4 }
0x142c   : > { %v3372_v54 = vpop.xlane.xlu1 %3371 }
0x142d   : > { %v3375_v18 = vmul.f32 0.0078125, %v3372_v54 }
0x142f   : > { %v6367_v19 = vsub.f32 %v3367_v5, %v3375_v18 }
0x1431   : > { %v3379_v27 = vmul.f32 %v6367_v19, %v6367_v19 }
0x1433   : > { %3381 = vadd.xlane.f32.xlu1 %v3379_v27  ;;  %v3494_v27 = vld [vmem:[#allocation7 + $0x22] ss:$8 sm:$0xf] }
0x1438   : > { %v3374_v29 = vpop.xlane.xlu0 %3373 }
0x1439   : > { %v3376_v58 = vmul.f32 0.0078125, %v3374_v29  ;;  %v4167_v12 = vpop.f32.mrb[88].mxu1  ;;  %v5323_v29 = vmov 1983009808  }
0x143a   : > { %v4168_v40 = vpop.f32.mrb[89].mxu1  ;;  %v3499_v12 = vrot.slane %v3494_v27, %v5788_v17 }
0x143b   : > { %v6371_v56 = vsub.f32 %v3368_v4, %v3376_v58  ;;  %v4170_v15 = vpop.f32.mrb[90].mxu1  ;;  %v3671_v58 = vunpack.c.l.s4 %v5323_v29  ;;  %v3507_v40 = vrot.slane %v3494_v27, %v826_v33 }
0x143c   : > { %v4171_v20 = vpop.f32.mrb[91].mxu1 }
0x143d   : > { %v3380_v45 = vmul.f32 %v6371_v56, %v6371_v56  ;;  %v3672_v15 = vunpack.c.0.s8 %v3671_v58 }
0x143f   : > { %3383 = vadd.xlane.f32.xlu0 %v3380_v45  ;;  %v3675_v7 = vsub.s32 %v3672_v15, %v5785_v13 }
0x14c0   : > { %v3382_v1 = vpop.xlane.xlu1 %3381 }
0x14c1   : > { %v3385_v46 = vmul.f32 0.0078125, %v3382_v1 }
0x14c3   : > { %v3387_v55 = vadd.f32 1e-06, %v3385_v46 }
0x14c5   : > { %4956 = vrsqrt.f32 %v3387_v55 }
0x14cc   : > { %v3384_v42 = vpop.xlane.xlu0 %3383 }
0x14cd   : > { %v3386_v6 = vmul.f32 0.0078125, %v3384_v42 }
0x14cf   : > { %v3388_v59 = vadd.f32 1e-06, %v3386_v6  ;;  %v4957_v38 = vpop.eup %4956 }
0x14d0   : > { %v3391_v2 = vmul.f32 %v4957_v38, %v6367_v19  ;;  %v3510_v19 = vsub.s32 3, %v5785_v13 }
0x14d1   : > { %4958 = vrsqrt.f32 %v3388_v59 }
0x14d2   : > { %v3393_v62 = vmul.f32 %v3391_v2, %v3369_v11  ;;  %v3511_v20 = vrot.slane %v3494_v27, %v3510_v19 }
0x14d4   : > { %v3395_v4 = vadd.f32 %v3393_v62, %v3370_v34 }
0x14db   : > { %v4959_v5 = vpop.eup %4958 }
0x14dc   : > { %v3392_v0 = vmul.f32 %v4959_v5, %v6371_v56  ;;  %v3503_v56 = vrot.slane %v3494_v27, %v5792_v35 }
0x14de   : > { %v3394_v26 = vmul.f32 %v3392_v0, %v3369_v11 }
0x14e0   : > { %v3396_v44 = vadd.f32 %v3394_v26, %v3370_v34 }
0x14e2   : > { %v3518_v54 = vrot.slane %v3396_v44, 7 }
0x14e4   : > { %v3520_v18 = vsel %vm3519_vm5, %v3518_v54, %v3395_v4 }
0x14e5   : > { %3587 = vmatmul.mubr.f32.vlgmr.msra.gmra.mrb[80].mxu0 %v3520_v18  ;;  %3658 = vmatmul.mubr.f32.vlgmr.msra.gmra.mrb[92].mxu1 %v3520_v18 }
0x15b8   : > { %v3588_v45 = vpop.f32.mrb[80].mxu0  ;;  %v3659_v28 = vpop.f32.mrb[92].mxu1 }
0x15b9   : > { %v3589_v60 = vadd.f32 %v3588_v45, %v3499_v12  ;;  %v3660_v43 = vadd.f32 %v3659_v28, %v3507_v40  ;;  %v3590_v14 = vpop.f32.mrb[81].mxu0  ;;  %v3661_v31 = vpop.f32.mrb[93].mxu1 }
0x15ba   : > { %v3591_v32 = vadd.f32 %v3590_v14, %v3503_v56  ;;  %v3662_v17 = vadd.f32 %v3661_v31, %v3511_v20 }
0x15bc   : > { %v3668_v8 = vcombine.low %v3589_v60, %v3591_v32  ;;  %v3669_v33 = vcombine.low %v3660_v43, %v3662_v17 }
0x15be   : > { %v3676_v35 = vrot.slane %v3668_v8, %v3675_v7  ;;  %v3683_v24 = vrot.slane %v3669_v33, %v3675_v7 }
0x15c0   : > { %v3684_v22 = vcombine.low %v3676_v35, %v3683_v24 }
0x15c2   : > { %3686 = vst [vmem:[%s467_s25] sm:$0xff] %v3684_v22 }
0x15c3   : > { %5227 = shalt.err (!%p5224_p9)
}
0x15c4   : > { %s5228_s2 = scalar_lea.hbm %s6388_s28, 128  ;;  %s5232_s22 = scalar_lea.hbm %s6478_s24, 256 }
0x15c5   : > { %p5229_p4 = scmp.ne.s32.totalorder %s6388_s28, %s5228_s2  ;;  %p5233_p2 = scmp.lt.u32.totalorder %s6388_s28, %s6478_s24 }
0x15c6   : > { %p5234_p0 = scmp.lt.u32.totalorder %s5232_s22, %s5228_s2  ;;  %p5236_p10 = scmp.lt.u32.totalorder %s5228_s2, %s6388_s28 }
0x15c7   : > { %p5230_p3 = pnand %p5229_p4, %p6479_p1 }
0x15c8   : > { %p5235_p5 = por %p5234_p0, %p5233_p2 }
0x15c9   : > { %p5231_p6 = pneg %p5230_p3 }
0x15ca   : > { %p5237_p11 = por %p5236_p10, %p5235_p5 }
0x15cc   : > { %p5238_p12 = pnand %p5237_p11, %p5231_p6 }
0x15ce   : > { %5241 = shalt.err (!%p5238_p12)
}
0x15cf   : > { %4549 = dma.vmem_to_hbm [thread:$0]  (%p6479_p1), %s6390_s26, 128, %s6388_s28, %s3688_s21  }
0x15d0 PF: > { %s3714_s20 = sand.u32 1, %s5284_s30   ;;  %p6480_p13 = scmp.ne.s32.totalorder %s6467_s23, 0 }
0x15d1   : > { %p6481_p8 = scmp.ge.s32.totalorder %s5296_s12, 2  ;;  %s3715_s25 = scalar_lea.sflag [#allocation4], %s3714_s20 }
0x15d3   : > { %p4581_p7 = pnand %p6481_p8, %p6480_p13 }
0x15d5   : > { %5279 = dma.done.wait (!%p4581_p7), %s3715_s25, 128  }
0x15d6   : > { %5281 = vsyncadd (!%p4581_p7), %s3715_s25, 4294967168  ;;  %p26_p9 = scmp.ge.s32.totalorder %s5605_s17, 4   ;;  %s6482_s30 = smov %s5288_s10 }
0x15d7   : > { %s6483_s10 = smov %s5292_s11  ;;  %s6484_s11 = smov %s5616_s13 }
0x15d8   : > { %s6485_s12 = smov %s5605_s17  ;;  %28 = sbr.rel (!%p26_p9) target bundleno = 15 (0xf), region = 136 }
0x15df   :  { %3720 = vsyncpa [#allocation3], 1 }
0x15e0   :  { %3722 = vsyncpa [#allocation3 + $0x1], 1 }
0x15e1   :  { %3723 = vsyncpa [#allocation6], 1 }
0x15e2   :  { %3724 = vsyncpa [#allocation9], 1 }
0x15e3   :  { %3725 = vsyncpa [#allocation12], 1 }
0x15e4   :  { %3726 = vsyncpa [#allocation15], 1 }
0x15e5   :  { %3727 = vsyncpa [#allocation4], 1 }
0x15e6   :  { %3729 = vsyncpa [#allocation4 + $0x1], 1 }

</bundles_post_ra>
